<compile_context>
chip_gen: v6e
topology: v6e:2x2x1
jax: 0.10.0
libtpu: 0.0.40
codegen_flags: <defaults>
</compile_context>

<pallas_src>
import math

import jax
import jax.numpy as jnp
from jax.experimental import pallas as pl
from jax.experimental.pallas import tpu as pltpu


MATMUL_DTYPE = jnp.bfloat16     # MXU operand dtype; accumulation is always f32


# ----------------------------------------------------------------------------
# Fused DGCNN conv stack kernel: one (batch, point-tile, neighbor-block) step.
# ----------------------------------------------------------------------------
def dgcnn_kernel(gf_ref,
                 w1_ref, w2_ref, w3_ref, w4_ref, w5_ref, sb_ref,
                 out_ref,
                 acc_ref):
    jb = pl.program_id(2)
    last_j = pl.num_programs(2) - 1

    widths = (w1_ref.shape[1], w2_ref.shape[1], w3_ref.shape[1],
              w4_ref.shape[1], w5_ref.shape[1])
    offs = [0]
    for w in widths:
        offs.append(offs[-1] + w)

    def bn_relu(y, layer):
        # Folded eval-mode BatchNorm (scale row 0, bias row 1) + ReLU, in f32.
        lo, hi = offs[layer], offs[layer + 1]
        return jnp.maximum(y * sb_ref[0:1, lo:hi] + sb_ref[1:2, lo:hi], 0.0)

    _, tk, tn, c2p = gf_ref.shape
    gf = gf_ref[0].reshape(tk * tn, c2p)               # (tk*tn, C2p) f32
    md = w2_ref.dtype

    # Layers 1-4 on the Tk-stacked slab (M = tk*tn rows -> good MXU fill).
    # Layer 1 stays f32 (raw coordinates, tiny contraction); layers 2-4 use
    # bf16 MXU operands with f32 accumulation.
    h1 = bn_relu(jnp.dot(gf, w1_ref[...],
                         preferred_element_type=jnp.float32), 0)
    h2 = bn_relu(jnp.dot(h1.astype(md), w2_ref[...],
                         preferred_element_type=jnp.float32), 1)
    h3 = bn_relu(jnp.dot(h2.astype(md), w3_ref[...],
                         preferred_element_type=jnp.float32), 2)
    h4 = bn_relu(jnp.dot(h3.astype(md), w4_ref[...],
                         preferred_element_type=jnp.float32), 3)

    # Max over the tk neighbor slices of this block (exact), then a single
    # read-modify-write of the pooled (tn, 512) VMEM slab per grid step.
    pools = [h1.reshape(tk, tn, widths[0]).max(axis=0),
             h2.reshape(tk, tn, widths[1]).max(axis=0),
             h3.reshape(tk, tn, widths[2]).max(axis=0),
             h4.reshape(tk, tn, widths[3]).max(axis=0)]

    @pl.when(jb == 0)
    def _():
        for m, lo, hi in zip(pools, offs[:4], offs[1:5]):
            acc_ref[:, lo:hi] = m

    @pl.when(jb != 0)
    def _():
        for m, lo, hi in zip(pools, offs[:4], offs[1:5]):
            acc_ref[:, lo:hi] = jnp.maximum(acc_ref[:, lo:hi], m)

    # Final conv5(concat(x1..x4)): ONE full-depth (tn,512)x(512,E) MXU dot.
    @pl.when(jb == last_j)
    def _():
        y5 = jnp.dot(acc_ref[...].astype(md), w5_ref[...],
                     preferred_element_type=jnp.float32)
        out_ref[0] = bn_relu(y5, 4)                    # (tn, E)


def dgcnn_conv_stack(gf, params, *, tk=4, tn=None):
    """gf: (B, K, N, C2p) f32 graph features -> (B, N, emb_dims) f32."""
    B, K, N, C2 = gf.shape

    tk = max(1, math.gcd(K, tk))                       # neighbor block (divides K)
    if tn is None:
        tn = min(N, 256)
    tn = math.gcd(N, tn)                               # point tile (divides N)
    assert tn % 8 == 0, "point tile must be a multiple of 8 sublanes"

    w1 = params["w1"].astype(jnp.float32)              # (6, 64) -> pad rows to C2p
    w1 = jnp.pad(w1, ((0, C2 - w1.shape[0]), (0, 0)))
    w2 = params["w2"].astype(MATMUL_DTYPE)             # (64, 64)
    w3 = params["w3"].astype(MATMUL_DTYPE)             # (64, 128)
    w4 = params["w4"].astype(MATMUL_DTYPE)             # (128, 256)
    w5 = params["w5"].astype(MATMUL_DTYPE)             # (512, E)
    sb = jnp.concatenate(params["sb"], axis=1)         # (2, 512 + E) scale/bias slab
    E = w5.shape[1]
    cat_w = w1.shape[1] + w2.shape[1] + w3.shape[1] + w4.shape[1]
    assert w5.shape[0] == cat_w

    def const_spec(a):
        return pl.BlockSpec(a.shape, lambda b, n, j: (0,) * a.ndim)

    weights = (w1, w2, w3, w4, w5, sb)
    in_specs = [pl.BlockSpec((1, tk, tn, C2), lambda b, n, j: (b, j, n, 0))]
    in_specs += [const_spec(a) for a in weights]

    # NOTE: for production sizes (N >= 1024, larger tk) budget VMEM explicitly
    # and set pltpu.CompilerParams(vmem_limit_bytes=...) — v7x has 64 MiB
    # physical VMEM and v5e's default scoped limit is 16 MiB.
    return pl.pallas_call(
        dgcnn_kernel,
        grid=(B, N // tn, K // tk),
        in_specs=in_specs,
        out_specs=pl.BlockSpec((1, tn, E), lambda b, n, j: (b, n, 0)),
        out_shape=jax.ShapeDtypeStruct((B, N, E), jnp.float32),
        scratch_shapes=[pltpu.VMEM((tn, cat_w), jnp.float32)],
        compiler_params=pltpu.CompilerParams(
            dimension_semantics=("parallel", "parallel", "arbitrary")),
    )(gf, *weights)


# ----------------------------------------------------------------------------
# Plain-JAX graph feature construction (knn + gather), matching the reference.
# Built directly in (B, k, N, C) layout; channel dim zero-padded to a multiple
# of 8 (extra w1 rows are zero, so the conv result is exact).
# ----------------------------------------------------------------------------
def get_graph_feature(x, k=20, pad_channels_to=8):
    """x: (B, C, N) -> (B, k, N, ceil(2C/8)*8) with [neighbor, center, 0-pad]."""
    B, C, N = x.shape
    xt = jnp.transpose(x, (0, 2, 1))                        # (B, N, C)
    inner = -2.0 * jnp.matmul(xt, x)                        # (B, N, N)
    xx = jnp.sum(x * x, axis=1, keepdims=True)              # (B, 1, N)
    pairwise = -xx - inner - jnp.transpose(xx, (0, 2, 1))   # -||xi - xj||^2
    idx = jax.lax.top_k(pairwise, k)[1]                     # (B, N, k)
    idx = jnp.transpose(idx, (0, 2, 1))                     # (B, k, N) (tiny int transpose)
    feature = jax.vmap(lambda pts, ind: pts[ind])(xt, idx)  # (B, k, N, C)
    center = jnp.broadcast_to(xt[:, None, :, :], (B, k, N, C))
    parts = [feature, center]
    c2 = 2 * C
    pad = (-c2) % pad_channels_to
    if pad:
        parts.append(jnp.zeros((B, k, N, pad), x.dtype))
    return jnp.concatenate(parts, axis=-1)                  # (B, k, N, c2+pad)


def dgcnn_forward(x, params, k=20):
    """x: (B, 3, N) float32 (PyTorch NCW layout) -> (B, emb_dims, N)."""
    gf = get_graph_feature(x, k=k)
    emb = dgcnn_conv_stack(gf, params)                      # (B, N, E)
    return jnp.transpose(emb, (0, 2, 1))                    # (B, E, N)


# ----------------------------------------------------------------------------
# Pure-JAX reference (same folded-BN / bf16-matmul numerics) for validation.
# ----------------------------------------------------------------------------
def dgcnn_conv_stack_ref(gf, params):
    md = MATMUL_DTYPE
    c2p = gf.shape[-1]
    w1 = jnp.pad(params["w1"], ((0, c2p - params["w1"].shape[0]), (0, 0)))
    sb1, sb2, sb3, sb4, sb5 = params["sb"]

    def bn_relu(y, sb):
        return jnp.maximum(y * sb[0] + sb[1], 0.0)

    def mm(a, w):
        return jnp.einsum("...c,cd->...d", a.astype(md), w.astype(md),
                          preferred_element_type=jnp.float32)

    h1 = bn_relu(jnp.einsum("...c,cd->...d", gf, w1,
                            preferred_element_type=jnp.float32,
                            precision=jax.lax.Precision.HIGHEST), sb1)
    h2 = bn_relu(mm(h1, params["w2"]), sb2)
    h3 = bn_relu(mm(h2, params["w3"]), sb3)
    h4 = bn_relu(mm(h3, params["w4"]), sb4)
    pooled = jnp.concatenate([h.max(axis=1) for h in (h1, h2, h3, h4)],
                             axis=-1)                       # (B, N, 512)
    return bn_relu(mm(pooled, params["w5"]), sb5)           # (B, N, E)


def dgcnn_forward_ref(x, params, k=20):
    gf = get_graph_feature(x, k=k)
    return jnp.transpose(dgcnn_conv_stack_ref(gf, params), (0, 2, 1))


# ----------------------------------------------------------------------------
# Deterministic parameter init (eval-mode BatchNorm folded to scale/bias).
# ----------------------------------------------------------------------------
def _fold_bn(key, c, eps=1e-5):
    kg, kb, km, kv = jax.random.split(key, 4)
    gamma = 1.0 + 0.1 * jax.random.normal(kg, (c,), jnp.float32)
    beta = 0.1 * jax.random.normal(kb, (c,), jnp.float32)
    rmean = 0.1 * jax.random.normal(km, (c,), jnp.float32)
    rvar = 0.5 + jax.random.uniform(kv, (c,), jnp.float32)
    scale = gamma / jnp.sqrt(rvar + eps)
    bias = beta - rmean * scale
    return jnp.stack([scale, bias], axis=0)                 # (2, c)


def init_params(key, emb_dims):
    # conv1: 6->64, conv2: 64->64, conv3: 64->128, conv4: 128->256,
    # conv5: 512->emb_dims (all 1x1, bias=False) + BN per layer.
    dims_in = [6, 64, 64, 128, 512]
    dims_out = [64, 64, 128, 256, emb_dims]
    ws, sbs = [], []
    for cin, cout in zip(dims_in, dims_out):
        key, kw, kbn = jax.random.split(key, 3)
        w = (1.0 / math.sqrt(cin)) * jax.random.normal(kw, (cin, cout), jnp.float32)
        ws.append(w)
        sbs.append(_fold_bn(kbn, cout))
    return {"w1": ws[0], "w2": ws[1], "w3": ws[2], "w4": ws[3], "w5": ws[4],
            "sb": tuple(sbs)}


if __name__ == "__main__":
    B, N, K_NEIGH, EMB = 2, 64, 20, 256
    key = jax.random.PRNGKey(0)
    kp, kx = jax.random.split(key)
    params = init_params(kp, EMB)
    x = jax.random.normal(kx, (B, 3, N), jnp.float32)

    fwd = jax.jit(lambda pts: dgcnn_forward(pts, params, k=K_NEIGH))
    out = jax.block_until_ready(fwd(x))

    assert out.shape == (B, EMB, N)
    assert bool(jnp.all(jnp.isfinite(out)))

    # Pure-JAX reference with matching numerics (bf16 MXU layers, f32 affine).
    ref = jax.block_until_ready(
        jax.jit(lambda pts: dgcnn_forward_ref(pts, params, k=K_NEIGH))(x))
    assert bool(jnp.allclose(out, ref, rtol=3e-2, atol=3e-2))

    print("KERNEL_OK")
</pallas_src>

<mosaic_0001>
module attributes {stable_mosaic.version = 11 : i64} {
  func.func @dgcnn_kernel(%arg0: i32, %arg1: i32, %arg2: i32, %arg3: memref<1x4x64x8xf32, #tpu.memory_space<vmem>>, %arg4: memref<8x64xf32, #tpu.memory_space<vmem>>, %arg5: memref<64x64xbf16, #tpu.memory_space<vmem>>, %arg6: memref<64x128xbf16, #tpu.memory_space<vmem>>, %arg7: memref<128x256xbf16, #tpu.memory_space<vmem>>, %arg8: memref<512x256xbf16, #tpu.memory_space<vmem>>, %arg9: memref<2x768xf32, #tpu.memory_space<vmem>>, %arg10: memref<1x64x256xf32, #tpu.memory_space<vmem>>, %arg11: memref<64x512xf32, #tpu.memory_space<vmem>>) attributes {dimension_semantics = [#tpu.dimension_semantics<parallel>, #tpu.dimension_semantics<parallel>, #tpu.dimension_semantics<arbitrary>], iteration_bounds = array<i64: 2, 1, 5>, scalar_prefetch = 0 : i64, scratch_operands = 1 : i64, tpu.core_type = #tpu.core_type<tc>, window_params = [{transform_indices = @transform_0, window_bounds = array<i64: 1, 4, 64, 8>}, {pipeline_mode = #tpu.pipeline_mode<synchronous>, transform_indices = @transform_1, window_bounds = array<i64: 8, 64>}, {pipeline_mode = #tpu.pipeline_mode<synchronous>, transform_indices = @transform_2, window_bounds = array<i64: 64, 64>}, {pipeline_mode = #tpu.pipeline_mode<synchronous>, transform_indices = @transform_3, window_bounds = array<i64: 64, 128>}, {pipeline_mode = #tpu.pipeline_mode<synchronous>, transform_indices = @transform_4, window_bounds = array<i64: 128, 256>}, {pipeline_mode = #tpu.pipeline_mode<synchronous>, transform_indices = @transform_5, window_bounds = array<i64: 512, 256>}, {pipeline_mode = #tpu.pipeline_mode<synchronous>, transform_indices = @transform_6, window_bounds = array<i64: 2, 768>}, {transform_indices = @transform_7, window_bounds = array<i64: 1, 64, 256>}]} {
    %c0 = arith.constant 0 : index
    %c0_0 = arith.constant 0 : index
    %c0_1 = arith.constant 0 : index
    %c0_2 = arith.constant 0 : index
    %0 = vector.load %arg3[%c0, %c0_0, %c0_1, %c0_2] : memref<1x4x64x8xf32, #tpu.memory_space<vmem>>, vector<1x4x64x8xf32>
    %1 = vector.shape_cast %0 : vector<1x4x64x8xf32> to vector<4x64x8xf32>
    %2 = vector.shape_cast %1 : vector<4x64x8xf32> to vector<256x8xf32>
    %c0_3 = arith.constant 0 : index
    %c0_4 = arith.constant 0 : index
    %3 = vector.load %arg4[%c0_3, %c0_4] : memref<8x64xf32, #tpu.memory_space<vmem>>, vector<8x64xf32>
    %cst = arith.constant dense<0.000000e+00> : vector<256x64xf32>
    %4 = tpu.matmul %2, %3, %cst {dimension_numbers = #tpu.dot_dimension_numbers<[1], [0], [0], [1], [0, 0, 1, 1], [], []>} : vector<256x8xf32>, vector<8x64xf32>, vector<256x64xf32> -> vector<256x64xf32>
    %c0_5 = arith.constant 0 : index
    %c0_6 = arith.constant 0 : index
    %5 = vector.load %arg9[%c0_5, %c0_6] : memref<2x768xf32, #tpu.memory_space<vmem>>, vector<1x64xf32>
    %6 = vector.broadcast %5 : vector<1x64xf32> to vector<256x64xf32>
    %7 = arith.mulf %4, %6 : vector<256x64xf32>
    %c1 = arith.constant 1 : index
    %c0_7 = arith.constant 0 : index
    %8 = vector.load %arg9[%c1, %c0_7] : memref<2x768xf32, #tpu.memory_space<vmem>>, vector<1x64xf32>
    %9 = vector.broadcast %8 : vector<1x64xf32> to vector<256x64xf32>
    %10 = arith.addf %7, %9 : vector<256x64xf32>
    %cst_8 = arith.constant 0.000000e+00 : f32
    %11 = vector.broadcast %cst_8 : f32 to vector<256x64xf32>
    %12 = arith.maximumf %10, %11 : vector<256x64xf32>
    %13 = arith.truncf %12 : vector<256x64xf32> to vector<256x64xbf16>
    %c0_9 = arith.constant 0 : index
    %c0_10 = arith.constant 0 : index
    %14 = vector.load %arg5[%c0_9, %c0_10] : memref<64x64xbf16, #tpu.memory_space<vmem>>, vector<64x64xbf16>
    %cst_11 = arith.constant dense<0.000000e+00> : vector<256x64xf32>
    %15 = tpu.matmul %13, %14, %cst_11 {dimension_numbers = #tpu.dot_dimension_numbers<[1], [0], [0], [1], [0, 0, 1, 1], [], []>} : vector<256x64xbf16>, vector<64x64xbf16>, vector<256x64xf32> -> vector<256x64xf32>
    %c0_12 = arith.constant 0 : index
    %c64 = arith.constant 64 : index
    %16 = vector.load %arg9[%c0_12, %c64] : memref<2x768xf32, #tpu.memory_space<vmem>>, vector<1x64xf32>
    %17 = vector.broadcast %16 : vector<1x64xf32> to vector<256x64xf32>
    %18 = arith.mulf %15, %17 : vector<256x64xf32>
    %c1_13 = arith.constant 1 : index
    %c64_14 = arith.constant 64 : index
    %19 = vector.load %arg9[%c1_13, %c64_14] : memref<2x768xf32, #tpu.memory_space<vmem>>, vector<1x64xf32>
    %20 = vector.broadcast %19 : vector<1x64xf32> to vector<256x64xf32>
    %21 = arith.addf %18, %20 : vector<256x64xf32>
    %cst_15 = arith.constant 0.000000e+00 : f32
    %22 = vector.broadcast %cst_15 : f32 to vector<256x64xf32>
    %23 = arith.maximumf %21, %22 : vector<256x64xf32>
    %24 = arith.truncf %23 : vector<256x64xf32> to vector<256x64xbf16>
    %c0_16 = arith.constant 0 : index
    %c0_17 = arith.constant 0 : index
    %25 = vector.load %arg6[%c0_16, %c0_17] : memref<64x128xbf16, #tpu.memory_space<vmem>>, vector<64x128xbf16>
    %cst_18 = arith.constant dense<0.000000e+00> : vector<256x128xf32>
    %26 = tpu.matmul %24, %25, %cst_18 {dimension_numbers = #tpu.dot_dimension_numbers<[1], [0], [0], [1], [0, 0, 1, 1], [], []>} : vector<256x64xbf16>, vector<64x128xbf16>, vector<256x128xf32> -> vector<256x128xf32>
    %c0_19 = arith.constant 0 : index
    %c128 = arith.constant 128 : index
    %27 = vector.load %arg9[%c0_19, %c128] : memref<2x768xf32, #tpu.memory_space<vmem>>, vector<1x128xf32>
    %28 = vector.broadcast %27 : vector<1x128xf32> to vector<256x128xf32>
    %29 = arith.mulf %26, %28 : vector<256x128xf32>
    %c1_20 = arith.constant 1 : index
    %c128_21 = arith.constant 128 : index
    %30 = vector.load %arg9[%c1_20, %c128_21] : memref<2x768xf32, #tpu.memory_space<vmem>>, vector<1x128xf32>
    %31 = vector.broadcast %30 : vector<1x128xf32> to vector<256x128xf32>
    %32 = arith.addf %29, %31 : vector<256x128xf32>
    %cst_22 = arith.constant 0.000000e+00 : f32
    %33 = vector.broadcast %cst_22 : f32 to vector<256x128xf32>
    %34 = arith.maximumf %32, %33 : vector<256x128xf32>
    %35 = arith.truncf %34 : vector<256x128xf32> to vector<256x128xbf16>
    %c0_23 = arith.constant 0 : index
    %c0_24 = arith.constant 0 : index
    %36 = vector.load %arg7[%c0_23, %c0_24] : memref<128x256xbf16, #tpu.memory_space<vmem>>, vector<128x256xbf16>
    %cst_25 = arith.constant dense<0.000000e+00> : vector<256x256xf32>
    %37 = tpu.matmul %35, %36, %cst_25 {dimension_numbers = #tpu.dot_dimension_numbers<[1], [0], [0], [1], [0, 0, 1, 1], [], []>} : vector<256x128xbf16>, vector<128x256xbf16>, vector<256x256xf32> -> vector<256x256xf32>
    %c0_26 = arith.constant 0 : index
    %c256 = arith.constant 256 : index
    %38 = vector.load %arg9[%c0_26, %c256] : memref<2x768xf32, #tpu.memory_space<vmem>>, vector<1x256xf32>
    %39 = vector.broadcast %38 : vector<1x256xf32> to vector<256x256xf32>
    %40 = arith.mulf %37, %39 : vector<256x256xf32>
    %c1_27 = arith.constant 1 : index
    %c256_28 = arith.constant 256 : index
    %41 = vector.load %arg9[%c1_27, %c256_28] : memref<2x768xf32, #tpu.memory_space<vmem>>, vector<1x256xf32>
    %42 = vector.broadcast %41 : vector<1x256xf32> to vector<256x256xf32>
    %43 = arith.addf %40, %42 : vector<256x256xf32>
    %cst_29 = arith.constant 0.000000e+00 : f32
    %44 = vector.broadcast %cst_29 : f32 to vector<256x256xf32>
    %45 = arith.maximumf %43, %44 : vector<256x256xf32>
    %46 = vector.shape_cast %12 : vector<256x64xf32> to vector<4x64x64xf32>
    %cst_30 = arith.constant dense<0xFF800000> : vector<64x64xf32>
    %47 = vector.multi_reduction <maximumf>, %46, %cst_30 [0] : vector<4x64x64xf32> to vector<64x64xf32>
    %48 = vector.shape_cast %23 : vector<256x64xf32> to vector<4x64x64xf32>
    %cst_31 = arith.constant dense<0xFF800000> : vector<64x64xf32>
    %49 = vector.multi_reduction <maximumf>, %48, %cst_31 [0] : vector<4x64x64xf32> to vector<64x64xf32>
    %50 = vector.shape_cast %34 : vector<256x128xf32> to vector<4x64x128xf32>
    %cst_32 = arith.constant dense<0xFF800000> : vector<64x128xf32>
    %51 = vector.multi_reduction <maximumf>, %50, %cst_32 [0] : vector<4x64x128xf32> to vector<64x128xf32>
    %52 = vector.shape_cast %45 : vector<256x256xf32> to vector<4x64x256xf32>
    %cst_33 = arith.constant dense<0xFF800000> : vector<64x256xf32>
    %53 = vector.multi_reduction <maximumf>, %52, %cst_33 [0] : vector<4x64x256xf32> to vector<64x256xf32>
    %c0_i32 = arith.constant 0 : i32
    %54 = arith.cmpi eq, %arg2, %c0_i32 : i32
    %55 = arith.extui %54 : i1 to i32
    %c0_i32_34 = arith.constant 0 : i32
    %56 = arith.cmpi ne, %55, %c0_i32_34 : i32
    scf.if %56 {
      %c0_38 = arith.constant 0 : index
      %c0_39 = arith.constant 0 : index
      %63 = vector.load %arg11[%c0_38, %c0_39] : memref<64x512xf32, #tpu.memory_space<vmem>>, vector<64x64xf32>
      tpu.vector_store %arg11[%c0_38, %c0_39], %47 {strides = array<i32>} : memref<64x512xf32, #tpu.memory_space<vmem>>, vector<64x64xf32>,
      %c0_40 = arith.constant 0 : index
      %c64_41 = arith.constant 64 : index
      %64 = vector.load %arg11[%c0_40, %c64_41] : memref<64x512xf32, #tpu.memory_space<vmem>>, vector<64x64xf32>
      tpu.vector_store %arg11[%c0_40, %c64_41], %49 {strides = array<i32>} : memref<64x512xf32, #tpu.memory_space<vmem>>, vector<64x64xf32>,
      %c0_42 = arith.constant 0 : index
      %c128_43 = arith.constant 128 : index
      %65 = vector.load %arg11[%c0_42, %c128_43] : memref<64x512xf32, #tpu.memory_space<vmem>>, vector<64x128xf32>
      tpu.vector_store %arg11[%c0_42, %c128_43], %51 {strides = array<i32>} : memref<64x512xf32, #tpu.memory_space<vmem>>, vector<64x128xf32>,
      %c0_44 = arith.constant 0 : index
      %c256_45 = arith.constant 256 : index
      %66 = vector.load %arg11[%c0_44, %c256_45] : memref<64x512xf32, #tpu.memory_space<vmem>>, vector<64x256xf32>
      tpu.vector_store %arg11[%c0_44, %c256_45], %53 {strides = array<i32>} : memref<64x512xf32, #tpu.memory_space<vmem>>, vector<64x256xf32>,
    } else {
    }
    %c0_i32_35 = arith.constant 0 : i32
    %57 = arith.cmpi ne, %arg2, %c0_i32_35 : i32
    %58 = arith.extui %57 : i1 to i32
    %c0_i32_36 = arith.constant 0 : i32
    %59 = arith.cmpi ne, %58, %c0_i32_36 : i32
    scf.if %59 {
      %c0_38 = arith.constant 0 : index
      %c0_39 = arith.constant 0 : index
      %63 = vector.load %arg11[%c0_38, %c0_39] : memref<64x512xf32, #tpu.memory_space<vmem>>, vector<64x64xf32>
      %64 = arith.maximumf %63, %47 : vector<64x64xf32>
      %c0_40 = arith.constant 0 : index
      %c0_41 = arith.constant 0 : index
      %65 = vector.load %arg11[%c0_40, %c0_41] : memref<64x512xf32, #tpu.memory_space<vmem>>, vector<64x64xf32>
      tpu.vector_store %arg11[%c0_40, %c0_41], %64 {strides = array<i32>} : memref<64x512xf32, #tpu.memory_space<vmem>>, vector<64x64xf32>,
      %c0_42 = arith.constant 0 : index
      %c64_43 = arith.constant 64 : index
      %66 = vector.load %arg11[%c0_42, %c64_43] : memref<64x512xf32, #tpu.memory_space<vmem>>, vector<64x64xf32>
      %67 = arith.maximumf %66, %49 : vector<64x64xf32>
      %c0_44 = arith.constant 0 : index
      %c64_45 = arith.constant 64 : index
      %68 = vector.load %arg11[%c0_44, %c64_45] : memref<64x512xf32, #tpu.memory_space<vmem>>, vector<64x64xf32>
      tpu.vector_store %arg11[%c0_44, %c64_45], %67 {strides = array<i32>} : memref<64x512xf32, #tpu.memory_space<vmem>>, vector<64x64xf32>,
      %c0_46 = arith.constant 0 : index
      %c128_47 = arith.constant 128 : index
      %69 = vector.load %arg11[%c0_46, %c128_47] : memref<64x512xf32, #tpu.memory_space<vmem>>, vector<64x128xf32>
      %70 = arith.maximumf %69, %51 : vector<64x128xf32>
      %c0_48 = arith.constant 0 : index
      %c128_49 = arith.constant 128 : index
      %71 = vector.load %arg11[%c0_48, %c128_49] : memref<64x512xf32, #tpu.memory_space<vmem>>, vector<64x128xf32>
      tpu.vector_store %arg11[%c0_48, %c128_49], %70 {strides = array<i32>} : memref<64x512xf32, #tpu.memory_space<vmem>>, vector<64x128xf32>,
      %c0_50 = arith.constant 0 : index
      %c256_51 = arith.constant 256 : index
      %72 = vector.load %arg11[%c0_50, %c256_51] : memref<64x512xf32, #tpu.memory_space<vmem>>, vector<64x256xf32>
      %73 = arith.maximumf %72, %53 : vector<64x256xf32>
      %c0_52 = arith.constant 0 : index
      %c256_53 = arith.constant 256 : index
      %74 = vector.load %arg11[%c0_52, %c256_53] : memref<64x512xf32, #tpu.memory_space<vmem>>, vector<64x256xf32>
      tpu.vector_store %arg11[%c0_52, %c256_53], %73 {strides = array<i32>} : memref<64x512xf32, #tpu.memory_space<vmem>>, vector<64x256xf32>,
    } else {
    }
    %c4_i32 = arith.constant 4 : i32
    %60 = arith.cmpi eq, %arg2, %c4_i32 : i32
    %61 = arith.extui %60 : i1 to i32
    %c0_i32_37 = arith.constant 0 : i32
    %62 = arith.cmpi ne, %61, %c0_i32_37 : i32
    scf.if %62 {
      %c0_38 = arith.constant 0 : index
      %c0_39 = arith.constant 0 : index
      %63 = vector.load %arg11[%c0_38, %c0_39] : memref<64x512xf32, #tpu.memory_space<vmem>>, vector<64x512xf32>
      %64 = arith.truncf %63 : vector<64x512xf32> to vector<64x512xbf16>
      %c0_40 = arith.constant 0 : index
      %c0_41 = arith.constant 0 : index
      %65 = vector.load %arg8[%c0_40, %c0_41] : memref<512x256xbf16, #tpu.memory_space<vmem>>, vector<512x256xbf16>
      %cst_42 = arith.constant dense<0.000000e+00> : vector<64x256xf32>
      %66 = tpu.matmul %64, %65, %cst_42 {dimension_numbers = #tpu.dot_dimension_numbers<[1], [0], [0], [1], [0, 0, 1, 1], [], []>} : vector<64x512xbf16>, vector<512x256xbf16>, vector<64x256xf32> -> vector<64x256xf32>
      %c0_43 = arith.constant 0 : index
      %c512 = arith.constant 512 : index
      %67 = vector.load %arg9[%c0_43, %c512] : memref<2x768xf32, #tpu.memory_space<vmem>>, vector<1x256xf32>
      %68 = vector.broadcast %67 : vector<1x256xf32> to vector<64x256xf32>
      %69 = arith.mulf %66, %68 : vector<64x256xf32>
      %c1_44 = arith.constant 1 : index
      %c512_45 = arith.constant 512 : index
      %70 = vector.load %arg9[%c1_44, %c512_45] : memref<2x768xf32, #tpu.memory_space<vmem>>, vector<1x256xf32>
      %71 = vector.broadcast %70 : vector<1x256xf32> to vector<64x256xf32>
      %72 = arith.addf %69, %71 : vector<64x256xf32>
      %cst_46 = arith.constant 0.000000e+00 : f32
      %73 = vector.broadcast %cst_46 : f32 to vector<64x256xf32>
      %74 = arith.maximumf %72, %73 : vector<64x256xf32>
      %c0_47 = arith.constant 0 : index
      %c0_48 = arith.constant 0 : index
      %c0_49 = arith.constant 0 : index
      %75 = vector.load %arg10[%c0_47, %c0_48, %c0_49] : memref<1x64x256xf32, #tpu.memory_space<vmem>>, vector<1x64x256xf32>
      %76 = vector.shape_cast %75 : vector<1x64x256xf32> to vector<64x256xf32>
      %77 = vector.shape_cast %74 : vector<64x256xf32> to vector<1x64x256xf32>
      tpu.vector_store %arg10[%c0_47, %c0_48, %c0_49], %77 {strides = array<i32>} : memref<1x64x256xf32, #tpu.memory_space<vmem>>, vector<1x64x256xf32>,
    } else {
    }
    return
  }
  func.func @transform_0(%arg0: i32, %arg1: i32, %arg2: i32) -> (i32, i32, i32, i32) {
    %c0_i32 = arith.constant 0 : i32
    %c0_i32_0 = arith.constant 0 : i32
    return %arg0, %arg2, %arg1, %c0_i32 : i32, i32, i32, i32
  }
  func.func @transform_1(%arg0: i32, %arg1: i32, %arg2: i32) -> (i32, i32) {
    %c0_i32 = arith.constant 0 : i32
    %c0_i32_0 = arith.constant 0 : i32
    %c0_i32_1 = arith.constant 0 : i32
    return %c0_i32, %c0_i32_0 : i32, i32
  }
  func.func @transform_2(%arg0: i32, %arg1: i32, %arg2: i32) -> (i32, i32) {
    %c0_i32 = arith.constant 0 : i32
    %c0_i32_0 = arith.constant 0 : i32
    %c0_i32_1 = arith.constant 0 : i32
    return %c0_i32, %c0_i32_0 : i32, i32
  }
  func.func @transform_3(%arg0: i32, %arg1: i32, %arg2: i32) -> (i32, i32) {
    %c0_i32 = arith.constant 0 : i32
    %c0_i32_0 = arith.constant 0 : i32
    %c0_i32_1 = arith.constant 0 : i32
    return %c0_i32, %c0_i32_0 : i32, i32
  }
  func.func @transform_4(%arg0: i32, %arg1: i32, %arg2: i32) -> (i32, i32) {
    %c0_i32 = arith.constant 0 : i32
    %c0_i32_0 = arith.constant 0 : i32
    %c0_i32_1 = arith.constant 0 : i32
    return %c0_i32, %c0_i32_0 : i32, i32
  }
  func.func @transform_5(%arg0: i32, %arg1: i32, %arg2: i32) -> (i32, i32) {
    %c0_i32 = arith.constant 0 : i32
    %c0_i32_0 = arith.constant 0 : i32
    %c0_i32_1 = arith.constant 0 : i32
    return %c0_i32, %c0_i32_0 : i32, i32
  }
  func.func @transform_6(%arg0: i32, %arg1: i32, %arg2: i32) -> (i32, i32) {
    %c0_i32 = arith.constant 0 : i32
    %c0_i32_0 = arith.constant 0 : i32
    %c0_i32_1 = arith.constant 0 : i32
    return %c0_i32, %c0_i32_0 : i32, i32
  }
  func.func @transform_7(%arg0: i32, %arg1: i32, %arg2: i32) -> (i32, i32, i32) {
    %c0_i32 = arith.constant 0 : i32
    %c0_i32_0 = arith.constant 0 : i32
    return %arg0, %arg1, %c0_i32 : i32, i32, i32
  }
}

</mosaic_0001>

<bundles_post_ra>
// kernel: neg.5
= control target key start
LH: loop header
LB: loop body
LE: loop exit
PB: predicated region body
PF: predicated region fallthrough
CT: control target
= control target key end

     0   :  { %s24_s0 = inlined_call_operand.vmem [shape: f32[2,64], index: 0, kind: input, shape index: {}]   ;;  %s25_s1 = inlined_call_operand.vmem [shape: f32[2,64], index: 1, kind: output, shape index: {}]  }
   0x1   :  { %v2_v0 = vld [vmem:[%s24_s0] sm:$0x3] }
   0x2   :  { %v5_v1 = vxor.u32 2147483648, %v2_v0 }
   0x4   :  { %7 = vst [vmem:[%s25_s1] sm:$0x3] %v5_v1 }

// kernel: _lambda_.1
= control target key start
LH: loop header
LB: loop body
LE: loop exit
PB: predicated region body
PF: predicated region fallthrough
CT: control target
= control target key end

     0   :  { %s5464_s0 = inlined_call_operand.vmem [shape: f32[2,20,64,8], index: 0, kind: input, shape index: {}]   ;;  %s5465_s1 = inlined_call_operand.vmem [shape: f32[8,64], index: 1, kind: input, shape index: {}]   ;;  %s5466_s2 = inlined_call_operand.vmem [shape: bf16[64,64], index: 2, kind: input, shape index: {}]   ;;  %s5467_s3 = inlined_call_operand.vmem [shape: bf16[64,128], index: 3, kind: input, shape index: {}]   ;;  %s5468_s4 = inlined_call_operand.vmem [shape: bf16[128,256], index: 4, kind: input, shape index: {}]   ;;  %s5469_s5 = inlined_call_operand.vmem [shape: bf16[512,256], index: 5, kind: input, shape index: {}]   ;;  %s5470_s6 = inlined_call_operand.vmem [shape: f32[2,768], index: 6, kind: input, shape index: {}]   ;;  %s5471_s7 = inlined_call_operand.hbm [shape: f32[2,64,256], index: 7, kind: output, shape index: {}]  }
   0x1   :  { %5479 = sst [smem:[#allocation24_spill]] %s5465_s1 }
   0x2   :  { %12 = vsyncpa [#allocation4], 0 }
   0x3   :  { %14 = vsyncpa [#allocation4 + $0x1], 0  ;;  %s3978_s24 = smov 0   ;;  %s3980_s25 = smov 0  }
   0x4   :  { %s3982_s26 = smov 0   ;;  %s3984_s27 = smov 0  }
   0x5   :  { %s3986_s28 = smov 0   ;;  %s3988_s29 = smov 0  }
   0x6   :  { %s3990_s30 = smov 0   ;;  %s3992_s8 = smov 0  }
   0x7 LB: > { %5480 = sst [smem:[#allocation6_spill]] %s3925_s30  ;;  %s3242_s9 = sadd.s32 4294967295, %s3929_s8   ;;  %s3929_s8 = sphi %s3992_s8, %s20_s8   ;;  %s3925_s30 = sphi %s3990_s30, %s5532_s30   ;;  %s3921_s29 = sphi %s3988_s29, %s5537_s29   ;;  %s3917_s28 = sphi %s3986_s28, %s5530_s28   ;;  %s3913_s27 = sphi %s3984_s27, %s5536_s27   ;;  %s3909_s26 = sphi %s3982_s26, %s5535_s26   ;;  %s3905_s25 = sphi %s3980_s25, %s5534_s25   ;;  %s3901_s24 = sphi %s3978_s24, %s5533_s24  }
   0x8   : > { %s3243_s10 = sadd.s32 4294967294, %s3929_s8   ;;  %s32_s11 = sadd.s32 1, %s3921_s29 }
   0x9   : > { %p33_p0 = scmp.ge.s32.totalorder %s32_s11, 5  ;;  %s39_s12 = sadd.s32 1, %s3925_s30 }
   0xa   : > { %p214_p1 = scmp.ne.s32.totalorder %s3909_s26, %s3905_s25  ;;  %p215_p2 = scmp.eq.s32.totalorder %s3242_s9, 9 }
   0xb   : > { %s5539_s11 = smov (%p33_p0, %s32_s11), 0  ;;  %s5541_s12 = smov (!%p33_p0, %s39_s12), %s3925_s30 }
   0xc   : > { %5481 = sst [smem:[#allocation7_spill]] %s5539_s11  ;;  %p4027_p3 = por %p215_p2, %p214_p1 }
   0xd   : > { %p220_p4 = scmp.ne.s32.totalorder %s3905_s25, %s3901_s24  ;;  %p41_p5 = scmp.ge.s32.totalorder %s5541_s12, 2 }
   0xe   : > { %p221_p6 = scmp.eq.s32.totalorder %s3243_s10, 9  ;;  %p3246_p7 = scmp.ge.s32.totalorder %s3929_s8, 1 }
   0xf   : > { %p276_p8 = scmp.lt.s32.totalorder %s3929_s8, 11  ;;  %s5543_s12 = smov (%p41_p5, %s5541_s12), 0 }
  0x10   : > { %5483 = sst [smem:[#allocation8_spill]] %s5543_s12  ;;  %p4037_p9 = por %p221_p6, %p220_p4 }
  0x11   : > { %p277_p10 = pnand %p3246_p7, %p276_p8  ;;  %s199_s15 = ssub.s32 %s3925_s30, %s5543_s12 }
  0x12   : > { %s204_s16 = sadd.s32 1, %s3909_s26  ;;  %p202_p11 = scmp.eq.s32.totalorder %s199_s15, 0 }
  0x13   : > { %280 = sbr.rel (%p277_p10) target bundleno = 1591 (0x637), region = 48 }
  0x14   : > { %s4045_s17 = scalar_select %p202_p11, %s3909_s26, %s204_s16  }
  0x18   : > { %s5472_s18 = sand.u32 1, %s3905_s25   ;;  %s5485_s1 = sld [smem:[#allocation24_spill]]  ;;  %v3709_v1 = vld [vmem:[%s5466_s2 + $0x18] sm:$0xff]   ;;  %v3710_v2 = vld [vmem:[%s5466_s2 + $0x10] sm:$0xff]   ;;  %v3711_v3 = vld [vmem:[%s5466_s2 + $0x8] sm:$0xff]   ;;  %vm368_vm0 = vcmask 64512  }
  0x19   : > { %s3248_s21 = sshll.u32 %s3913_s27, 2  ;;  %s4054_s22 = sshll.u32 %s5472_s18, 7  ;;  %3623 = vmatprep.subr.bf16.mxu1 %v3709_v1  ;;  %v3712_v7 = vld [vmem:[%s5466_s2] sm:$0xff]   ;;  %v3713_v38 = vld [vmem:[%s5467_s3 + $0x18] sm:$0xff]   ;;  %vm844_vm1 = vcmask 523264  }
  0x1a   : > { %p319_p12 = scmp.lt.s32.totalorder %s3917_s28, 1  ;;  %p321_p13 = scmp.lt.s32.totalorder %s3248_s21, 19  ;;  %3627 = vmatpush3.bf16.msra.mxu1 %v3709_v1  ;;  %v4142_v37 = vld [vmem:[%s5470_s6] ss:$0 sm:$0xff]  ;;  %v4151_v39 = vld [vmem:[%s5470_s6 + $0x1] ss:$0 sm:$0xff] }
  0x1b   : > { %3624 = vmatprep.subr.bf16.mxu1 %v3710_v2  ;;  %s3931_s15 = smov 64   ;;  %s5019_s12 = scalar_lea.vmem [#allocation3], %s4054_s22 }
  0x1c   : > { %s320_s10 = scalar_select %p319_p12, %s3917_s28, 1  ;;  %1055 = vrot.lane.b32.xlu0 %v4142_v37, %s3931_s15 }
  0x1d   : > { %s5545_s21 = smov (!%p321_p13, %s3248_s21), 19  ;;  %p3345_p0 = scmp.ne.s32.totalorder %s3913_s27, 0 }
  0x1e   : > { %v367_v0 = vld [vmem:[%s5485_s1] sm:$0xff]  ;;  %s3631_s19 = smul.u32 160, %s320_s10  ;;  %s3249_s1 = sshll.u32 %s5545_s21, 3  ;;  %3628 = vmatpush3.bf16.msra.mxu1 %v3710_v2 }
  0x1f   : > { %3493 = vmatprep.subr.mxu0 %v367_v0  ;;  %3625 = vmatprep.subr.bf16.mxu1 %v3711_v3  ;;  %s3933_s22 = smov (!%p3345_p0), 64  }
  0x20   : > { %3494 = vmatpush3.msra.mxu0 %v367_v0  ;;  %s328_s23 = sadd.s32 %s3631_s19, %s3249_s1  ;;  %1091 = vrot.lane.b32.xlu0 %v4151_v39, %s3931_s15 }
  0x21   : > { %3543 = vmatprep.subr.bf16.mxu0 %v3709_v1  ;;  %s3250_s9 = sshll.u32 %s328_s23, 3 }
  0x22   : > { %s4070_s30 = scalar_lea.vmem %s5464_s0, %s3250_s9  ;;  %3629 = vmatpush3.bf16.msra.mxu1 %v3711_v3 }
  0x23   : > { %v335_v4 = vld [vmem:[%s4070_s30] sm:$0xff]  ;;  %v336_v5 = vld [vmem:[%s4070_s30 + $0x8] sm:$0xff]  ;;  %v337_v6 = vld [vmem:[%s4070_s30 + $0x10] sm:$0xff]  ;;  %3626 = vmatprep.subr.bf16.mxu1 %v3712_v7 }
  0x24   : > { %3495 = vmatprep.mubr.msk.f32.mxu0 %vm368_vm0, %v335_v4  ;;  %v338_v8 = vld [vmem:[%s4070_s30 + $0x18] sm:$0xff]  ;;  %v339_v9 = vld [vmem:[%s4070_s30 + $0x20] sm:$0xff]  ;;  %v340_v10 = vld [vmem:[%s4070_s30 + $0x28] sm:$0xff] }
  0x25   : > { %3496 = vmatmul.mubr.msk.f32.vlgmr.msra.gmra.mxu0 %vm368_vm0, %v336_v5  ;;  %v341_v11 = vld [vmem:[%s4070_s30 + $0x30] sm:$0xff]  ;;  %v342_v12 = vld [vmem:[%s4070_s30 + $0x38] sm:$0xff]  ;;  %v343_v13 = vld [vmem:[%s4070_s30 + $0x40] sm:$0xff] }
  0x26   : > { %3498 = vmatprep.mubr.msk.f32.mxu0 %vm368_vm0, %v337_v6  ;;  %3544 = vmatpush3.bf16.msra.mxu0 %v3709_v1  ;;  %v344_v14 = vld [vmem:[%s4070_s30 + $0x48] sm:$0xff]  ;;  %v345_v15 = vld [vmem:[%s4070_s30 + $0x50] sm:$0xff]  ;;  %v346_v16 = vld [vmem:[%s4070_s30 + $0x58] sm:$0xff] }
  0x27   : > { %3545 = vmatprep.subr.bf16.mxu0 %v3710_v2  ;;  %3630 = vmatpush3.bf16.msra.mxu1 %v3712_v7  ;;  %v347_v17 = vld [vmem:[%s4070_s30 + $0x60] sm:$0xff]  ;;  %v348_v18 = vld [vmem:[%s4070_s30 + $0x68] sm:$0xff]  ;;  %v349_v19 = vld [vmem:[%s4070_s30 + $0x70] sm:$0xff] }
  0x28   : > { %v350_v20 = vld [vmem:[%s4070_s30 + $0x78] sm:$0xff]  ;;  %v351_v21 = vld [vmem:[%s4070_s30 + $0x80] sm:$0xff]  ;;  %v352_v22 = vld [vmem:[%s4070_s30 + $0x88] sm:$0xff] }
  0x29   : > { %3499 = vmatmul.mubr.msk.f32.gmra.mxu0 %vm368_vm0, %v338_v8  ;;  %v353_v23 = vld [vmem:[%s4070_s30 + $0x90] sm:$0xff]  ;;  %v354_v24 = vld [vmem:[%s4070_s30 + $0x98] sm:$0xff]  ;;  %v355_v25 = vld [vmem:[%s4070_s30 + $0xa0] sm:$0xff] }
  0x2a   : > { %3501 = vmatprep.mubr.msk.f32.mxu0 %vm368_vm0, %v339_v9  ;;  %3546 = vmatpush3.bf16.msra.mxu0 %v3710_v2  ;;  %v356_v26 = vld [vmem:[%s4070_s30 + $0xa8] sm:$0xff]  ;;  %v357_v27 = vld [vmem:[%s4070_s30 + $0xb0] sm:$0xff]  ;;  %v358_v28 = vld [vmem:[%s4070_s30 + $0xb8] sm:$0xff] }
  0x2b   : > { %3547 = vmatprep.subr.bf16.mxu0 %v3711_v3  ;;  %v359_v29 = vld [vmem:[%s4070_s30 + $0xc0] sm:$0xff]  ;;  %v360_v30 = vld [vmem:[%s4070_s30 + $0xc8] sm:$0xff]  ;;  %v361_v31 = vld [vmem:[%s4070_s30 + $0xd0] sm:$0xff] }
  0x2c   : > { %v362_v32 = vld [vmem:[%s4070_s30 + $0xd8] sm:$0xff]  ;;  %v363_v33 = vld [vmem:[%s4070_s30 + $0xe0] sm:$0xff]  ;;  %v364_v34 = vld [vmem:[%s4070_s30 + $0xe8] sm:$0xff] }
  0x2d   : > { %3502 = vmatmul.mubr.msk.f32.gmra.mxu0 %vm368_vm0, %v340_v10  ;;  %v365_v35 = vld [vmem:[%s4070_s30 + $0xf0] sm:$0xff]  ;;  %v366_v36 = vld [vmem:[%s4070_s30 + $0xf8] sm:$0xff] }
  0x2e   : > { %3504 = vmatprep.mubr.msk.f32.mxu0 %vm368_vm0, %v341_v11  ;;  %3548 = vmatpush3.bf16.msra.mxu0 %v3711_v3  ;;  %v3714_v2 = vld [vmem:[%s5467_s3 + $0x10] sm:$0xff]  }
  0x2f   : > { %3549 = vmatprep.subr.bf16.mxu0 %v3712_v7 }
  0x31   : > { %3505 = vmatmul.mubr.msk.f32.gmra.mxu0 %vm368_vm0, %v342_v12  ;;  %v3715_v12 = vld [vmem:[%s5467_s3 + $0x8] sm:$0xff]  }
  0x32   : > { %3507 = vmatprep.mubr.msk.f32.mxu0 %vm368_vm0, %v343_v13  ;;  %3550 = vmatpush3.bf16.msra.mxu0 %v3712_v7 }
  0x33   : > { %3583 = vmatprep.subr.bf16.mxu0 %v3713_v38 }
  0x35   : > { %3508 = vmatmul.mubr.msk.f32.gmra.mxu0 %vm368_vm0, %v344_v14 }
  0x36   : > { %3510 = vmatprep.mubr.msk.f32.mxu0 %vm368_vm0, %v345_v15 }
  0x39   : > { %3511 = vmatmul.mubr.msk.f32.gmra.mxu0 %vm368_vm0, %v346_v16 }
  0x3a   : > { %3513 = vmatprep.mubr.msk.f32.mxu0 %vm368_vm0, %v347_v17 }
  0x3d   : > { %3514 = vmatmul.mubr.msk.f32.gmra.mxu0 %vm368_vm0, %v348_v18 }
  0x3e   : > { %3516 = vmatprep.mubr.msk.f32.mxu0 %vm368_vm0, %v349_v19 }
  0x41   : > { %3517 = vmatmul.mubr.msk.f32.gmra.mxu0 %vm368_vm0, %v350_v20 }
  0x42   : > { %3519 = vmatprep.mubr.msk.f32.mxu0 %vm368_vm0, %v351_v21 }
  0x45   : > { %3520 = vmatmul.mubr.msk.f32.gmra.mxu0 %vm368_vm0, %v352_v22 }
  0x46   : > { %3522 = vmatprep.mubr.msk.f32.mxu0 %vm368_vm0, %v353_v23 }
  0x49   : > { %3523 = vmatmul.mubr.msk.f32.gmra.mxu0 %vm368_vm0, %v354_v24 }
  0x4a   : > { %3525 = vmatprep.mubr.msk.f32.mxu0 %vm368_vm0, %v355_v25 }
  0x4d   : > { %3526 = vmatmul.mubr.msk.f32.gmra.mxu0 %vm368_vm0, %v356_v26 }
  0x4e   : > { %3528 = vmatprep.mubr.msk.f32.mxu0 %vm368_vm0, %v357_v27 }
  0x51   : > { %3529 = vmatmul.mubr.msk.f32.gmra.mxu0 %vm368_vm0, %v358_v28 }
  0x52   : > { %3531 = vmatprep.mubr.msk.f32.mxu0 %vm368_vm0, %v359_v29 }
  0x55   : > { %3532 = vmatmul.mubr.msk.f32.gmra.mxu0 %vm368_vm0, %v360_v30 }
  0x56   : > { %3534 = vmatprep.mubr.msk.f32.mxu0 %vm368_vm0, %v361_v31 }
  0x59   : > { %3535 = vmatmul.mubr.msk.f32.gmra.mxu0 %vm368_vm0, %v362_v32 }
  0x5a   : > { %3537 = vmatprep.mubr.msk.f32.mxu0 %vm368_vm0, %v363_v33 }
  0x5d   : > { %3538 = vmatmul.mubr.msk.f32.gmra.mxu0 %vm368_vm0, %v364_v34 }
  0x5e   : > { %3540 = vmatprep.mubr.msk.f32.mxu0 %vm368_vm0, %v365_v35 }
  0x61   : > { %3541 = vmatmul.mubr.msk.f32.gmra.mxu0 %vm368_vm0, %v366_v36 }
  0xe5   : > { %v3497_v40 = vpop.f32.mrf.mxu0 }
  0xe6   : > { %v696_v41 = vmul.f32 %v3497_v40, %v4142_v37 }
  0xe7   : > { %v531_v42 = vpop.f32.mrf.mxu0 }
  0xe8   : > { %v733_v43 = vadd.f32 %v4151_v39, %v696_v41  ;;  %v695_v44 = vmul.f32 %v4142_v37, %v531_v42 }
  0xe9   : > { %v3500_v45 = vpop.f32.mrf.mxu0 }
  0xea   : > { %v732_v46 = vadd.f32 %v4151_v39, %v695_v44  ;;  %v698_v47 = vmul.f32 %v3500_v45, %v4142_v37  ;;  %v765_v49 = vmax.f32 %v733_v43, 0.0 }
  0xeb   : > { %v541_v48 = vpop.f32.mrf.mxu0 }
  0xec   : > { %v764_v50 = vmax.f32 %v732_v46, 0.0  ;;  %v4160_v51 = vadd.f32 %v4151_v39, %v698_v47  ;;  %v697_v52 = vmul.f32 %v4142_v37, %v541_v48  ;;  %v4214_v27 = vsel %vm844_vm1, %v765_v49, -inf }
  0xed   : > { %v3503_v53 = vpop.f32.mrf.mxu0 }
  0xee   : > { %v796_v54 = vpack.c.bf16 %v765_v49, %v764_v50  ;;  %v4164_v55 = vadd.f32 %v4151_v39, %v697_v52  ;;  %v700_v56 = vmul.f32 %v3503_v53, %v4142_v37  ;;  %v767_v58 = vmax.f32 %v4160_v51, 0.0 }
  0xef   : > { %v551_v57 = vpop.f32.mrf.mxu0  ;;  %v4217_v28 = vsel %vm844_vm1, %v764_v50, -inf }
  0xf0   : > { %v766_v59 = vmax.f32 %v4164_v55, 0.0  ;;  %v699_v60 = vmul.f32 %v4142_v37, %v551_v57  ;;  %3551 = vmatprep.mubr.msk.bf16.mxu0 %vm844_vm1, %v796_v54  ;;  %v4172_v61 = vadd.f32 %v4151_v39, %v700_v56  ;;  %v4232_v41 = vsel %vm844_vm1, %v767_v58, -inf }
  0xf1   : > { %v3506_v62 = vpop.f32.mrf.mxu0 }
  0xf2   : > { %v797_v63 = vpack.c.bf16 %v767_v58, %v766_v59  ;;  %v4177_v0 = vadd.f32 %v4151_v39, %v699_v60  ;;  %v702_v1 = vmul.f32 %v3506_v62, %v4142_v37  ;;  %v769_v3 = vmax.f32 %v4172_v61, 0.0 }
  0xf3   : > { %v561_v4 = vpop.f32.mrf.mxu0  ;;  %v4247_v50 = vsel %vm844_vm1, %v766_v59, -inf }
  0xf4   : > { %v768_v5 = vmax.f32 %v4177_v0, 0.0  ;;  %v4186_v6 = vadd.f32 %v4151_v39, %v702_v1  ;;  %v701_v7 = vmul.f32 %v4142_v37, %v561_v4  ;;  %3552 = vmatmul.mubr.msk.bf16.vlgmr.msra.gmra.mxu0 %vm844_vm1, %v797_v63  ;;  %v4256_v62 = vsel %vm844_vm1, %v769_v3, -inf }
  0xf5   : > { %v3509_v8 = vpop.f32.mrf.mxu0  ;;  %3584 = vmatpush3.bf16.msra.mxu0 %v3713_v38 }
  0xf6   : > { %v798_v9 = vpack.c.bf16 %v769_v3, %v768_v5  ;;  %v771_v10 = vmax.f32 %v4186_v6, 0.0  ;;  %v4194_v11 = vadd.f32 %v4151_v39, %v701_v7  ;;  %3585 = vmatprep.subr.bf16.mxu0 %v3714_v2  ;;  %v704_v13 = vmul.f32 %v3509_v8, %v4142_v37 }
  0xf7   : > { %v571_v14 = vpop.f32.mrf.mxu0  ;;  %v4259_v55 = vsel %vm844_vm1, %v768_v5, -inf }
  0xf8   : > { %v770_v15 = vmax.f32 %v4194_v11, 0.0  ;;  %v703_v16 = vmul.f32 %v4142_v37, %v571_v14  ;;  %3555 = vmatprep.mubr.msk.bf16.mxu0 %vm844_vm1, %v798_v9  ;;  %v741_v17 = vadd.f32 %v4151_v39, %v704_v13  ;;  %v2093_v5 = vsel %vm844_vm1, %v771_v10, -inf }
  0xf9   : > { %v3512_v18 = vpop.f32.mrf.mxu0  ;;  %3586 = vmatpush3.bf16.msra.mxu0 %v3714_v2 }
  0xfa   : > { %v799_v19 = vpack.c.bf16 %v771_v10, %v770_v15  ;;  %v740_v20 = vadd.f32 %v4151_v39, %v703_v16  ;;  %v706_v21 = vmul.f32 %v3512_v18, %v4142_v37  ;;  %3587 = vmatprep.subr.bf16.mxu0 %v3715_v12  ;;  %v773_v22 = vmax.f32 %v741_v17, 0.0 }
  0xfb   : > { %v581_v23 = vpop.f32.mrf.mxu0  ;;  %v2086_v6 = vsel %vm844_vm1, %v770_v15, -inf }
  0xfc   : > { %v772_v24 = vmax.f32 %v740_v20, 0.0  ;;  %v743_v25 = vadd.f32 %v4151_v39, %v706_v21  ;;  %v705_v26 = vmul.f32 %v4142_v37, %v581_v23  ;;  %3556 = vmatmul.mubr.msk.bf16.gmra.mxu0 %vm844_vm1, %v799_v19  ;;  %v4220_v29 = vsel %vm844_vm1, %v773_v22, -inf }
  0xfd   : > { %v3515_v30 = vpop.f32.mrf.mxu0  ;;  %3588 = vmatpush3.bf16.msra.mxu0 %v3715_v12  ;;  %v2053_v31 = vmax.f32 %v4214_v27, %v4220_v29 }
  0xfe   : > { %v800_v32 = vpack.c.bf16 %v773_v22, %v772_v24  ;;  %v4225_v33 = vsel %vm844_vm1, %v772_v24, -inf  ;;  %v775_v34 = vmax.f32 %v743_v25, 0.0  ;;  %v742_v36 = vadd.f32 %v4151_v39, %v705_v26 }
  0xff   : > { %v2046_v35 = vmax.f32 %v4217_v28, %v4225_v33  ;;  %v708_v38 = vmul.f32 %v3515_v30, %v4142_v37  ;;  %v591_v40 = vpop.f32.mrf.mxu0 }
 0x100   : > { %v4235_v42 = vsel %vm844_vm1, %v775_v34, -inf  ;;  %v707_v43 = vmul.f32 %v4142_v37, %v591_v40  ;;  %3559 = vmatprep.mubr.msk.bf16.mxu0 %vm844_vm1, %v800_v32  ;;  %v774_v45 = vmax.f32 %v742_v36, 0.0 }
 0x101   : > { %v2067_v44 = vmax.f32 %v4232_v41, %v4235_v42  ;;  %v745_v46 = vadd.f32 %v4151_v39, %v708_v38  ;;  %v3518_v47 = vpop.f32.mrf.mxu0 }
 0x102   : > { %v744_v48 = vadd.f32 %v4151_v39, %v707_v43  ;;  %v710_v49 = vmul.f32 %v3518_v47, %v4142_v37  ;;  %v801_v51 = vpack.c.bf16 %v775_v34, %v774_v45  ;;  %v2059_v52 = vsel %vm844_vm1, %v774_v45, -inf }
 0x103   : > { %v777_v53 = vmax.f32 %v745_v46, 0.0  ;;  %v601_v54 = vpop.f32.mrf.mxu0  ;;  %v2060_v56 = vmax.f32 %v4247_v50, %v2059_v52 }
 0x104   : > { %v776_v57 = vmax.f32 %v744_v48, 0.0  ;;  %v747_v58 = vadd.f32 %v4151_v39, %v710_v49  ;;  %v709_v60 = vmul.f32 %v4142_v37, %v601_v54  ;;  %3560 = vmatmul.mubr.msk.bf16.gmra.mxu0 %vm844_vm1, %v801_v51 }
 0x105   : > { %v2080_v59 = vsel %vm844_vm1, %v777_v53, -inf  ;;  %v3521_v63 = vpop.f32.mrf.mxu0 }
 0x106   : > { %v2081_v0 = vmax.f32 %v4256_v62, %v2080_v59  ;;  %v802_v1 = vpack.c.bf16 %v777_v53, %v776_v57  ;;  %v2073_v2 = vsel %vm844_vm1, %v776_v57, -inf  ;;  %v779_v4 = vmax.f32 %v747_v58, 0.0 }
 0x107   : > { %v2074_v7 = vmax.f32 %v4259_v55, %v2073_v2  ;;  %v746_v61 = vadd.f32 %v4151_v39, %v709_v60  ;;  %v712_v3 = vmul.f32 %v3521_v63, %v4142_v37  ;;  %v611_v8 = vpop.f32.mrf.mxu0 }
 0x108   : > { %v2094_v9 = vsel %vm844_vm1, %v779_v4, -inf  ;;  %v711_v12 = vmul.f32 %v4142_v37, %v611_v8  ;;  %3563 = vmatprep.mubr.msk.bf16.mxu0 %vm844_vm1, %v802_v1 }
 0x109   : > { %v2095_v13 = vmax.f32 %v2093_v5, %v2094_v9  ;;  %v778_v14 = vmax.f32 %v746_v61, 0.0  ;;  %v749_v16 = vadd.f32 %v4151_v39, %v712_v3  ;;  %v3524_v17 = vpop.f32.mrf.mxu0 }
 0x10a   : > { %v748_v18 = vadd.f32 %v4151_v39, %v711_v12  ;;  %v714_v19 = vmul.f32 %v3524_v17, %v4142_v37 }
 0x10b   : > { %v803_v10 = vpack.c.bf16 %v779_v4, %v778_v14  ;;  %v2087_v20 = vsel %vm844_vm1, %v778_v14, -inf  ;;  %v781_v21 = vmax.f32 %v749_v16, 0.0  ;;  %v621_v22 = vpop.f32.mrf.mxu0 }
 0x10c   : > { %v2088_v23 = vmax.f32 %v2086_v6, %v2087_v20  ;;  %v780_v24 = vmax.f32 %v748_v18, 0.0  ;;  %v751_v25 = vadd.f32 %v4151_v39, %v714_v19  ;;  %v713_v26 = vmul.f32 %v4142_v37, %v621_v22 }
 0x10d   : > { %v2054_v27 = vsel %vm844_vm1, %v781_v21, -inf  ;;  %3564 = vmatmul.mubr.msk.bf16.gmra.mxu0 %vm844_vm1, %v803_v10  ;;  %v3527_v28 = vpop.f32.mrf.mxu0 }
 0x10e   : > { %v2055_v29 = vmax.f32 %v2053_v31, %v2054_v27  ;;  %v2047_v11 = vsel %vm844_vm1, %v780_v24, -inf  ;;  %v783_v15 = vmax.f32 %v751_v25, 0.0  ;;  %v750_v30 = vadd.f32 %v4151_v39, %v713_v26 }
 0x10f   : > { %v2048_v32 = vmax.f32 %v2046_v35, %v2047_v11  ;;  %v716_v33 = vmul.f32 %v3527_v28, %v4142_v37  ;;  %v631_v34 = vpop.f32.mrf.mxu0  ;;  %v804_v36 = vpack.c.bf16 %v781_v21, %v780_v24 }
 0x110   : > { %v2068_v38 = vsel %vm844_vm1, %v783_v15, -inf  ;;  %v782_v40 = vmax.f32 %v750_v30, 0.0  ;;  %v715_v41 = vmul.f32 %v4142_v37, %v631_v34 }
 0x111   : > { %v2069_v42 = vmax.f32 %v2067_v44, %v2068_v38  ;;  %v753_v43 = vadd.f32 %v4151_v39, %v716_v33  ;;  %v3530_v45 = vpop.f32.mrf.mxu0  ;;  %3567 = vmatprep.mubr.msk.bf16.mxu1 %vm844_vm1, %v804_v36 }
 0x112   : > { %v805_v31 = vpack.c.bf16 %v783_v15, %v782_v40  ;;  %v2061_v46 = vsel %vm844_vm1, %v782_v40, -inf  ;;  %v752_v35 = vadd.f32 %v4151_v39, %v715_v41  ;;  %v718_v47 = vmul.f32 %v3530_v45, %v4142_v37 }
 0x113   : > { %v2062_v48 = vmax.f32 %v2060_v56, %v2061_v46  ;;  %v785_v49 = vmax.f32 %v753_v43, 0.0  ;;  %v641_v50 = vpop.f32.mrf.mxu0 }
 0x114   : > { %v784_v51 = vmax.f32 %v752_v35, 0.0  ;;  %v755_v52 = vadd.f32 %v4151_v39, %v718_v47  ;;  %v717_v44 = vmul.f32 %v4142_v37, %v641_v50  ;;  %3568 = vmatmul.mubr.msk.bf16.vlgmr.msra.gmra.mxu1 %vm844_vm1, %v805_v31 }
 0x115   : > { %v2082_v53 = vsel %vm844_vm1, %v785_v49, -inf  ;;  %v3533_v54 = vpop.f32.mrf.mxu0 }
 0x116   : > { %v2083_v57 = vmax.f32 %v2081_v0, %v2082_v53  ;;  %v806_v58 = vpack.c.bf16 %v785_v49, %v784_v51  ;;  %v2075_v60 = vsel %vm844_vm1, %v784_v51, -inf  ;;  %v787_v62 = vmax.f32 %v755_v52, 0.0 }
 0x117   : > { %v2076_v55 = vmax.f32 %v2074_v7, %v2075_v60  ;;  %v754_v56 = vadd.f32 %v4151_v39, %v717_v44  ;;  %v720_v59 = vmul.f32 %v3533_v54, %v4142_v37  ;;  %v651_v63 = vpop.f32.mrf.mxu0  ;;  %v3722_v60 = vld [vmem:[%s5468_s4 + $0x64] ss:$8 sps:$4 sm:$0xff]  }
 0x118   : > { %v2096_v1 = vsel %vm844_vm1, %v787_v62, -inf  ;;  %v719_v2 = vmul.f32 %v4142_v37, %v651_v63  ;;  %3571 = vmatprep.mubr.msk.bf16.mxu1 %vm844_vm1, %v806_v58  ;;  %v3719_v58 = vld [vmem:[%s5468_s4 + $0x74] ss:$8 sps:$4 sm:$0xff]   ;;  %v3726_v63 = vld [vmem:[%s5468_s4 + $0x40] ss:$8 sps:$4 sm:$0xff]  }
 0x119   : > { %v2097_v4 = vmax.f32 %v2095_v13, %v2096_v1  ;;  %v786_v61 = vmax.f32 %v754_v56, 0.0  ;;  %v757_v0 = vadd.f32 %v4151_v39, %v720_v59  ;;  %v3536_v3 = vpop.f32.mrf.mxu0  ;;  %1633 = vmatprep.subr.bf16.mxu1 %v3719_v58  ;;  %v3723_v56 = vld [vmem:[%s5468_s4 + $0x50] ss:$8 sps:$4 sm:$0xff]   ;;  %v3728_v59 = vld [vmem:[%s5468_s4 + $0x44] ss:$8 sps:$4 sm:$0xff]  }
 0x11a   : > { %v756_v8 = vadd.f32 %v4151_v39, %v719_v2  ;;  %v722_v7 = vmul.f32 %v3536_v3, %v4142_v37  ;;  %v3731_v1 = vld [vmem:[%s5468_s4 + $0x34] ss:$8 sps:$4 sm:$0xff]   ;;  %v3729_v2 = vld [vmem:[%s5468_s4 + $0x30] ss:$8 sps:$4 sm:$0xff]  }
 0x11b   : > { %v807_v5 = vpack.c.bf16 %v787_v62, %v786_v61  ;;  %v2089_v9 = vsel %vm844_vm1, %v786_v61, -inf  ;;  %v789_v12 = vmax.f32 %v757_v0, 0.0  ;;  %v661_v14 = vpop.f32.mrf.mxu0  ;;  %v3720_v62 = vld [vmem:[%s5468_s4 + $0x60] ss:$8 sps:$4 sm:$0xff]  }
 0x11c   : > { %v2090_v16 = vmax.f32 %v2088_v23, %v2089_v9  ;;  %v788_v17 = vmax.f32 %v756_v8, 0.0  ;;  %v759_v18 = vadd.f32 %v4151_v39, %v722_v7  ;;  %v721_v19 = vmul.f32 %v4142_v37, %v661_v14 }
 0x11d   : > { %v2056_v13 = vsel %vm844_vm1, %v789_v12, -inf  ;;  %3572 = vmatmul.mubr.msk.bf16.gmra.mxu1 %vm844_vm1, %v807_v5  ;;  %v3539_v6 = vpop.f32.mrf.mxu0 }
 0x11e   : > { %v4313_v10 = vmax.f32 %v2055_v29, %v2056_v13  ;;  %v808_v20 = vpack.c.bf16 %v789_v12, %v788_v17  ;;  %v2049_v21 = vsel %vm844_vm1, %v788_v17, -inf  ;;  %v791_v22 = vmax.f32 %v759_v18, 0.0 }
 0x11f   : > { %v4316_v24 = vmax.f32 %v2048_v32, %v2049_v21  ;;  %v758_v23 = vadd.f32 %v4151_v39, %v721_v19  ;;  %v724_v25 = vmul.f32 %v3539_v6, %v4142_v37  ;;  %v671_v26 = vpop.f32.mrf.mxu0 }
 0x120   : > { %v2070_v27 = vsel %vm844_vm1, %v791_v22, -inf  ;;  %v723_v28 = vmul.f32 %v4142_v37, %v671_v26  ;;  %3575 = vmatprep.mubr.msk.bf16.mxu1 %vm844_vm1, %v808_v20 }
 0x121   : > { %v4323_v11 = vmax.f32 %v2069_v42, %v2070_v27  ;;  %v790_v29 = vmax.f32 %v758_v23, 0.0  ;;  %v761_v15 = vadd.f32 %v4151_v39, %v724_v25  ;;  %v3542_v30 = vpop.f32.mrf.mxu0 }
 0x122   : > { %v760_v32 = vadd.f32 %v4151_v39, %v723_v28  ;;  %v726_v33 = vmul.f32 %v3542_v30, %v4142_v37 }
 0x123   : > { %v809_v34 = vpack.c.bf16 %v791_v22, %v790_v29  ;;  %v2063_v36 = vsel %vm844_vm1, %v790_v29, -inf  ;;  %v793_v38 = vmax.f32 %v761_v15, 0.0  ;;  %v681_v40 = vpop.f32.mrf.mxu0 }
 0x124   : > { %v4329_v41 = vmax.f32 %v2062_v48, %v2063_v36  ;;  %v792_v43 = vmax.f32 %v760_v32, 0.0  ;;  %v763_v45 = vadd.f32 %v4151_v39, %v726_v33  ;;  %v725_v42 = vmul.f32 %v4142_v37, %v681_v40 }
 0x125   : > { %v2084_v31 = vsel %vm844_vm1, %v793_v38, -inf  ;;  %3576 = vmatmul.mubr.msk.bf16.gmra.mxu1 %vm844_vm1, %v809_v34 }
 0x126   : > { %v4335_v46 = vmax.f32 %v2083_v57, %v2084_v31  ;;  %v810_v35 = vpack.c.bf16 %v793_v38, %v792_v43  ;;  %v2077_v47 = vsel %vm844_vm1, %v792_v43, -inf  ;;  %v795_v49 = vmax.f32 %v763_v45, 0.0  ;;  %v3716_v57 = vld [vmem:[%s5467_s3] sm:$0xff]  }
 0x127   : > { %v4338_v50 = vmax.f32 %v2076_v55, %v2077_v47  ;;  %v762_v48 = vadd.f32 %v4151_v39, %v725_v42  ;;  %3589 = vmatprep.subr.bf16.mxu0 %v3716_v57  ;;  %v3717_v39 = vld [vmem:[%s5468_s4 + $0x70] ss:$8 sps:$4 sm:$0xff]   ;;  %v3725_v55 = vld [vmem:[%s5468_s4 + $0x54] ss:$8 sps:$4 sm:$0xff]  }
 0x128   : > { %v2098_v51 = vsel %vm844_vm1, %v795_v49, -inf  ;;  %3579 = vmatprep.mubr.msk.bf16.mxu1 %vm844_vm1, %v810_v35  ;;  %3590 = vmatpush3.bf16.msra.mxu0 %v3716_v57 }
 0x129   : > { %v4343_v52 = vmax.f32 %v2097_v4, %v2098_v51  ;;  %v794_v37 = vmax.f32 %v762_v48, 0.0  ;;  %1634 = vmatpush1.bf16.msra.mxu1 %v3717_v39  ;;  %v4382_v4 = vpop.permute.xlu0 %1055 }
 0x12a   : > { %1635 = vmatprep.subr.bf16.mxu1 %v3722_v60 }
 0x12b   : > { %v811_v44 = vpack.c.bf16 %v795_v49, %v794_v37  ;;  %v2091_v53 = vsel %vm844_vm1, %v794_v37, -inf }
 0x12c   : > { %v4346_v54 = vmax.f32 %v2090_v16, %v2091_v53 }
 0x12d   : > { %3580 = vmatmul.mubr.msk.bf16.gmra.mxu1 %vm844_vm1, %v811_v44  ;;  %v4386_v5 = vpop.permute.xlu0 %1091 }
 0x12e   : > { %1636 = vmatpush1.bf16.msra.mxu1 %v3720_v62 }
 0x12f   : > { %1637 = vmatprep.subr.bf16.mxu1 %v3725_v55 }
 0x132   : > { %1638 = vmatpush1.bf16.msra.mxu1 %v3723_v56 }
 0x133   : > { %1639 = vmatprep.subr.bf16.mxu1 %v3728_v59 }
 0x136   : > { %1640 = vmatpush1.bf16.msra.mxu1 %v3726_v63 }
 0x137   : > { %1641 = vmatprep.subr.bf16.mxu1 %v3731_v1 }
 0x13a   : > { %1642 = vmatpush1.bf16.msra.mxu1 %v3729_v2 }
 0x1b4   : > { %v3553_v61 = vpop.f32.mrf.mxu0 }
 0x1b5   : > { %v1060_v8 = vmul.f32 %v3553_v61, %v4382_v4 }
 0x1b6   : > { %v927_v0 = vpop.f32.mrf.mxu0 }
 0x1b7   : > { %v1058_v3 = vmul.f32 %v4382_v4, %v927_v0  ;;  %v1096_v18 = vadd.f32 %v4386_v5, %v1060_v8 }
 0x1b8   : > { %v3554_v7 = vpop.f32.mrf.mxu0 }
 0x1b9   : > { %v1061_v9 = vmul.f32 %v3554_v7, %v4382_v4  ;;  %v1094_v14 = vadd.f32 %v4386_v5, %v1058_v3  ;;  %v1128_v23 = vmax.f32 %v1096_v18, 0.0 }
 0x1ba   : > { %v930_v12 = vpop.f32.mrf.mxu0 }
 0x1bb   : > { %v1097_v16 = vadd.f32 %v4386_v5, %v1061_v9  ;;  %v1059_v17 = vmul.f32 %v4382_v4, %v930_v12  ;;  %v1126_v21 = vmax.f32 %v1094_v14, 0.0  ;;  %v4423_v58 = vsel %vm844_vm1, %v1128_v23, -inf }
 0x1bc   : > { %v3557_v19 = vpop.f32.mrf.mxu0 }
 0x1bd   : > { %v1095_v13 = vadd.f32 %v4386_v5, %v1059_v17  ;;  %v1129_v6 = vmax.f32 %v1097_v16, 0.0  ;;  %v1064_v25 = vmul.f32 %v3557_v19, %v4382_v4  ;;  %v4433_v63 = vsel %vm844_vm1, %v1126_v21, -inf }
 0x1be   : > { %v943_v20 = vpop.f32.mrf.mxu0 }
 0x1bf   : > { %v1127_v22 = vmax.f32 %v1095_v13, 0.0  ;;  %v1062_v26 = vmul.f32 %v4382_v4, %v943_v20  ;;  %v1159_v15 = vpack.c.bf16 %v1129_v6, %v1128_v23  ;;  %v1100_v36 = vadd.f32 %v4386_v5, %v1064_v25 }
 0x1c0   : > { %v3558_v27 = vpop.f32.mrf.mxu0  ;;  %v4445_v12 = vsel %vm844_vm1, %v1129_v6, -inf }
 0x1c1   : > { %v1158_v28 = vpack.c.bf16 %v1127_v22, %v1126_v21  ;;  %v1065_v29 = vmul.f32 %v3558_v27, %v4382_v4  ;;  %v4398_v32 = vadd.f32 %v4386_v5, %v1062_v26  ;;  %v1132_v47 = vmax.f32 %v1100_v36, 0.0 }
 0x1c2   : > { %v946_v30 = vpop.f32.mrf.mxu0  ;;  %v4452_v18 = vsel %vm844_vm1, %v1127_v22, -inf }
 0x1c3   : > { %v4401_v33 = vadd.f32 %v4386_v5, %v1065_v29  ;;  %v1063_v34 = vmul.f32 %v4382_v4, %v946_v30  ;;  %3591 = vmatprep.mubr.msk.bf16.mxu0 %vm844_vm1, %v1158_v28  ;;  %v1130_v42 = vmax.f32 %v4398_v32, 0.0  ;;  %v4465_v29 = vsel %vm844_vm1, %v1132_v47, -inf }
 0x1c4   : > { %3592 = vmatmul.mubr.msk.bf16.vlgmr.msra.gmra.mxu0 %vm844_vm1, %v1159_v15  ;;  %v3561_v40 = vpop.f32.mrf.mxu0 }
 0x1c5   : > { %v4408_v38 = vadd.f32 %v4386_v5, %v1063_v34  ;;  %v1133_v43 = vmax.f32 %v4401_v33, 0.0  ;;  %v1068_v45 = vmul.f32 %v3561_v40, %v4382_v4 }
 0x1c6   : > { %v959_v35 = vpop.f32.mrf.mxu0 }
 0x1c7   : > { %v1131_v31 = vmax.f32 %v4408_v38, 0.0  ;;  %v1104_v49 = vadd.f32 %v4386_v5, %v1068_v45  ;;  %v1066_v48 = vmul.f32 %v4382_v4, %v959_v35  ;;  %v1161_v44 = vpack.c.bf16 %v1133_v43, %v1132_v47 }
 0x1c8   : > { %v3562_v37 = vpop.f32.mrf.mxu0 }
 0x1c9   : > { %v1160_v51 = vpack.c.bf16 %v1131_v31, %v1130_v42  ;;  %v1136_v53 = vmax.f32 %v1104_v49, 0.0  ;;  %v1102_v57 = vadd.f32 %v4386_v5, %v1066_v48  ;;  %v1069_v39 = vmul.f32 %v3562_v37, %v4382_v4 }
 0x1ca   : > { %v962_v60 = vpop.f32.mrf.mxu0  ;;  %v2128_v48 = vsel %vm844_vm1, %v1130_v42, -inf }
 0x1cb   : > { %3595 = vmatprep.mubr.msk.bf16.mxu0 %vm844_vm1, %v1160_v51  ;;  %v4427_v62 = vsel %vm844_vm1, %v1136_v53, -inf  ;;  %v1134_v55 = vmax.f32 %v1102_v57, 0.0  ;;  %v1105_v56 = vadd.f32 %v4386_v5, %v1069_v39  ;;  %v1067_v59 = vmul.f32 %v4382_v4, %v962_v60 }
 0x1cc   : > { %3596 = vmatmul.mubr.msk.bf16.gmra.mxu0 %vm844_vm1, %v1161_v44  ;;  %v2116_v1 = vmax.f32 %v4423_v58, %v4427_v62 }
 0x1cd   : > { %v3565_v2 = vpop.f32.mrf.mxu0  ;;  %v4438_v61 = vsel %vm844_vm1, %v1134_v55, -inf  ;;  %v1137_v0 = vmax.f32 %v1105_v56, 0.0  ;;  %v1103_v3 = vadd.f32 %v4386_v5, %v1067_v59  ;;  %v2135_v59 = vsel %vm844_vm1, %v1131_v31, -inf }
 0x1ce   : > { %v1072_v8 = vmul.f32 %v3565_v2, %v4382_v4  ;;  %v2102_v7 = vmax.f32 %v4433_v63, %v4438_v61 }
 0x1cf   : > { %v975_v9 = vpop.f32.mrf.mxu0  ;;  %v4448_v14 = vsel %vm844_vm1, %v1137_v0, -inf  ;;  %v1135_v16 = vmax.f32 %v1103_v3, 0.0  ;;  %v1163_v26 = vpack.c.bf16 %v1137_v0, %v1136_v53  ;;  %v4485_v53 = vsel %vm844_vm1, %v1133_v43, -inf }
 0x1d0   : > { %v1108_v17 = vadd.f32 %v4386_v5, %v1072_v8  ;;  %v2123_v19 = vmax.f32 %v4445_v12, %v4448_v14  ;;  %v1070_v13 = vmul.f32 %v4382_v4, %v975_v9 }
 0x1d1   : > { %v3566_v20 = vpop.f32.mrf.mxu0  ;;  %v1162_v21 = vpack.c.bf16 %v1135_v16, %v1134_v55  ;;  %v4458_v23 = vsel %vm844_vm1, %v1135_v16, -inf }
 0x1d2   : > { %v1140_v6 = vmax.f32 %v1108_v17, 0.0  ;;  %v1073_v25 = vmul.f32 %v3566_v20, %v4382_v4  ;;  %v2109_v27 = vmax.f32 %v4452_v18, %v4458_v23  ;;  %v1106_v22 = vadd.f32 %v4386_v5, %v1070_v13 }
 0x1d3   : > { %v978_v28 = vpop.f32.mrf.mxu0  ;;  %3599 = vmatprep.mubr.msk.bf16.mxu0 %vm844_vm1, %v1162_v21 }
 0x1d4   : > { %v4468_v15 = vsel %vm844_vm1, %v1140_v6, -inf  ;;  %v1109_v30 = vadd.f32 %v4386_v5, %v1073_v25  ;;  %v1071_v32 = vmul.f32 %v4382_v4, %v978_v28  ;;  %v3569_v34 = vpop.f32.mrf.mxu1  ;;  %v1138_v40 = vmax.f32 %v1106_v22, 0.0  ;;  %3600 = vmatmul.mubr.msk.bf16.gmra.mxu0 %vm844_vm1, %v1163_v26 }
 0x1d5   : > { %v2144_v36 = vmax.f32 %v4465_v29, %v4468_v15  ;;  %v1076_v45 = vmul.f32 %v3569_v34, %v4382_v4 }
 0x1d6   : > { %v1141_v35 = vmax.f32 %v1109_v30, 0.0  ;;  %v1107_v47 = vadd.f32 %v4386_v5, %v1071_v32  ;;  %v991_v49 = vpop.f32.mrf.mxu1  ;;  %v2129_v51 = vsel %vm844_vm1, %v1138_v40, -inf }
 0x1d7   : > { %v1112_v37 = vadd.f32 %v4386_v5, %v1076_v45  ;;  %v1074_v44 = vmul.f32 %v4382_v4, %v991_v49  ;;  %v2130_v57 = vmax.f32 %v2128_v48, %v2129_v51 }
 0x1d8   : > { %v2150_v39 = vsel %vm844_vm1, %v1141_v35, -inf  ;;  %v1139_v58 = vmax.f32 %v1107_v47, 0.0  ;;  %v3570_v60 = vpop.f32.mrf.mxu1  ;;  %v1165_v33 = vpack.c.bf16 %v1141_v35, %v1140_v6 }
 0x1d9   : > { %v2151_v62 = vmax.f32 %v4485_v53, %v2150_v39  ;;  %v1144_v55 = vmax.f32 %v1112_v37, 0.0  ;;  %v1110_v42 = vadd.f32 %v4386_v5, %v1074_v44  ;;  %v1077_v56 = vmul.f32 %v3570_v60, %v4382_v4 }
 0x1da   : > { %v1164_v63 = vpack.c.bf16 %v1139_v58, %v1138_v40  ;;  %v2136_v43 = vsel %vm844_vm1, %v1139_v58, -inf  ;;  %v994_v2 = vpop.f32.mrf.mxu1 }
 0x1db   : > { %v2137_v61 = vmax.f32 %v2135_v59, %v2136_v43  ;;  %v2117_v0 = vsel %vm844_vm1, %v1144_v55, -inf  ;;  %v1142_v3 = vmax.f32 %v1110_v42, 0.0  ;;  %v1113_v8 = vadd.f32 %v4386_v5, %v1077_v56 }
 0x1dc   : > { %v2118_v9 = vmax.f32 %v2116_v1, %v2117_v0  ;;  %v1075_v12 = vmul.f32 %v4382_v4, %v994_v2  ;;  %3603 = vmatprep.mubr.msk.bf16.mxu0 %vm844_vm1, %v1164_v63 }
 0x1dd   : > { %v2103_v38 = vsel %vm844_vm1, %v1142_v3, -inf  ;;  %v1145_v14 = vmax.f32 %v1113_v8, 0.0  ;;  %v3573_v31 = vpop.f32.mrf.mxu1  ;;  %3604 = vmatmul.mubr.msk.bf16.gmra.mxu0 %vm844_vm1, %v1165_v33 }
 0x1de   : > { %v2104_v16 = vmax.f32 %v2102_v7, %v2103_v38  ;;  %v1111_v17 = vadd.f32 %v4386_v5, %v1075_v12  ;;  %v1080_v18 = vmul.f32 %v3573_v31, %v4382_v4 }
 0x1df   : > { %v2124_v13 = vsel %vm844_vm1, %v1145_v14, -inf  ;;  %v1007_v20 = vpop.f32.mrf.mxu1  ;;  %v1167_v29 = vpack.c.bf16 %v1145_v14, %v1144_v55 }
 0x1e0   : > { %v2125_v21 = vmax.f32 %v2123_v19, %v2124_v13  ;;  %v1143_v1 = vmax.f32 %v1111_v17, 0.0  ;;  %v1116_v23 = vadd.f32 %v4386_v5, %v1080_v18  ;;  %v1078_v6 = vmul.f32 %v4382_v4, %v1007_v20 }
 0x1e1   : > { %v3574_v25 = vpop.f32.mrf.mxu1 }
 0x1e2   : > { %v1166_v26 = vpack.c.bf16 %v1143_v1, %v1142_v3  ;;  %v2110_v22 = vsel %vm844_vm1, %v1143_v1, -inf  ;;  %v1148_v28 = vmax.f32 %v1116_v23, 0.0  ;;  %v1114_v7 = vadd.f32 %v4386_v5, %v1078_v6 }
 0x1e3   : > { %v2111_v15 = vmax.f32 %v2109_v27, %v2110_v22  ;;  %v1081_v30 = vmul.f32 %v3574_v25, %v4382_v4  ;;  %v1010_v32 = vpop.f32.mrf.mxu1 }
 0x1e4   : > { %v2145_v34 = vsel %vm844_vm1, %v1148_v28, -inf  ;;  %v1146_v19 = vmax.f32 %v1114_v7, 0.0  ;;  %v1079_v40 = vmul.f32 %v4382_v4, %v1010_v32  ;;  %3607 = vmatprep.mubr.msk.bf16.mxu0 %vm844_vm1, %v1166_v26 }
 0x1e5   : > { %v2146_v45 = vmax.f32 %v2144_v36, %v2145_v34  ;;  %v1117_v35 = vadd.f32 %v4386_v5, %v1081_v30  ;;  %v3577_v47 = vpop.f32.mrf.mxu1  ;;  %3608 = vmatmul.mubr.msk.bf16.gmra.mxu0 %vm844_vm1, %v1167_v29 }
 0x1e6   : > { %v2131_v49 = vsel %vm844_vm1, %v1146_v19, -inf  ;;  %v1115_v27 = vadd.f32 %v4386_v5, %v1079_v40  ;;  %v1084_v48 = vmul.f32 %v3577_v47, %v4382_v4 }
 0x1e7   : > { %v2132_v51 = vmax.f32 %v2130_v57, %v2131_v49  ;;  %v1149_v37 = vmax.f32 %v1117_v35, 0.0  ;;  %v1023_v44 = vpop.f32.mrf.mxu1 }
 0x1e8   : > { %v1147_v53 = vmax.f32 %v1115_v27, 0.0  ;;  %v1120_v39 = vadd.f32 %v4386_v5, %v1084_v48  ;;  %v1082_v58 = vmul.f32 %v4382_v4, %v1023_v44 }
 0x1e9   : > { %v2152_v36 = vsel %vm844_vm1, %v1149_v37, -inf  ;;  %v3578_v60 = vpop.f32.mrf.mxu1  ;;  %v1169_v33 = vpack.c.bf16 %v1149_v37, %v1148_v28 }
 0x1ea   : > { %v2153_v55 = vmax.f32 %v2151_v62, %v2152_v36  ;;  %v1168_v42 = vpack.c.bf16 %v1147_v53, %v1146_v19  ;;  %v2138_v56 = vsel %vm844_vm1, %v1147_v53, -inf  ;;  %v1152_v59 = vmax.f32 %v1120_v39, 0.0  ;;  %v3735_v36 = vld [vmem:[%s5468_s4 + $0x10] ss:$8 sps:$4 sm:$0xff]  }
 0x1eb   : > { %v2139_v63 = vmax.f32 %v2137_v61, %v2138_v56  ;;  %v1118_v43 = vadd.f32 %v4386_v5, %v1082_v58  ;;  %v1085_v57 = vmul.f32 %v3578_v60, %v4382_v4  ;;  %v1026_v2 = vpop.f32.mrf.mxu1  ;;  %v3737_v58 = vld [vmem:[%s5468_s4 + $0x14] ss:$8 sps:$4 sm:$0xff]   ;;  %v3740_v60 = vld [vmem:[%s5468_s4 + $0x4] ss:$8 sps:$4 sm:$0xff]  }
 0x1ec   : > { %v2119_v0 = vsel %vm844_vm1, %v1152_v59, -inf  ;;  %v1083_v3 = vmul.f32 %v4382_v4, %v1026_v2  ;;  %3611 = vmatprep.mubr.msk.bf16.mxu0 %vm844_vm1, %v1168_v42  ;;  %v3932_v42 = vmov 0  }
 0x1ed   : > { %v4526_v8 = vmax.f32 %v2118_v9, %v2119_v0  ;;  %v1150_v62 = vmax.f32 %v1118_v43, 0.0  ;;  %v1121_v12 = vadd.f32 %v4386_v5, %v1085_v57  ;;  %v3581_v38 = vpop.f32.mrf.mxu1  ;;  %3612 = vmatmul.mubr.msk.bf16.gmra.mxu0 %vm844_vm1, %v1169_v33  ;;  %1665 = vmatprep.mubr.bf16.mxu1 %v3932_v42  ;;  %v4592_v57 = vld [vmem:[%s5470_s6 + $0x3] ss:$0 sm:$0xff] }
 0x1ee   : > { %v1119_v61 = vadd.f32 %v4386_v5, %v1083_v3  ;;  %v1088_v14 = vmul.f32 %v3581_v38, %v4382_v4 }
 0x1ef   : > { %5486 = vst [vmem:[#allocation9_spill] sm:$0xff] %v4526_v8  ;;  %v2105_v31 = vsel %vm844_vm1, %v1150_v62, -inf  ;;  %v1153_v17 = vmax.f32 %v1121_v12, 0.0  ;;  %v1039_v18 = vpop.f32.mrf.mxu1 }
 0x1f0   : > { %v4533_v13 = vmax.f32 %v2104_v16, %v2105_v31  ;;  %v1151_v20 = vmax.f32 %v1119_v61, 0.0  ;;  %v1124_v9 = vadd.f32 %v4386_v5, %v1088_v14  ;;  %v1086_v1 = vmul.f32 %v4382_v4, %v1039_v18 }
 0x1f1   : > { %v2126_v23 = vsel %vm844_vm1, %v1153_v17, -inf  ;;  %v3582_v6 = vpop.f32.mrf.mxu1  ;;  %v1171_v7 = vpack.c.bf16 %v1153_v17, %v1152_v59  ;;  %v4586_v59 = vld [vmem:[%s5470_s6 + $0x2] ss:$0 sm:$0xff] }
 0x1f2   : > { %5487 = vst [vmem:[#allocation10_spill] sm:$0xff] %v4533_v13  ;;  %v4538_v25 = vmax.f32 %v2125_v21, %v2126_v23  ;;  %v1170_v26 = vpack.c.bf16 %v1151_v20, %v1150_v62  ;;  %v2112_v22 = vsel %vm844_vm1, %v1151_v20, -inf  ;;  %v1156_v28 = vmax.f32 %v1124_v9, 0.0 }
 0x1f3   : > { %v4541_v29 = vmax.f32 %v2111_v15, %v2112_v22  ;;  %v1122_v16 = vadd.f32 %v4386_v5, %v1086_v1  ;;  %v1089_v30 = vmul.f32 %v3582_v6, %v4382_v4  ;;  %v1042_v32 = vpop.f32.mrf.mxu1 }
 0x1f4   : > { %5488 = vst [vmem:[#allocation11_spill] sm:$0xff] %v4538_v25  ;;  %v2147_v34 = vsel %vm844_vm1, %v1156_v28, -inf  ;;  %v1087_v19 = vmul.f32 %v4382_v4, %v1042_v32  ;;  %3615 = vmatprep.mubr.msk.bf16.mxu0 %vm844_vm1, %v1170_v26 }
 0x1f5   : > { %5489 = vst [vmem:[#allocation12_spill] sm:$0xff] %v4541_v29  ;;  %v4548_v21 = vmax.f32 %v2146_v45, %v2147_v34  ;;  %v1154_v40 = vmax.f32 %v1122_v16, 0.0  ;;  %v1125_v35 = vadd.f32 %v4386_v5, %v1089_v30  ;;  %3616 = vmatmul.mubr.msk.bf16.gmra.mxu0 %vm844_vm1, %v1171_v7 }
 0x1f6   : > { %v1123_v15 = vadd.f32 %v4386_v5, %v1087_v19  ;;  %v3734_v5 = vld [vmem:[%s5468_s4 + $0x24] ss:$8 sps:$4 sm:$0xff]  }
 0x1f7   : > { %5490 = vst [vmem:[#allocation13_spill] sm:$0xff] %v4548_v21  ;;  %v2133_v47 = vsel %vm844_vm1, %v1154_v40, -inf  ;;  %v1157_v49 = vmax.f32 %v1125_v35, 0.0  ;;  %1643 = vmatprep.subr.bf16.mxu1 %v3734_v5 }
 0x1f8   : > { %v4554_v27 = vmax.f32 %v2132_v51, %v2133_v47  ;;  %v1155_v48 = vmax.f32 %v1123_v15, 0.0  ;;  %v3732_v51 = vld [vmem:[%s5468_s4 + $0x20] ss:$8 sps:$4 sm:$0xff]  }
 0x1f9   : > { %v2154_v37 = vsel %vm844_vm1, %v1157_v49, -inf  ;;  %v1173_v53 = vpack.c.bf16 %v1157_v49, %v1156_v28  ;;  %1644 = vmatpush1.bf16.msra.mxu1 %v3732_v51 }
 0x1fa   : > { %5491 = vst [vmem:[#allocation14_spill] sm:$0xff] %v4554_v27  ;;  %v4557_v4 = vmax.f32 %v2153_v55, %v2154_v37  ;;  %v1172_v44 = vpack.c.bf16 %v1155_v48, %v1154_v40  ;;  %v2140_v45 = vsel %vm844_vm1, %v1155_v48, -inf  ;;  %1645 = vmatprep.subr.bf16.mxu1 %v3737_v58  ;;  %v3738_v55 = vld [vmem:[%s5468_s4] ss:$8 sps:$4 sm:$0xff]  }
 0x1fb   : > { %v4560_v39 = vmax.f32 %v2139_v63, %v2140_v45 }
 0x1fc   : > { %5492 = vst [vmem:[#allocation15_spill] sm:$0xff] %v4557_v4  ;;  %3619 = vmatprep.mubr.msk.bf16.mxu0 %vm844_vm1, %v1172_v44 }
 0x1fd   : > { %5493 = vst [vmem:[#allocation16_spill] sm:$0xff] %v4560_v39  ;;  %3620 = vmatmul.mubr.msk.bf16.gmra.mxu0 %vm844_vm1, %v1173_v53  ;;  %1646 = vmatpush1.bf16.msra.mxu1 %v3735_v36 }
 0x1fe   : > { %1647 = vmatprep.subr.bf16.mxu1 %v3740_v60 }
 0x201   : > { %1648 = vmatpush1.bf16.msra.mxu1 %v3738_v55 }
 0x284   : > { %v3593_v56 = vpop.f32.mrf.mxu0 }
 0x285   : > { %v1422_v14 = vmul.f32 %v3593_v56, %v4586_v59 }
 0x286   : > { %v1288_v33 = vpop.f32.mrf.mxu0 }
 0x287   : > { %v1420_v63 = vmul.f32 %v4586_v59, %v1288_v33  ;;  %v1459_v23 = vadd.f32 %v4592_v57, %v1422_v14 }
 0x288   : > { %v3594_v43 = vpop.f32.mrf.mxu0 }
 0x289   : > { %v1457_v0 = vadd.f32 %v4592_v57, %v1420_v63  ;;  %v1423_v12 = vmul.f32 %v3594_v43, %v4586_v59  ;;  %v1491_v7 = vmax.f32 %v1459_v23, 0.0 }
 0x28a   : > { %v1291_v2 = vpop.f32.mrf.mxu0 }
 0x28b   : > { %v1421_v3 = vmul.f32 %v4586_v59, %v1291_v2  ;;  %v1489_v31 = vmax.f32 %v1457_v0, 0.0  ;;  %v1460_v20 = vadd.f32 %v4592_v57, %v1423_v12 }
 0x28c   : > { %v3597_v62 = vpop.f32.mrf.mxu0 }
 0x28d   : > { %v1458_v38 = vadd.f32 %v4592_v57, %v1421_v3  ;;  %v1492_v6 = vmax.f32 %v1460_v20, 0.0  ;;  %v1426_v19 = vmul.f32 %v3597_v62, %v4586_v59 }
 0x28e   : > { %v1304_v61 = vpop.f32.mrf.mxu0 }
 0x28f   : > { %v1490_v17 = vmax.f32 %v1458_v38, 0.0  ;;  %v1424_v16 = vmul.f32 %v4586_v59, %v1304_v61  ;;  %v1522_v15 = vpack.c.bf16 %v1492_v6, %v1491_v7  ;;  %v1463_v58 = vadd.f32 %v4592_v57, %v1426_v19 }
 0x290   : > { %v3598_v18 = vpop.f32.mrf.mxu0 }
 0x291   : > { %v1521_v9 = vpack.c.bf16 %v1490_v17, %v1489_v31  ;;  %v1461_v37 = vadd.f32 %v4592_v57, %v1424_v16  ;;  %v1427_v36 = vmul.f32 %v3598_v18, %v4586_v59  ;;  %v1495_v61 = vmax.f32 %v1463_v58, 0.0 }
 0x292   : > { %v1307_v1 = vpop.f32.mrf.mxu0 }
 0x293   : > { %1666 = vmatmul.mubr.bf16.vlgmr.msra.gmra.mxu1 %v1521_v9  ;;  %v1425_v26 = vmul.f32 %v4586_v59, %v1307_v1  ;;  %v1493_v2 = vmax.f32 %v1461_v37, 0.0  ;;  %v1464_v14 = vadd.f32 %v4592_v57, %v1427_v36 }
 0x294   : > { %1675 = vmatprep.mubr.bf16.mxu1 %v3932_v42  ;;  %v3601_v22 = vpop.f32.mrf.mxu0 }
 0x295   : > { %v1430_v28 = vmul.f32 %v3601_v22, %v4586_v59  ;;  %v1462_v40 = vadd.f32 %v4592_v57, %v1425_v26 }
 0x296   : > { %v1320_v30 = vpop.f32.mrf.mxu0 }
 0x297   : > { %v4606_v32 = vadd.f32 %v4592_v57, %v1430_v28  ;;  %v1428_v34 = vmul.f32 %v4586_v59, %v1320_v30  ;;  %v1494_v60 = vmax.f32 %v1462_v40, 0.0 }
 0x298   : > { %v3602_v35 = vpop.f32.mrf.mxu0 }
 0x299   : > { %v1499_v47 = vmax.f32 %v4606_v32, 0.0  ;;  %v4613_v49 = vadd.f32 %v4592_v57, %v1428_v34  ;;  %v1431_v48 = vmul.f32 %v3602_v35, %v4586_v59  ;;  %v1523_v18 = vpack.c.bf16 %v1494_v60, %v1493_v2 }
 0x29a   : > { %v1323_v44 = vpop.f32.mrf.mxu0 }
 0x29b   : > { %1676 = vmatmul.mubr.bf16.gmra.mxu1 %v1522_v15  ;;  %v2162_v45 = vmax.f32 %v1491_v7, %v1499_v47  ;;  %v1497_v53 = vmax.f32 %v4613_v49, 0.0  ;;  %v4621_v5 = vadd.f32 %v4592_v57, %v1431_v48  ;;  %v1429_v51 = vmul.f32 %v4586_v59, %v1323_v44 }
 0x29c   : > { %1685 = vmatprep.mubr.bf16.mxu1 %v3932_v42 }
 0x29d   : > { %v3605_v55 = vpop.f32.mrf.mxu0  ;;  %v2156_v56 = vmax.f32 %v1489_v31, %v1497_v53  ;;  %v1500_v33 = vmax.f32 %v4621_v5, 0.0  ;;  %v1466_v63 = vadd.f32 %v4592_v57, %v1429_v51 }
 0x29e   : > { %v1434_v43 = vmul.f32 %v3605_v55, %v4586_v59 }
 0x29f   : > { %v1336_v0 = vpop.f32.mrf.mxu0  ;;  %v2165_v3 = vmax.f32 %v1492_v6, %v1500_v33  ;;  %v1498_v62 = vmax.f32 %v1466_v63, 0.0 }
 0x2a0   : > { %v4635_v12 = vadd.f32 %v4592_v57, %v1434_v43  ;;  %v1432_v38 = vmul.f32 %v4586_v59, %v1336_v0 }
 0x2a1   : > { %v3606_v31 = vpop.f32.mrf.mxu0  ;;  %v2159_v20 = vmax.f32 %v1490_v17, %v1498_v62  ;;  %v1496_v17 = vmax.f32 %v1464_v14, 0.0 }
 0x2a2   : > { %v1503_v9 = vmax.f32 %v4635_v12, 0.0  ;;  %v4641_v1 = vadd.f32 %v4592_v57, %v1432_v38  ;;  %v1435_v23 = vmul.f32 %v3606_v31, %v4586_v59 }
 0x2a3   : > { %v1339_v6 = vpop.f32.mrf.mxu0  ;;  %1686 = vmatmul.mubr.bf16.gmra.mxu1 %v1523_v18  ;;  %v1524_v58 = vpack.c.bf16 %v1496_v17, %v1495_v61 }
 0x2a4   : > { %v2174_v26 = vmax.f32 %v1495_v61, %v1503_v9  ;;  %v1501_v22 = vmax.f32 %v4641_v1, 0.0  ;;  %v4648_v28 = vadd.f32 %v4592_v57, %v1435_v23  ;;  %v1433_v7 = vmul.f32 %v4586_v59, %v1339_v6  ;;  %1695 = vmatprep.mubr.bf16.mxu1 %v3932_v42 }
 0x2a5   : > { %v3609_v16 = vpop.f32.mrf.mxu0 }
 0x2a6   : > { %v2168_v30 = vmax.f32 %v1493_v2, %v1501_v22  ;;  %v1504_v34 = vmax.f32 %v4648_v28, 0.0  ;;  %v4656_v19 = vadd.f32 %v4592_v57, %v1433_v7  ;;  %v1438_v40 = vmul.f32 %v3609_v16, %v4586_v59 }
 0x2a7   : > { %v1352_v35 = vpop.f32.mrf.mxu0 }
 0x2a8   : > { %v2177_v15 = vmax.f32 %v1496_v17, %v1504_v34  ;;  %v1502_v48 = vmax.f32 %v4656_v19, 0.0  ;;  %v1475_v37 = vadd.f32 %v4592_v57, %v1438_v40  ;;  %v1436_v44 = vmul.f32 %v4586_v59, %v1352_v35 }
 0x2a9   : > { %v3610_v51 = vpop.f32.mrf.mxu0 }
 0x2aa   : > { %v2171_v36 = vmax.f32 %v1494_v60, %v1502_v48  ;;  %v1507_v55 = vmax.f32 %v1475_v37, 0.0  ;;  %v1473_v63 = vadd.f32 %v4592_v57, %v1436_v44  ;;  %v1439_v43 = vmul.f32 %v3610_v51, %v4586_v59 }
 0x2ab   : > { %v1355_v2 = vpop.f32.mrf.mxu0  ;;  %1696 = vmatmul.mubr.bf16.gmra.mxu1 %v1524_v58  ;;  %v1525_v37 = vpack.c.bf16 %v1498_v62, %v1497_v53 }
 0x2ac   : > { %v2163_v0 = vmax.f32 %v2162_v45, %v1507_v55  ;;  %v1505_v38 = vmax.f32 %v1473_v63, 0.0  ;;  %v1476_v14 = vadd.f32 %v4592_v57, %v1439_v43  ;;  %v1437_v31 = vmul.f32 %v4586_v59, %v1355_v2  ;;  %1705 = vmatprep.mubr.bf16.mxu1 %v3932_v42 }
 0x2ad   : > { %v3613_v18 = vpop.f32.mrf.mxu0 }
 0x2ae   : > { %v2157_v61 = vmax.f32 %v2156_v56, %v1505_v38  ;;  %v1508_v23 = vmax.f32 %v1476_v14, 0.0  ;;  %v1474_v60 = vadd.f32 %v4592_v57, %v1437_v31  ;;  %v1442_v6 = vmul.f32 %v3613_v18, %v4586_v59 }
 0x2af   : > { %v1368_v7 = vpop.f32.mrf.mxu0 }
 0x2b0   : > { %v2166_v17 = vmax.f32 %v2165_v3, %v1508_v23  ;;  %v1506_v16 = vmax.f32 %v1474_v60, 0.0  ;;  %v1479_v40 = vadd.f32 %v4592_v57, %v1442_v6  ;;  %v1440_v45 = vmul.f32 %v4586_v59, %v1368_v7 }
 0x2b1   : > { %v3614_v35 = vpop.f32.mrf.mxu0  ;;  %v4677_v44 = vpack.c.bf16 %v1508_v23, %v1507_v55 }
 0x2b2   : > { %v2160_v51 = vmax.f32 %v2159_v20, %v1506_v16  ;;  %v1511_v56 = vmax.f32 %v1479_v40, 0.0  ;;  %v1477_v58 = vadd.f32 %v4592_v57, %v1440_v45  ;;  %v1443_v63 = vmul.f32 %v3614_v35, %v4586_v59 }
 0x2b3   : > { %v1371_v43 = vpop.f32.mrf.mxu0  ;;  %1706 = vmatmul.mubr.bf16.gmra.mxu1 %v1525_v37  ;;  %v4681_v3 = vpack.c.bf16 %v1506_v16, %v1505_v38  ;;  %v1526_v16 = vpack.c.bf16 %v1500_v33, %v1499_v47 }
 0x2b4   : > { %v2175_v2 = vmax.f32 %v2174_v26, %v1511_v56  ;;  %v1509_v14 = vmax.f32 %v1477_v58, 0.0  ;;  %v1480_v31 = vadd.f32 %v4592_v57, %v1443_v63  ;;  %v1441_v18 = vmul.f32 %v4586_v59, %v1371_v43  ;;  %1715 = vmatprep.mubr.bf16.mxu1 %v3932_v42 }
 0x2b5   : > { %v3617_v49 = vpop.f32.mrf.mxu0 }
 0x2b6   : > { %v2169_v53 = vmax.f32 %v2168_v30, %v1509_v14  ;;  %v1512_v62 = vmax.f32 %v1480_v31, 0.0  ;;  %v1478_v20 = vadd.f32 %v4592_v57, %v1441_v18  ;;  %v1446_v55 = vmul.f32 %v3617_v49, %v4586_v59 }
 0x2b7   : > { %v1384_v23 = vpop.f32.mrf.mxu0 }
 0x2b8   : > { %v2178_v60 = vmax.f32 %v2177_v15, %v1512_v62  ;;  %v1510_v6 = vmax.f32 %v1478_v20, 0.0  ;;  %v1483_v38 = vadd.f32 %v4592_v57, %v1446_v55  ;;  %v1444_v26 = vmul.f32 %v4586_v59, %v1384_v23 }
 0x2b9   : > { %v3618_v7 = vpop.f32.mrf.mxu0  ;;  %v1532_v40 = vpack.c.bf16 %v1512_v62, %v1511_v56 }
 0x2ba   : > { %v2172_v30 = vmax.f32 %v2171_v36, %v1510_v6  ;;  %v1515_v45 = vmax.f32 %v1483_v38, 0.0  ;;  %v1481_v35 = vadd.f32 %v4592_v57, %v1444_v26  ;;  %v1447_v37 = vmul.f32 %v3618_v7, %v4586_v59 }
 0x2bb   : > { %v1387_v58 = vpop.f32.mrf.mxu0  ;;  %1716 = vmatmul.mubr.bf16.gmra.mxu1 %v1526_v16  ;;  %v1531_v15 = vpack.c.bf16 %v1510_v6, %v1509_v14 }
 0x2bc   : > { %v4696_v63 = vmax.f32 %v2163_v0, %v1515_v45  ;;  %v1513_v43 = vmax.f32 %v1481_v35, 0.0  ;;  %v1484_v31 = vadd.f32 %v4592_v57, %v1447_v37  ;;  %v1445_v32 = vmul.f32 %v4586_v59, %v1387_v58  ;;  %1725 = vmatprep.mubr.bf16.mxu1 %v3932_v42 }
 0x2bd   : > { %v3621_v47 = vpop.f32.mrf.mxu0 }
 0x2be   : > { %v4701_v5 = vmax.f32 %v2157_v61, %v1513_v43  ;;  %v1516_v33 = vmax.f32 %v1484_v31, 0.0  ;;  %v1482_v36 = vadd.f32 %v4592_v57, %v1445_v32  ;;  %v1450_v56 = vmul.f32 %v3621_v47, %v4586_v59 }
 0x2bf   : > { %v1400_v18 = vpop.f32.mrf.mxu0  ;;  %v1527_v61 = vpack.c.bf16 %v1502_v48, %v1501_v22 }
 0x2c0   : > { %v4705_v49 = vmax.f32 %v2166_v17, %v1516_v33  ;;  %v1514_v0 = vmax.f32 %v1482_v36, 0.0  ;;  %v1487_v14 = vadd.f32 %v4592_v57, %v1450_v56  ;;  %v1448_v62 = vmul.f32 %v4586_v59, %v1400_v18  ;;  %v3344_v18 = vld [vmem:[%s5470_s6 + $0x5] ss:$2 sm:$0x3] }
 0x2c1   : > { %v3622_v20 = vpop.f32.mrf.mxu0  ;;  %v1534_v55 = vpack.c.bf16 %v1516_v33, %v1515_v45 }
 0x2c2   : > { %5494 = vst [vmem:[#allocation17_spill] sm:$0xff] %v4705_v49  ;;  %v4713_v23 = vmax.f32 %v2160_v51, %v1514_v0  ;;  %v1519_v6 = vmax.f32 %v1487_v14, 0.0  ;;  %v1485_v38 = vadd.f32 %v4592_v57, %v1448_v62  ;;  %v1451_v17 = vmul.f32 %v3622_v20, %v4586_v59 }
 0x2c3   : > { %v1403_v26 = vpop.f32.mrf.mxu0  ;;  %1726 = vmatmul.mubr.bf16.gmra.mxu1 %v1527_v61  ;;  %v1533_v7 = vpack.c.bf16 %v1514_v0, %v1513_v43 }
 0x2c4   : > { %v4717_v16 = vmax.f32 %v2175_v2, %v1519_v6  ;;  %v1517_v35 = vmax.f32 %v1485_v38, 0.0  ;;  %v1488_v37 = vadd.f32 %v4592_v57, %v1451_v17  ;;  %v1449_v1 = vmul.f32 %v4586_v59, %v1403_v26  ;;  %1735 = vmatprep.mubr.bf16.mxu1 %v3932_v42 }
 0x2c5   : > { %v1528_v2 = vpack.c.bf16 %v1504_v34, %v1503_v9 }
 0x2c6   : > { %5495 = vst [vmem:[#allocation18_spill] sm:$0xff] %v4717_v16  ;;  %v4722_v22 = vmax.f32 %v2169_v53, %v1517_v35  ;;  %v1520_v19 = vmax.f32 %v1488_v37, 0.0  ;;  %v1486_v48 = vadd.f32 %v4592_v57, %v1449_v1 }
 0x2c8   : > { %5496 = vst [vmem:[#allocation19_spill] sm:$0xff] %v4722_v22  ;;  %v4725_v51 = vmax.f32 %v2178_v60, %v1520_v19  ;;  %v1518_v45 = vmax.f32 %v1486_v48, 0.0  ;;  %v1536_v58 = vpack.c.bf16 %v1520_v19, %v1519_v6 }
 0x2ca   : > { %5497 = vst [vmem:[#allocation20_spill] sm:$0xff] %v4725_v51  ;;  %v4731_v43 = vmax.f32 %v2172_v30, %v1518_v45  ;;  %v1535_v31 = vpack.c.bf16 %v1518_v45, %v1517_v35 }
 0x2cb   : > { %1736 = vmatmul.mubr.bf16.gmra.mxu1 %v1528_v2 }
 0x2cc   : > { %5498 = vst [vmem:[#allocation21_spill] sm:$0xff] %v4731_v43  ;;  %1745 = vmatprep.mubr.bf16.mxu1 %v3932_v42 }
 0x2d3   : > { %1746 = vmatmul.mubr.bf16.gmra.mxu1 %v4681_v3  ;;  %v1829_v3 = vlaneseq }
 0x2d4   : > { %1755 = vmatprep.mubr.bf16.mxu1 %v3932_v42 }
 0x2db   : > { %1756 = vmatmul.mubr.bf16.gmra.mxu1 %v4677_v44 }
 0x2dc   : > { %1765 = vmatprep.mubr.bf16.mxu1 %v3932_v42 }
 0x2e3   : > { %1766 = vmatmul.mubr.bf16.gmra.mxu1 %v1531_v15 }
 0x2e4   : > { %1775 = vmatprep.mubr.bf16.mxu1 %v3932_v42 }
 0x2eb   : > { %1776 = vmatmul.mubr.bf16.gmra.mxu1 %v1532_v40  ;;  %v1830_v40 = vshrl.u32 %v1829_v3, 7 }
 0x2ec   : > { %1785 = vmatprep.mubr.bf16.mxu1 %v3932_v42 }
 0x2ed   : > { %v4747_v32 = vsub.s32 0, %v1830_v40  ;;  %v4752_v47 = vsub.s32 1, %v1830_v40 }
 0x2ef   : > { %5499 = vst [vmem:[#allocation22_spill] sm:$0xff] %v4747_v32  ;;  %5500 = vst [vmem:[#allocation23_spill] sm:$0xff] %v4752_v47  ;;  %v4773_v61 = vrot.slane %v3344_v18, %v4747_v32  ;;  %v4777_v6 = vrot.slane %v3344_v18, %v4752_v47 }
 0x2f3   : > { %1786 = vmatmul.mubr.bf16.gmra.mxu1 %v1533_v7 }
 0x2f4   : > { %1795 = vmatprep.mubr.bf16.mxu1 %v3932_v42 }
 0x2fb   : > { %1796 = vmatmul.mubr.bf16.gmra.mxu1 %v1534_v55 }
 0x2fc   : > { %1805 = vmatprep.mubr.bf16.mxu1 %v3932_v42 }
 0x303   : > { %1806 = vmatmul.mubr.bf16.gmra.mxu1 %v1535_v31 }
 0x304   : > { %1815 = vmatprep.mubr.bf16.mxu1 %v3932_v42  ;;  %v3343_v42 = vld [vmem:[%s5470_s6 + $0x4] ss:$2 sm:$0x3] }
 0x305   : > { %v4759_v56 = vrot.slane %v3343_v42, %v4747_v32  ;;  %v4765_v0 = vrot.slane %v3343_v42, %v4752_v47 }
 0x30b   : > { %1816 = vmatmul.mubr.bf16.gmra.mxu1 %v1536_v58 }
 0x353   : > { %v1667_v59 = vpop.f32.mrf.mxu1 }
 0x354   : > { %v1839_v20 = vmul.f32 %v4759_v56, %v1667_v59 }
 0x355   : > { %v1669_v57 = vpop.f32.mrf.mxu1 }
 0x356   : > { %v1840_v55 = vmul.f32 %v4765_v0, %v1669_v57  ;;  %v1916_v7 = vadd.f32 %v4773_v61, %v1839_v20 }
 0x357   : > { %v1671_v12 = vpop.f32.mrf.mxu1 }
 0x358   : > { %v1841_v17 = vmul.f32 %v4759_v56, %v1671_v12  ;;  %v1917_v37 = vadd.f32 %v4777_v6, %v1840_v55  ;;  %v1980_v59 = vmax.f32 %v1916_v7, 0.0 }
 0x359   : > { %v1673_v9 = vpop.f32.mrf.mxu1 }
 0x35a   : > { %v1842_v1 = vmul.f32 %v4765_v0, %v1673_v9  ;;  %v1918_v58 = vadd.f32 %v4773_v61, %v1841_v17  ;;  %v1981_v40 = vmax.f32 %v1917_v37, 0.0 }
 0x35b   : > { %v1677_v28 = vpop.f32.mrf.mxu1 }
 0x35c   : > { %v1843_v2 = vmul.f32 %v4759_v56, %v1677_v28  ;;  %v1919_v42 = vadd.f32 %v4777_v6, %v1842_v1 }
 0x35d   : > { %v1679_v34 = vpop.f32.mrf.mxu1 }
 0x35e   : > { %v1844_v9 = vmul.f32 %v4765_v0, %v1679_v34  ;;  %v1920_v7 = vadd.f32 %v4773_v61, %v1843_v2 }
 0x35f   : > { %v1681_v44 = vpop.f32.mrf.mxu1 }
 0x361   : > { %v1683_v53 = vpop.f32.mrf.mxu1 }
 0x363   : > { %v1687_v60 = vpop.f32.mrf.mxu1 }
 0x365   : > { %v4743_v30 = vpop.f32.mrf.mxu1 }
 0x367   : > { %v4745_v15 = vpop.f32.mrf.mxu1 }
 0x369   : > { %v4754_v33 = vpop.f32.mrf.mxu1 }
 0x36b   : > { %v4756_v36 = vpop.f32.mrf.mxu1 }
 0x36d   : > { %v4767_v14 = vpop.f32.mrf.mxu1 }
 0x36f   : > { %v4769_v62 = vpop.f32.mrf.mxu1 }
 0x370   : > { %v1853_v4 = vmul.f32 %v4759_v56, %v4769_v62 }
 0x371   : > { %v4779_v38 = vpop.f32.mrf.mxu1 }
 0x372   : > { %v4895_v62 = vadd.f32 %v4773_v61, %v1853_v4 }
 0x373   : > { %v1707_v26 = vpop.f32.mrf.mxu1 }
 0x374   : > { %v1855_v35 = vmul.f32 %v4759_v56, %v1707_v26  ;;  %v1982_v26 = vmax.f32 %v1918_v58, 0.0 }
 0x375   : > { %v1709_v19 = vpop.f32.mrf.mxu1 }
 0x376   : > { %v1932_v48 = vadd.f32 %v4773_v61, %v1855_v35  ;;  %v1856_v45 = vmul.f32 %v4765_v0, %v1709_v19  ;;  %v1845_v35 = vmul.f32 %v4759_v56, %v1681_v44 }
 0x377   : > { %v1711_v31 = vpop.f32.mrf.mxu1 }
 0x378   : > { %v1996_v57 = vmax.f32 %v1932_v48, 0.0  ;;  %v1933_v12 = vadd.f32 %v4777_v6, %v1856_v45  ;;  %v1857_v3 = vmul.f32 %v4759_v56, %v1711_v31  ;;  %v1983_v45 = vmax.f32 %v1919_v42, 0.0 }
 0x379   : > { %v1713_v18 = vpop.f32.mrf.mxu1  ;;  %v1921_v31 = vadd.f32 %v4777_v6, %v1844_v9 }
 0x37a   : > { %v4794_v20 = vmax.f32 %v1980_v59, %v1996_v57  ;;  %v1997_v55 = vmax.f32 %v1933_v12, 0.0  ;;  %v1934_v17 = vadd.f32 %v4773_v61, %v1857_v3  ;;  %v1858_v28 = vmul.f32 %v4765_v0, %v1713_v18 }
 0x37b   : > { %v1717_v19 = vpop.f32.mrf.mxu1  ;;  %v1846_v59 = vmul.f32 %v4765_v0, %v1683_v53  ;;  %v1984_v3 = vmax.f32 %v1920_v7, 0.0  ;;  %v1847_v18 = vmul.f32 %v4759_v56, %v1687_v60 }
 0x37c   : > { %v4800_v48 = vmax.f32 %v1981_v40, %v1997_v55  ;;  %v1998_v37 = vmax.f32 %v1934_v17, 0.0  ;;  %v1935_v1 = vadd.f32 %v4777_v6, %v1858_v28  ;;  %v1859_v34 = vmul.f32 %v4759_v56, %v1717_v19 }
 0x37d   : > { %v1719_v57 = vpop.f32.mrf.mxu1  ;;  %v1922_v40 = vadd.f32 %v4773_v61, %v1845_v35  ;;  %v1985_v28 = vmax.f32 %v1921_v31, 0.0  ;;  %v1848_v19 = vmul.f32 %v4765_v0, %v4743_v30 }
 0x37e   : > { %v4806_v12 = vmax.f32 %v1982_v26, %v1998_v37  ;;  %v1999_v58 = vmax.f32 %v1935_v1, 0.0  ;;  %v1936_v2 = vadd.f32 %v4773_v61, %v1859_v34  ;;  %v1860_v44 = vmul.f32 %v4765_v0, %v1719_v57 }
 0x37f   : > { %v1721_v55 = vpop.f32.mrf.mxu1  ;;  %v1923_v26 = vadd.f32 %v4777_v6, %v1846_v59  ;;  %v1986_v34 = vmax.f32 %v1922_v40, 0.0  ;;  %v1849_v57 = vmul.f32 %v4759_v56, %v4745_v15 }
 0x380   : > { %v4812_v17 = vmax.f32 %v1983_v45, %v1999_v58  ;;  %v2000_v42 = vmax.f32 %v1936_v2, 0.0  ;;  %v1937_v9 = vadd.f32 %v4777_v6, %v1860_v44  ;;  %v1861_v53 = vmul.f32 %v4759_v56, %v1721_v55 }
 0x381   : > { %v1723_v37 = vpop.f32.mrf.mxu1  ;;  %v1924_v45 = vadd.f32 %v4773_v61, %v1847_v18  ;;  %v1987_v44 = vmax.f32 %v1923_v26, 0.0  ;;  %v1850_v55 = vmul.f32 %v4765_v0, %v4754_v33 }
 0x382   : > { %v4819_v7 = vmax.f32 %v1984_v3, %v2000_v42  ;;  %v2001_v35 = vmax.f32 %v1937_v9, 0.0  ;;  %v1938_v60 = vadd.f32 %v4773_v61, %v1861_v53  ;;  %v1862_v1 = vmul.f32 %v4765_v0, %v1723_v37 }
 0x383   : > { %v1727_v31 = vpop.f32.mrf.mxu1  ;;  %v1925_v3 = vadd.f32 %v4777_v6, %v1848_v19  ;;  %v1988_v53 = vmax.f32 %v1924_v45, 0.0  ;;  %v1851_v37 = vmul.f32 %v4759_v56, %v4756_v36 }
 0x384   : > { %v4826_v58 = vmax.f32 %v1985_v28, %v2001_v35  ;;  %v2002_v59 = vmax.f32 %v1938_v60, 0.0  ;;  %v1939_v30 = vadd.f32 %v4777_v6, %v1862_v1  ;;  %v1863_v2 = vmul.f32 %v4759_v56, %v1727_v31 }
 0x385   : > { %v1729_v40 = vpop.f32.mrf.mxu1  ;;  %v1926_v28 = vadd.f32 %v4773_v61, %v1849_v57  ;;  %v1989_v1 = vmax.f32 %v1925_v3, 0.0  ;;  %v1852_v31 = vmul.f32 %v4765_v0, %v4767_v14 }
 0x386   : > { %v4833_v42 = vmax.f32 %v1986_v34, %v2002_v59  ;;  %v2003_v18 = vmax.f32 %v1939_v30, 0.0  ;;  %v1940_v15 = vadd.f32 %v4773_v61, %v1863_v2  ;;  %v1864_v9 = vmul.f32 %v4765_v0, %v1729_v40 }
 0x387   : > { %v1731_v26 = vpop.f32.mrf.mxu1  ;;  %v1927_v34 = vadd.f32 %v4777_v6, %v1850_v55  ;;  %v1990_v2 = vmax.f32 %v1926_v28, 0.0 }
 0x388   : > { %v4840_v35 = vmax.f32 %v1987_v44, %v2003_v18  ;;  %v2004_v19 = vmax.f32 %v1940_v15, 0.0  ;;  %v1941_v33 = vadd.f32 %v4777_v6, %v1864_v9  ;;  %v1865_v60 = vmul.f32 %v4759_v56, %v1731_v26 }
 0x389   : > { %v1733_v45 = vpop.f32.mrf.mxu1  ;;  %v1928_v44 = vadd.f32 %v4773_v61, %v1851_v37  ;;  %v1991_v14 = vmax.f32 %v1927_v34, 0.0  ;;  %v1929_v9 = vadd.f32 %v4777_v6, %v1852_v31 }
 0x38a   : > { %v4847_v59 = vmax.f32 %v1988_v53, %v2004_v19  ;;  %v2005_v57 = vmax.f32 %v1941_v33, 0.0  ;;  %v1942_v36 = vadd.f32 %v4773_v61, %v1865_v60  ;;  %v1866_v30 = vmul.f32 %v4765_v0, %v1733_v45 }
 0x38b   : > { %v1737_v40 = vpop.f32.mrf.mxu1  ;;  %v1992_v60 = vmax.f32 %v1928_v44, 0.0 }
 0x38c   : > { %v4852_v18 = vmax.f32 %v1989_v1, %v2005_v57  ;;  %v2006_v3 = vmax.f32 %v1942_v36, 0.0  ;;  %v1943_v55 = vadd.f32 %v4777_v6, %v1866_v30  ;;  %v1867_v15 = vmul.f32 %v4759_v56, %v1737_v40 }
 0x38d   : > { %v1739_v53 = vpop.f32.mrf.mxu1  ;;  %v1993_v30 = vmax.f32 %v1929_v9, 0.0 }
 0x38e   : > { %v4857_v26 = vmax.f32 %v1990_v2, %v2006_v3  ;;  %v2007_v19 = vmax.f32 %v1943_v55, 0.0  ;;  %v1944_v33 = vadd.f32 %v4773_v61, %v1867_v15  ;;  %v1868_v28 = vmul.f32 %v4765_v0, %v1739_v53 }
 0x38f   : > { %v1741_v37 = vpop.f32.mrf.mxu1 }
 0x390   : > { %v4861_v1 = vmax.f32 %v1991_v14, %v2007_v19  ;;  %v2008_v45 = vmax.f32 %v1944_v33, 0.0  ;;  %v1945_v57 = vadd.f32 %v4777_v6, %v1868_v28 }
 0x391   : > { %v1743_v36 = vpop.f32.mrf.mxu1 }
 0x392   : > { %v4864_v34 = vmax.f32 %v1992_v60, %v2008_v45  ;;  %v2009_v31 = vmax.f32 %v1945_v57, 0.0 }
 0x393   : > { %v1747_v40 = vpop.f32.mrf.mxu1 }
 0x394   : > { %v4866_v2 = vmax.f32 %v1993_v30, %v2009_v31  ;;  %v1871_v60 = vmul.f32 %v4759_v56, %v1747_v40  ;;  %v1854_v40 = vmul.f32 %v4765_v0, %v4779_v38 }
 0x395   : > { %v1749_v3 = vpop.f32.mrf.mxu1 }
 0x396   : > { %v1872_v45 = vmul.f32 %v4765_v0, %v1749_v3  ;;  %v1948_v21 = vadd.f32 %v4773_v61, %v1871_v60  ;;  %v1869_v3 = vmul.f32 %v4759_v56, %v1741_v37  ;;  %v4900_v38 = vadd.f32 %v4777_v6, %v1854_v40 }
 0x397   : > { %v1751_v55 = vpop.f32.mrf.mxu1 }
 0x398   : > { %v1873_v30 = vmul.f32 %v4759_v56, %v1751_v55  ;;  %v1949_v27 = vadd.f32 %v4777_v6, %v1872_v45  ;;  %v2012_v60 = vmax.f32 %v1948_v21, 0.0  ;;  %v4903_v37 = vadd.f32 %v4773_v61, %v1869_v3 }
 0x399   : > { %v1753_v15 = vpop.f32.mrf.mxu1 }
 0x39a   : > { %v1874_v39 = vmul.f32 %v4765_v0, %v1753_v15  ;;  %v1950_v55 = vadd.f32 %v4773_v61, %v1873_v30  ;;  %v2013_v45 = vmax.f32 %v1949_v27, 0.0  ;;  %v2181_v30 = vmax.f32 %v4794_v20, %v2012_v60 }
 0x39b   : > { %v1757_v47 = vpop.f32.mrf.mxu1 }
 0x39c   : > { %v1875_v25 = vmul.f32 %v4759_v56, %v1757_v47  ;;  %v1951_v15 = vadd.f32 %v4777_v6, %v1874_v39  ;;  %v2014_v4 = vmax.f32 %v1950_v55, 0.0 }
 0x39d   : > { %v1759_v53 = vpop.f32.mrf.mxu1 }
 0x39e   : > { %v1876_v51 = vmul.f32 %v4765_v0, %v1759_v53  ;;  %v1952_v27 = vadd.f32 %v4773_v61, %v1875_v25  ;;  %v2015_v22 = vmax.f32 %v1951_v15, 0.0  ;;  %v2187_v60 = vmax.f32 %v4806_v12, %v2014_v4 }
 0x39f   : > { %v1761_v32 = vpop.f32.mrf.mxu1 }
 0x3a0   : > { %v1877_v39 = vmul.f32 %v4759_v56, %v1761_v32 }
 0x3a1   : > { %v1763_v44 = vpop.f32.mrf.mxu1 }
 0x3a3   : > { %v1767_v14 = vpop.f32.mrf.mxu1 }
 0x3a5   : > { %v1769_v19 = vpop.f32.mrf.mxu1 }
 0x3a6   : > { %v1880_v12 = vmul.f32 %v4765_v0, %v1769_v19 }
 0x3a7   : > { %v4868_v33 = vpop.f32.mrf.mxu1 }
 0x3a9   : > { %v4870_v28 = vpop.f32.mrf.mxu1 }
 0x3ab   : > { %v4872_v9 = vpop.f32.mrf.mxu1 }
 0x3ad   : > { %v4876_v57 = vpop.f32.mrf.mxu1 }
 0x3af   : > { %v4879_v31 = vpop.f32.mrf.mxu1 }
 0x3b1   : > { %v4886_v29 = vpop.f32.mrf.mxu1 }
 0x3b3   : > { %v1787_v13 = vpop.f32.mrf.mxu1 }
 0x3b4   : > { %v1887_v8 = vmul.f32 %v4759_v56, %v1787_v13  ;;  %v4908_v13 = vmul.f32 %v4765_v0, %v1743_v36  ;;  %v1878_v36 = vmul.f32 %v4765_v0, %v1763_v44 }
 0x3b5   : > { %v1789_v16 = vpop.f32.mrf.mxu1 }
 0x3b6   : > { %v1964_v47 = vadd.f32 %v4773_v61, %v1887_v8  ;;  %v1888_v21 = vmul.f32 %v4765_v0, %v1789_v16  ;;  %v2184_v8 = vmax.f32 %v4800_v48, %v2013_v45  ;;  %v1953_v16 = vadd.f32 %v4777_v6, %v1876_v51 }
 0x3b7   : > { %v1791_v53 = vpop.f32.mrf.mxu1  ;;  %v1879_v48 = vmul.f32 %v4759_v56, %v1767_v14 }
 0x3b8   : > { %v2028_v40 = vmax.f32 %v1964_v47, 0.0  ;;  %v1965_v43 = vadd.f32 %v4777_v6, %v1888_v21  ;;  %v1889_v3 = vmul.f32 %v4759_v56, %v1791_v53  ;;  %v2016_v47 = vmax.f32 %v1952_v27, 0.0 }
 0x3b9   : > { %v1793_v55 = vpop.f32.mrf.mxu1  ;;  %v1954_v21 = vadd.f32 %v4773_v61, %v1877_v39 }
 0x3ba   : > { %v4918_v49 = vmax.f32 %v2181_v30, %v2028_v40  ;;  %v2029_v25 = vmax.f32 %v1965_v43, 0.0  ;;  %v1966_v32 = vadd.f32 %v4773_v61, %v1889_v3  ;;  %v1890_v20 = vmul.f32 %v4765_v0, %v1793_v55 }
 0x3bb   : > { %v1797_v45 = vpop.f32.mrf.mxu1  ;;  %v2190_v43 = vmax.f32 %v4812_v17, %v2015_v22  ;;  %v2017_v30 = vmax.f32 %v1953_v16, 0.0  ;;  %v1955_v40 = vadd.f32 %v4777_v6, %v1878_v36  ;;  %v2018_v55 = vmax.f32 %v1954_v21, 0.0 }
 0x3bc   : > { %v4925_v15 = vmax.f32 %v2184_v8, %v2029_v25  ;;  %v2030_v51 = vmax.f32 %v1966_v32, 0.0  ;;  %v1967_v44 = vadd.f32 %v4777_v6, %v1890_v20  ;;  %v1891_v53 = vmul.f32 %v4759_v56, %v1797_v45 }
 0x3bd   : > { %v1799_v4 = vpop.f32.mrf.mxu1  ;;  %v2193_v8 = vmax.f32 %v4819_v7, %v2016_v47  ;;  %v1956_v25 = vadd.f32 %v4773_v61, %v1879_v48  ;;  %v1881_v22 = vmul.f32 %v4759_v56, %v4868_v33  ;;  %v2196_v20 = vmax.f32 %v4826_v58, %v2017_v30 }
 0x3be   : > { %v4932_v27 = vmax.f32 %v2187_v60, %v2030_v51  ;;  %v2031_v39 = vmax.f32 %v1967_v44, 0.0  ;;  %v1968_v14 = vadd.f32 %v4773_v61, %v1891_v53  ;;  %v1892_v3 = vmul.f32 %v4765_v0, %v1799_v4 }
 0x3bf   : > { %v1801_v17 = vpop.f32.mrf.mxu1  ;;  %v2019_v60 = vmax.f32 %v1955_v40, 0.0  ;;  %v1957_v45 = vadd.f32 %v4777_v6, %v1880_v12  ;;  %v1882_v7 = vmul.f32 %v4765_v0, %v4870_v28  ;;  %v2199_v44 = vmax.f32 %v4833_v42, %v2018_v55 }
 0x3c0   : > { %v4940_v16 = vmax.f32 %v2190_v43, %v2031_v39  ;;  %v2032_v19 = vmax.f32 %v1968_v14, 0.0  ;;  %v1969_v36 = vadd.f32 %v4777_v6, %v1892_v3  ;;  %v1893_v32 = vmul.f32 %v4759_v56, %v1801_v17 }
 0x3c1   : > { %v1803_v47 = vpop.f32.mrf.mxu1  ;;  %v2020_v53 = vmax.f32 %v1956_v25, 0.0  ;;  %v1958_v43 = vadd.f32 %v4773_v61, %v1881_v22  ;;  %v1883_v58 = vmul.f32 %v4759_v56, %v4872_v9  ;;  %v2202_v39 = vmax.f32 %v4840_v35, %v2019_v60 }
 0x3c2   : > { %v4948_v21 = vmax.f32 %v2193_v8, %v2032_v19  ;;  %v2033_v33 = vmax.f32 %v1969_v36, 0.0  ;;  %v1970_v48 = vadd.f32 %v4773_v61, %v1893_v32  ;;  %v1894_v51 = vmul.f32 %v4765_v0, %v1803_v47 }
 0x3c3   : > { %v1807_v30 = vpop.f32.mrf.mxu1  ;;  %v2021_v14 = vmax.f32 %v1957_v45, 0.0  ;;  %v1959_v3 = vadd.f32 %v4777_v6, %v1882_v7  ;;  %v1884_v42 = vmul.f32 %v4765_v0, %v4876_v57  ;;  %v2205_v17 = vmax.f32 %v4847_v59, %v2020_v53 }
 0x3c4   : > { %v4956_v40 = vmax.f32 %v2196_v20, %v2033_v33  ;;  %v2034_v28 = vmax.f32 %v1970_v48, 0.0  ;;  %v1971_v12 = vadd.f32 %v4777_v6, %v1894_v51  ;;  %v1895_v4 = vmul.f32 %v4759_v56, %v1807_v30 }
 0x3c5   : > { %v1809_v8 = vpop.f32.mrf.mxu1  ;;  %v2022_v19 = vmax.f32 %v1958_v43, 0.0  ;;  %v1960_v36 = vadd.f32 %v4773_v61, %v1883_v58  ;;  %v1885_v35 = vmul.f32 %v4759_v56, %v4879_v31  ;;  %v2208_v7 = vmax.f32 %v4852_v18, %v2021_v14 }
 0x3c6   : > { %v4964_v55 = vmax.f32 %v2199_v44, %v2034_v28  ;;  %v2035_v9 = vmax.f32 %v1971_v12, 0.0  ;;  %v1972_v25 = vadd.f32 %v4773_v61, %v1895_v4  ;;  %v1896_v22 = vmul.f32 %v4765_v0, %v1809_v8 }
 0x3c7   : > { %v1811_v32 = vpop.f32.mrf.mxu1  ;;  %v2023_v47 = vmax.f32 %v1959_v3, 0.0  ;;  %v1961_v33 = vadd.f32 %v4777_v6, %v1884_v42  ;;  %v1886_v59 = vmul.f32 %v4765_v0, %v4886_v29  ;;  %v1947_v43 = vadd.f32 %v4777_v6, %v4908_v13 }
 0x3c8   : > { %v4972_v20 = vmax.f32 %v2202_v39, %v2035_v9  ;;  %v2036_v57 = vmax.f32 %v1972_v25, 0.0  ;;  %v1973_v60 = vadd.f32 %v4777_v6, %v1896_v22  ;;  %v1897_v45 = vmul.f32 %v4759_v56, %v1811_v32 }
 0x3c9   : > { %v1813_v48 = vpop.f32.mrf.mxu1  ;;  %v2211_v58 = vmax.f32 %v4857_v26, %v2022_v19  ;;  %v2024_v18 = vmax.f32 %v1960_v36, 0.0  ;;  %v1962_v30 = vadd.f32 %v4773_v61, %v1885_v35  ;;  %v2010_v14 = vmax.f32 %v4903_v37, 0.0 }
 0x3ca   : > { %v4980_v51 = vmax.f32 %v2205_v17, %v2036_v57  ;;  %v2037_v31 = vmax.f32 %v1973_v60, 0.0  ;;  %v1974_v44 = vadd.f32 %v4773_v61, %v1897_v45  ;;  %v1898_v53 = vmul.f32 %v4765_v0, %v1813_v48 }
 0x3cb   : > { %v1817_v28 = vpop.f32.mrf.mxu1  ;;  %v2214_v3 = vmax.f32 %v4861_v1, %v2023_v47  ;;  %v2025_v42 = vmax.f32 %v1961_v33, 0.0  ;;  %v1963_v13 = vadd.f32 %v4777_v6, %v1886_v59  ;;  %v1994_v17 = vmax.f32 %v4895_v62, 0.0 }
 0x3cc   : > { %v4988_v12 = vmax.f32 %v2208_v7, %v2037_v31  ;;  %v2038_v29 = vmax.f32 %v1974_v44, 0.0  ;;  %v1975_v4 = vadd.f32 %v4777_v6, %v1898_v53  ;;  %v1899_v39 = vmul.f32 %v4759_v56, %v1817_v28 }
 0x3cd   : > { %v1819_v8 = vpop.f32.mrf.mxu1  ;;  %v2011_v19 = vmax.f32 %v1947_v43, 0.0  ;;  %v2217_v36 = vmax.f32 %v4864_v34, %v2024_v18  ;;  %v2026_v35 = vmax.f32 %v1962_v30, 0.0  ;;  %v1995_v45 = vmax.f32 %v4900_v38, 0.0 }
 0x3ce   : > { %v4995_v26 = vmax.f32 %v2211_v58, %v2038_v29  ;;  %v2039_v9 = vmax.f32 %v1975_v4, 0.0  ;;  %v1976_v25 = vadd.f32 %v4773_v61, %v1899_v39  ;;  %v1900_v22 = vmul.f32 %v4765_v0, %v1819_v8 }
 0x3cf   : > { %v1821_v37 = vpop.f32.mrf.mxu1  ;;  %v2222_v7 = vmax.f32 %v1994_v17, %v2010_v14  ;;  %v2220_v47 = vmax.f32 %v4866_v2, %v2025_v42  ;;  %v2027_v33 = vmax.f32 %v1963_v13, 0.0  ;;  %v2225_v44 = vmax.f32 %v1995_v45, %v2011_v19 }
 0x3d0   : > { %v5001_v32 = vmax.f32 %v2214_v3, %v2039_v9  ;;  %v2040_v1 = vmax.f32 %v1976_v25, 0.0  ;;  %v1977_v57 = vadd.f32 %v4777_v6, %v1900_v22  ;;  %v1901_v60 = vmul.f32 %v4759_v56, %v1821_v37 }
 0x3d1   : > { %v1823_v62 = vpop.f32.mrf.mxu1  ;;  %v2223_v53 = vmax.f32 %v2222_v7, %v2026_v35  ;;  %v2226_v58 = vmax.f32 %v2225_v44, %v2027_v33 }
 0x3d2   : > { %v5007_v59 = vmax.f32 %v2217_v36, %v2040_v1  ;;  %v2041_v34 = vmax.f32 %v1977_v57, 0.0  ;;  %v1978_v48 = vadd.f32 %v4773_v61, %v1901_v60  ;;  %v1902_v31 = vmul.f32 %v4765_v0, %v1823_v62 }
 0x3d4   : > { %v5011_v43 = vmax.f32 %v2220_v47, %v2041_v34  ;;  %v2042_v56 = vmax.f32 %v1978_v48, 0.0  ;;  %v1979_v38 = vadd.f32 %v4777_v6, %v1902_v31  ;;  %2231 = sbr.rel (%p3345_p0) target bundleno = 1117 (0x45d), region = 52 }
 0x3d6   : > { %v5014_v18 = vmax.f32 %v2223_v53, %v2042_v56  ;;  %v2043_v2 = vmax.f32 %v1979_v38, 0.0 }
 0x3d8   : > { %v5016_v30 = vmax.f32 %v2226_v58, %v2043_v2 }
 0x3d9   : > { %2234 = vst.msk [vmem:[#allocation2 + $0x40] sm:$0xff] %vm844_vm1, %v4329_v41  ;;  %2232 = vst.msk [vmem:[#allocation2] sm:$0xff] %vm844_vm1, %v4316_v24  ;;  %v5501_v0 = vld [vmem:[#allocation17_spill] sm:$0xff]  ;;  %v5502_v61 = vld [vmem:[#allocation19_spill] sm:$0xff]  ;;  %vm2272_vm2 = vcmask 1048064  }
 0x3da   : > { %2235 = vst.msk [vmem:[#allocation2 + $0x60] sm:$0xff] %vm844_vm1, %v4323_v11  ;;  %2233 = vst.msk [vmem:[#allocation2 + $0x20] sm:$0xff] %vm844_vm1, %v4313_v10  ;;  %v5503_v6 = vld [vmem:[#allocation21_spill] sm:$0xff]  ;;  %v5504_v28 = vld [vmem:[#allocation18_spill] sm:$0xff] }
 0x3db   : > { %2237 = vst.msk [vmem:[#allocation2 + $0xa0] sm:$0xff] %vm844_vm1, %v4335_v46  ;;  %2236 = vst.msk [vmem:[#allocation2 + $0x80] sm:$0xff] %vm844_vm1, %v4338_v50  ;;  %v5505_v29 = vld [vmem:[#allocation20_spill] sm:$0xff]  ;;  %v5506_v4 = vld [vmem:[#allocation9_spill] sm:$0xff] }
 0x3dc   : > { %2239 = vst.msk [vmem:[#allocation2 + $0xe0] sm:$0xff] %vm844_vm1, %v4343_v52  ;;  %2238 = vst.msk [vmem:[#allocation2 + $0xc0] sm:$0xff] %vm844_vm1, %v4346_v54  ;;  %2252 = vrot.lane.b32.xlu1 %v5506_v4, %s3933_s22  ;;  %v5507_v39 = vld [vmem:[#allocation10_spill] sm:$0xff]  ;;  %v5508_v14 = vld [vmem:[#allocation11_spill] sm:$0xff] }
 0x3dd   : > { %2281 = vst [vmem:[#allocation2 + $0x8] sm:$0xff] %v4701_v5  ;;  %2282 = vst [vmem:[#allocation2 + $0x28] sm:$0xff] %v4713_v23  ;;  %2248 = vrot.lane.b32.xlu0 %v5507_v39, %s3933_s22  ;;  %v5509_v3 = vld [vmem:[#allocation12_spill] sm:$0xff]  ;;  %v5511_v13 = vld [vmem:[#allocation14_spill] sm:$0xff] }
 0x3de   : > { %2283 = vst [vmem:[#allocation2 + $0x48] sm:$0xff] %v4696_v63  ;;  %2284 = vst [vmem:[#allocation2 + $0x68] sm:$0xff] %v5501_v0  ;;  %v5510_v42 = vld [vmem:[#allocation16_spill] sm:$0xff]  ;;  %v5512_v8 = vld [vmem:[#allocation15_spill] sm:$0xff] }
 0x3df   : > { %2285 = vst [vmem:[#allocation2 + $0x88] sm:$0xff] %v5502_v61  ;;  %2286 = vst [vmem:[#allocation2 + $0xa8] sm:$0xff] %v5503_v6  ;;  %v5513_v9 = vld [vmem:[#allocation13_spill] sm:$0xff] }
 0x3e0   : > { %2287 = vst [vmem:[#allocation2 + $0xc8] sm:$0xff] %v5504_v28  ;;  %2288 = vst [vmem:[#allocation2 + $0xe8] sm:$0xff] %v5505_v29  ;;  %2254 = vrot.lane.b32.xlu1 %v5508_v14, %s3933_s22 }
 0x3e1   : > { %2289 = vst [vmem:[#allocation2 + $0x10] sm:$0xff] %v4918_v49  ;;  %2290 = vst [vmem:[#allocation2 + $0x18] sm:$0xff] %v4925_v15  ;;  %2250 = vrot.lane.b32.xlu0 %v5509_v3, %s3933_s22 }
 0x3e2   : > { %2291 = vst [vmem:[#allocation2 + $0x30] sm:$0xff] %v4932_v27  ;;  %2292 = vst [vmem:[#allocation2 + $0x38] sm:$0xff] %v4940_v16 }
 0x3e3   : > { %2293 = vst [vmem:[#allocation2 + $0x50] sm:$0xff] %v4948_v21  ;;  %2294 = vst [vmem:[#allocation2 + $0x58] sm:$0xff] %v4956_v40 }
 0x3e4   : > { %2295 = vst [vmem:[#allocation2 + $0x70] sm:$0xff] %v4964_v55  ;;  %2296 = vst [vmem:[#allocation2 + $0x78] sm:$0xff] %v4972_v20  ;;  %2258 = vrot.lane.b32.xlu1 %v5510_v42, %s3933_s22 }
 0x3e5   : > { %2297 = vst [vmem:[#allocation2 + $0x90] sm:$0xff] %v4980_v51  ;;  %2298 = vst [vmem:[#allocation2 + $0x98] sm:$0xff] %v4988_v12  ;;  %2256 = vrot.lane.b32.xlu0 %v5511_v13, %s3933_s22 }
 0x3e6   : > { %2299 = vst [vmem:[#allocation2 + $0xb0] sm:$0xff] %v4995_v26  ;;  %2300 = vst [vmem:[#allocation2 + $0xb8] sm:$0xff] %v5001_v32 }
 0x3e7   : > { %2301 = vst [vmem:[#allocation2 + $0xd0] sm:$0xff] %v5007_v59  ;;  %2302 = vst [vmem:[#allocation2 + $0xd8] sm:$0xff] %v5011_v43 }
 0x3e8   : > { %2303 = vst [vmem:[#allocation2 + $0xf0] sm:$0xff] %v5014_v18  ;;  %2304 = vst [vmem:[#allocation2 + $0xf8] sm:$0xff] %v5016_v30  ;;  %2262 = vrot.lane.b32.xlu1 %v5512_v8, %s3933_s22 }
 0x3e9   : > { %2260 = vrot.lane.b32.xlu0 %v5513_v9, %s3933_s22 }
 0x44e   : > { %v2253_v25 = vpop.permute.xlu1 %2252 }
 0x44f   : > { %v2249_v22 = vpop.permute.xlu0 %2248  ;;  %2275 = vst.msk [vmem:[#allocation2 + $0x40] sm:$0xff] %vm2272_vm2, %v2253_v25 }
 0x450   : > { %2273 = vst.msk [vmem:[#allocation2] sm:$0xff] %vm2272_vm2, %v2249_v22 }
 0x452   : > { %v2255_v17 = vpop.permute.xlu1 %2254 }
 0x453   : > { %v2251_v19 = vpop.permute.xlu0 %2250  ;;  %2276 = vst.msk [vmem:[#allocation2 + $0x60] sm:$0xff] %vm2272_vm2, %v2255_v17 }
 0x454   : > { %2274 = vst.msk [vmem:[#allocation2 + $0x20] sm:$0xff] %vm2272_vm2, %v2251_v19 }
 0x456   : > { %v2259_v36 = vpop.permute.xlu1 %2258 }
 0x457   : > { %v2257_v35 = vpop.permute.xlu0 %2256  ;;  %2278 = vst.msk [vmem:[#allocation2 + $0xa0] sm:$0xff] %vm2272_vm2, %v2259_v36 }
 0x458   : > { %2277 = vst.msk [vmem:[#allocation2 + $0x80] sm:$0xff] %vm2272_vm2, %v2257_v35 }
 0x45a   : > { %v2263_v37 = vpop.permute.xlu1 %2262 }
 0x45b   : > { %v2261_v1 = vpop.permute.xlu0 %2260  ;;  %2280 = vst.msk [vmem:[#allocation2 + $0xe0] sm:$0xff] %vm2272_vm2, %v2263_v37 }
 0x45c   : > { %2279 = vst.msk [vmem:[#allocation2 + $0xc0] sm:$0xff] %vm2272_vm2, %v2261_v1 }
 0x45d PF: > { %p3346_p1 = scmp.eq.s32.totalorder %s3913_s27, 0 }
 0x45e   : > { %s3934_s21 = smov (!%p3346_p1), 64  }
 0x45f   : > { %2308 = sbr.rel (%p3346_p1) target bundleno = 1261 (0x4ed), region = 56 }
 0x464   : > { %v2311_v57 = vld [vmem:[#allocation2 + $0x40] sm:$0xff]  ;;  %v5515_v47 = vld [vmem:[#allocation10_spill] sm:$0xff]  ;;  %v5517_v39 = vld [vmem:[#allocation11_spill] sm:$0xff]  ;;  %vm2381_vm3 = vcmask 1048064  }
 0x465   : > { %v2309_v60 = vld [vmem:[#allocation2] sm:$0xff]  ;;  %2349 = vrot.lane.b32.xlu0 %v5515_v47, %s3934_s21  ;;  %v2319_v33 = vmax.f32 %v2311_v57, %v4329_v41  ;;  %v2390_v0 = vld [vmem:[#allocation2 + $0x8] sm:$0xff]  ;;  %v5519_v3 = vld [vmem:[#allocation19_spill] sm:$0xff] }
 0x466   : > { %v2312_v45 = vld [vmem:[#allocation2 + $0x60] sm:$0xff]  ;;  %v2317_v62 = vmax.f32 %v2309_v60, %v4316_v24  ;;  %v2391_v41 = vld [vmem:[#allocation2 + $0x28] sm:$0xff]  ;;  %v2415_v25 = vld [vmem:[#allocation2 + $0x18] sm:$0xff] }
 0x467   : > { %v5514_v7 = vld [vmem:[#allocation9_spill] sm:$0xff]  ;;  %v2320_v34 = vmax.f32 %v2312_v45, %v4323_v11  ;;  %2327 = vst.msk [vmem:[#allocation2 + $0x40] sm:$0xff] %vm844_vm1, %v2319_v33  ;;  %v2392_v61 = vld [vmem:[#allocation2 + $0x48] sm:$0xff]  ;;  %v2399_v29 = vmax.f32 %v2391_v41, %v4713_v23  ;;  %v5522_v22 = vld [vmem:[#allocation20_spill] sm:$0xff]  ;;  %v2431_v1 = vmax.f32 %v2415_v25, %v4925_v15 }
 0x468   : > { %2353 = vrot.lane.b32.xlu1 %v5514_v7, %s3934_s21  ;;  %v2310_v48 = vld [vmem:[#allocation2 + $0x20] sm:$0xff]  ;;  %2325 = vst.msk [vmem:[#allocation2] sm:$0xff] %vm844_vm1, %v2317_v62  ;;  %v2395_v6 = vld [vmem:[#allocation2 + $0xa8] sm:$0xff]  ;;  %v2416_v19 = vld [vmem:[#allocation2 + $0x30] sm:$0xff] }
 0x469   : > { %v2314_v31 = vld [vmem:[#allocation2 + $0xa0] sm:$0xff]  ;;  %v2318_v53 = vmax.f32 %v2310_v48, %v4313_v10  ;;  %2328 = vst.msk [vmem:[#allocation2 + $0x60] sm:$0xff] %vm844_vm1, %v2320_v34  ;;  %v2393_v10 = vld [vmem:[#allocation2 + $0x68] sm:$0xff]  ;;  %2407 = vst [vmem:[#allocation2 + $0x28] sm:$0xff] %v2399_v29  ;;  %v2432_v7 = vmax.f32 %v2416_v19, %v4932_v27 }
 0x46a   : > { %v2313_v44 = vld [vmem:[#allocation2 + $0x80] sm:$0xff]  ;;  %v2322_v56 = vmax.f32 %v2314_v31, %v4335_v46  ;;  %v2398_v46 = vmax.f32 %v2390_v0, %v4701_v5  ;;  %v2396_v28 = vld [vmem:[#allocation2 + $0xc8] sm:$0xff]  ;;  %v5518_v5 = vld [vmem:[#allocation12_spill] sm:$0xff]  ;;  %2447 = vst [vmem:[#allocation2 + $0x18] sm:$0xff] %v2431_v1 }
 0x46b   : > { %v2321_v38 = vmax.f32 %v2313_v44, %v4338_v50  ;;  %v2316_v58 = vld [vmem:[#allocation2 + $0xe0] sm:$0xff]  ;;  %2326 = vst.msk [vmem:[#allocation2 + $0x20] sm:$0xff] %vm844_vm1, %v2318_v53  ;;  %v2394_v50 = vld [vmem:[#allocation2 + $0x88] sm:$0xff]  ;;  %2351 = vrot.lane.b32.xlu0 %v5518_v5, %s3934_s21  ;;  %v2417_v36 = vld [vmem:[#allocation2 + $0x38] sm:$0xff] }
 0x46c   : > { %v2315_v2 = vld [vmem:[#allocation2 + $0xc0] sm:$0xff]  ;;  %v2324_v24 = vmax.f32 %v2316_v58, %v4343_v52  ;;  %2330 = vst.msk [vmem:[#allocation2 + $0xa0] sm:$0xff] %vm844_vm1, %v2322_v56  ;;  %v2400_v52 = vmax.f32 %v2392_v61, %v4696_v63  ;;  %2355 = vrot.lane.b32.xlu1 %v5517_v39, %s3934_s21  ;;  %v2397_v14 = vld [vmem:[#allocation2 + $0xe8] sm:$0xff]  ;;  %v2402_v42 = vmax.f32 %v2394_v50, %v5519_v3  ;;  %2406 = vst [vmem:[#allocation2 + $0x8] sm:$0xff] %v2398_v46 }
 0x46d   : > { %v2323_v11 = vmax.f32 %v2315_v2, %v4346_v54  ;;  %2329 = vst.msk [vmem:[#allocation2 + $0x80] sm:$0xff] %vm844_vm1, %v2321_v38  ;;  %v5516_v4 = vld [vmem:[#allocation17_spill] sm:$0xff]  ;;  %v5521_v23 = vld [vmem:[#allocation18_spill] sm:$0xff]  ;;  %v2414_v63 = vld [vmem:[#allocation2 + $0x10] sm:$0xff]  ;;  %v2405_v17 = vmax.f32 %v2397_v14, %v5522_v22  ;;  %v2433_v47 = vmax.f32 %v2417_v36, %v4940_v16 }
 0x46e   : > { %v2401_v54 = vmax.f32 %v2393_v10, %v5516_v4  ;;  %2332 = vst.msk [vmem:[#allocation2 + $0xe0] sm:$0xff] %vm844_vm1, %v2324_v24  ;;  %v5520_v13 = vld [vmem:[#allocation21_spill] sm:$0xff]  ;;  %v2404_v9 = vmax.f32 %v2396_v28, %v5521_v23  ;;  %2408 = vst [vmem:[#allocation2 + $0x48] sm:$0xff] %v2400_v52  ;;  %v2418_v35 = vld [vmem:[#allocation2 + $0x50] sm:$0xff]  ;;  %v2430_v37 = vmax.f32 %v2414_v63, %v4918_v49 }
 0x46f   : > { %2331 = vst.msk [vmem:[#allocation2 + $0xc0] sm:$0xff] %vm844_vm1, %v2323_v11  ;;  %v2403_v8 = vmax.f32 %v2395_v6, %v5520_v13  ;;  %2410 = vst [vmem:[#allocation2 + $0x88] sm:$0xff] %v2402_v42  ;;  %v2419_v57 = vld [vmem:[#allocation2 + $0x58] sm:$0xff]  ;;  %v2420_v60 = vld [vmem:[#allocation2 + $0x70] sm:$0xff]  ;;  %v2434_v33 = vmax.f32 %v2418_v35, %v4948_v21 }
 0x470   : > { %2409 = vst [vmem:[#allocation2 + $0x68] sm:$0xff] %v2401_v54  ;;  %2412 = vst [vmem:[#allocation2 + $0xc8] sm:$0xff] %v2404_v9  ;;  %v2421_v45 = vld [vmem:[#allocation2 + $0x78] sm:$0xff]  ;;  %v2422_v62 = vld [vmem:[#allocation2 + $0x90] sm:$0xff]  ;;  %v2435_v49 = vmax.f32 %v2419_v57, %v4956_v40  ;;  %v2436_v15 = vmax.f32 %v2420_v60, %v4964_v55 }
 0x471   : > { %2411 = vst [vmem:[#allocation2 + $0xa8] sm:$0xff] %v2403_v8  ;;  %2413 = vst [vmem:[#allocation2 + $0xe8] sm:$0xff] %v2405_v17  ;;  %v2423_v34 = vld [vmem:[#allocation2 + $0x98] sm:$0xff]  ;;  %v2424_v48 = vld [vmem:[#allocation2 + $0xb0] sm:$0xff]  ;;  %v2437_v31 = vmax.f32 %v2421_v45, %v4972_v20  ;;  %v2438_v56 = vmax.f32 %v2422_v62, %v4980_v51 }
 0x472   : > { %2446 = vst [vmem:[#allocation2 + $0x10] sm:$0xff] %v2430_v37  ;;  %v5523_v44 = vld [vmem:[#allocation16_spill] sm:$0xff]  ;;  %v5524_v27 = vld [vmem:[#allocation14_spill] sm:$0xff]  ;;  %v2426_v21 = vld [vmem:[#allocation2 + $0xd0] sm:$0xff]  ;;  %v2439_v38 = vmax.f32 %v2423_v34, %v4988_v12  ;;  %v2440_v40 = vmax.f32 %v2424_v48, %v4995_v26 }
 0x473   : > { %2359 = vrot.lane.b32.xlu1 %v5523_v44, %s3934_s21  ;;  %2357 = vrot.lane.b32.xlu0 %v5524_v27, %s3934_s21  ;;  %v2425_v16 = vld [vmem:[#allocation2 + $0xb8] sm:$0xff]  ;;  %2448 = vst [vmem:[#allocation2 + $0x30] sm:$0xff] %v2432_v7  ;;  %2449 = vst [vmem:[#allocation2 + $0x38] sm:$0xff] %v2433_v47  ;;  %v2442_v20 = vmax.f32 %v2426_v21, %v5007_v59  ;;  %v2428_v51 = vld [vmem:[#allocation2 + $0xf0] sm:$0xff] }
 0x474   : > { %v2427_v53 = vld [vmem:[#allocation2 + $0xd8] sm:$0xff]  ;;  %2450 = vst [vmem:[#allocation2 + $0x50] sm:$0xff] %v2434_v33  ;;  %v2441_v55 = vmax.f32 %v2425_v16, %v5001_v32  ;;  %2451 = vst [vmem:[#allocation2 + $0x58] sm:$0xff] %v2435_v49  ;;  %v5525_v12 = vld [vmem:[#allocation15_spill] sm:$0xff]  ;;  %v2444_v59 = vmax.f32 %v2428_v51, %v5014_v18 }
 0x475   : > { %v2443_v58 = vmax.f32 %v2427_v53, %v5011_v43  ;;  %2452 = vst [vmem:[#allocation2 + $0x70] sm:$0xff] %v2436_v15  ;;  %2453 = vst [vmem:[#allocation2 + $0x78] sm:$0xff] %v2437_v31  ;;  %v5526_v26 = vld [vmem:[#allocation13_spill] sm:$0xff]  ;;  %v2429_v32 = vld [vmem:[#allocation2 + $0xf8] sm:$0xff] }
 0x476   : > { %2454 = vst [vmem:[#allocation2 + $0x90] sm:$0xff] %v2438_v56  ;;  %2455 = vst [vmem:[#allocation2 + $0x98] sm:$0xff] %v2439_v38  ;;  %v2445_v43 = vmax.f32 %v2429_v32, %v5016_v30  ;;  %v2335_v2 = vld [vmem:[#allocation2 + $0x40] sm:$0xff] }
 0x477   : > { %2456 = vst [vmem:[#allocation2 + $0xb0] sm:$0xff] %v2440_v40  ;;  %2457 = vst [vmem:[#allocation2 + $0xb8] sm:$0xff] %v2441_v55  ;;  %2363 = vrot.lane.b32.xlu1 %v5525_v12, %s3934_s21  ;;  %2361 = vrot.lane.b32.xlu0 %v5526_v26, %s3934_s21  ;;  %v2333_v0 = vld [vmem:[#allocation2] sm:$0xff] }
 0x478   : > { %2458 = vst [vmem:[#allocation2 + $0xd0] sm:$0xff] %v2442_v20  ;;  %2459 = vst [vmem:[#allocation2 + $0xd8] sm:$0xff] %v2443_v58  ;;  %v2336_v10 = vld [vmem:[#allocation2 + $0x60] sm:$0xff] }
 0x479   : > { %2460 = vst [vmem:[#allocation2 + $0xf0] sm:$0xff] %v2444_v59  ;;  %2461 = vst [vmem:[#allocation2 + $0xf8] sm:$0xff] %v2445_v43  ;;  %v2334_v46 = vld [vmem:[#allocation2 + $0x20] sm:$0xff] }
 0x47a   : > { %v2338_v30 = vld [vmem:[#allocation2 + $0xa0] sm:$0xff] }
 0x47b   : > { %v2337_v29 = vld [vmem:[#allocation2 + $0x80] sm:$0xff] }
 0x47c   : > { %v2340_v5 = vld [vmem:[#allocation2 + $0xe0] sm:$0xff] }
 0x47d   : > { %v2339_v14 = vld [vmem:[#allocation2 + $0xc0] sm:$0xff] }
 0x4d7   : > { %v2350_v11 = vpop.permute.xlu0 %2349 }
 0x4d8   : > { %v2373_v61 = vmax.f32 %v2333_v0, %v2350_v11 }
 0x4da   : > { %v2354_v24 = vpop.permute.xlu1 %2353  ;;  %2382 = vst.msk [vmem:[#allocation2] sm:$0xff] %vm2381_vm3, %v2373_v61 }
 0x4db   : > { %v2375_v41 = vmax.f32 %v2335_v2, %v2354_v24 }
 0x4dd   : > { %2384 = vst.msk [vmem:[#allocation2 + $0x40] sm:$0xff] %vm2381_vm3, %v2375_v41  ;;  %v2352_v6 = vpop.permute.xlu0 %2351 }
 0x4de   : > { %v2356_v50 = vpop.permute.xlu1 %2355  ;;  %v2374_v28 = vmax.f32 %v2334_v46, %v2352_v6 }
 0x4df   : > { %v2376_v18 = vmax.f32 %v2336_v10, %v2356_v50 }
 0x4e0   : > { %2383 = vst.msk [vmem:[#allocation2 + $0x20] sm:$0xff] %vm2381_vm3, %v2374_v28 }
 0x4e1   : > { %2385 = vst.msk [vmem:[#allocation2 + $0x60] sm:$0xff] %vm2381_vm3, %v2376_v18 }
 0x4e5   : > { %v2360_v52 = vpop.permute.xlu1 %2359  ;;  %v2358_v4 = vpop.permute.xlu0 %2357 }
 0x4e6   : > { %v2378_v54 = vmax.f32 %v2338_v30, %v2360_v52  ;;  %v2377_v39 = vmax.f32 %v2337_v29, %v2358_v4 }
 0x4e8   : > { %2387 = vst.msk [vmem:[#allocation2 + $0xa0] sm:$0xff] %vm2381_vm3, %v2378_v54  ;;  %2386 = vst.msk [vmem:[#allocation2 + $0x80] sm:$0xff] %vm2381_vm3, %v2377_v39 }
 0x4e9   : > { %v2364_v3 = vpop.permute.xlu1 %2363  ;;  %v2362_v42 = vpop.permute.xlu0 %2361 }
 0x4ea   : > { %v2380_v13 = vmax.f32 %v2340_v5, %v2364_v3  ;;  %v2379_v8 = vmax.f32 %v2339_v14, %v2362_v42 }
 0x4ec   : > { %2389 = vst.msk [vmem:[#allocation2 + $0xe0] sm:$0xff] %vm2381_vm3, %v2380_v13  ;;  %2388 = vst.msk [vmem:[#allocation2 + $0xc0] sm:$0xff] %vm2381_vm3, %v2379_v8 }
 0x4ed PF: > { %p3347_p2 = scmp.ne.s32.totalorder %s3913_s27, 4 }
 0x4ef   : > { %2465 = sbr.rel (%p3347_p2) target bundleno = 1566 (0x61e), region = 60 }
 0x4f4   : > { %v3741_v23 = vld [vmem:[%s5469_s5 + $0x74] ss:$8 sps:$4 sm:$0xff]   ;;  %v3745_v63 = vld [vmem:[%s5469_s5 + $0x70] ss:$8 sps:$4 sm:$0xff]   ;;  %v3747_v22 = vld [vmem:[%s5469_s5 + $0x64] ss:$8 sps:$4 sm:$0xff]  }
 0x4f5   : > { %v3743_v9 = vld [vmem:[%s5469_s5 + $0x174] ss:$8 sps:$4 sm:$0xff]   ;;  %2898 = vmatprep.subr.bf16.mxu0 %v3741_v23  ;;  %v3746_v25 = vld [vmem:[%s5469_s5 + $0x170] ss:$8 sps:$4 sm:$0xff]   ;;  %v3749_v17 = vld [vmem:[%s5469_s5 + $0x164] ss:$8 sps:$4 sm:$0xff]  }
 0x4f6   : > { %2971 = vmatprep.subr.bf16.mxu1 %v3743_v9  ;;  %2899 = vmatpush1.bf16.msra.mxu0 %v3745_v63  ;;  %v3751_v19 = vld [vmem:[%s5469_s5 + $0x60] ss:$8 sps:$4 sm:$0xff]   ;;  %v3753_v35 = vld [vmem:[%s5469_s5 + $0x54] ss:$8 sps:$4 sm:$0xff]   ;;  %v3757_v1 = vld [vmem:[%s5469_s5 + $0x50] ss:$8 sps:$4 sm:$0xff]  }
 0x4f7   : > { %2972 = vmatpush1.bf16.msra.mxu1 %v3746_v25  ;;  %2900 = vmatprep.subr.bf16.mxu0 %v3747_v22  ;;  %v3752_v36 = vld [vmem:[%s5469_s5 + $0x160] ss:$8 sps:$4 sm:$0xff]   ;;  %v3755_v37 = vld [vmem:[%s5469_s5 + $0x154] ss:$8 sps:$4 sm:$0xff]   ;;  %v3758_v57 = vld [vmem:[%s5469_s5 + $0x150] ss:$8 sps:$4 sm:$0xff]  }
 0x4f8   : > { %2973 = vmatprep.subr.bf16.mxu1 %v3749_v17  ;;  %v3759_v60 = vld [vmem:[%s5469_s5 + $0x44] ss:$8 sps:$4 sm:$0xff]   ;;  %v3763_v7 = vld [vmem:[%s5469_s5 + $0x40] ss:$8 sps:$4 sm:$0xff]   ;;  %v3765_v33 = vld [vmem:[%s5469_s5 + $0x34] ss:$8 sps:$4 sm:$0xff]  }
 0x4f9   : > { %v3761_v45 = vld [vmem:[%s5469_s5 + $0x144] ss:$8 sps:$4 sm:$0xff]   ;;  %v3764_v47 = vld [vmem:[%s5469_s5 + $0x140] ss:$8 sps:$4 sm:$0xff]   ;;  %v3767_v62 = vld [vmem:[%s5469_s5 + $0x134] ss:$8 sps:$4 sm:$0xff]  }
 0x4fa   : > { %2901 = vmatpush1.bf16.msra.mxu0 %v3751_v19  ;;  %v3769_v34 = vld [vmem:[%s5469_s5 + $0x30] ss:$8 sps:$4 sm:$0xff]   ;;  %v3771_v49 = vld [vmem:[%s5469_s5 + $0x24] ss:$8 sps:$4 sm:$0xff]   ;;  %v3775_v31 = vld [vmem:[%s5469_s5 + $0x20] ss:$8 sps:$4 sm:$0xff]  }
 0x4fb   : > { %2974 = vmatpush1.bf16.msra.mxu1 %v3752_v36  ;;  %2902 = vmatprep.subr.bf16.mxu0 %v3753_v35  ;;  %v3770_v48 = vld [vmem:[%s5469_s5 + $0x130] ss:$8 sps:$4 sm:$0xff]   ;;  %v3773_v15 = vld [vmem:[%s5469_s5 + $0x124] ss:$8 sps:$4 sm:$0xff]   ;;  %v3776_v44 = vld [vmem:[%s5469_s5 + $0x120] ss:$8 sps:$4 sm:$0xff]  }
 0x4fc   : > { %2975 = vmatprep.subr.bf16.mxu1 %v3755_v37  ;;  %v3777_v27 = vld [vmem:[%s5469_s5 + $0x14] ss:$8 sps:$4 sm:$0xff]   ;;  %v3781_v21 = vld [vmem:[%s5469_s5 + $0x10] ss:$8 sps:$4 sm:$0xff]   ;;  %v3783_v56 = vld [vmem:[%s5469_s5 + $0x4] ss:$8 sps:$4 sm:$0xff]  }
 0x4fd   : > { %v3779_v16 = vld [vmem:[%s5469_s5 + $0x114] ss:$8 sps:$4 sm:$0xff]   ;;  %v3782_v53 = vld [vmem:[%s5469_s5 + $0x110] ss:$8 sps:$4 sm:$0xff]   ;;  %v3785_v38 = vld [vmem:[%s5469_s5 + $0x104] ss:$8 sps:$4 sm:$0xff]  }
 0x4fe   : > { %2903 = vmatpush1.bf16.msra.mxu0 %v3757_v1  ;;  %v3787_v40 = vld [vmem:[%s5469_s5] ss:$8 sps:$4 sm:$0xff]   ;;  %v3789_v20 = vld [vmem:[%s5469_s5 + $0xf4] ss:$8 sps:$4 sm:$0xff]   ;;  %v3793_v51 = vld [vmem:[%s5469_s5 + $0xf0] ss:$8 sps:$4 sm:$0xff]  }
 0x4ff   : > { %2976 = vmatpush1.bf16.msra.mxu1 %v3758_v57  ;;  %2904 = vmatprep.subr.bf16.mxu0 %v3759_v60  ;;  %v3788_v55 = vld [vmem:[%s5469_s5 + $0x100] ss:$8 sps:$4 sm:$0xff]   ;;  %v3791_v58 = vld [vmem:[%s5469_s5 + $0x1f4] ss:$8 sps:$4 sm:$0xff]   ;;  %v3794_v12 = vld [vmem:[%s5469_s5 + $0x1f0] ss:$8 sps:$4 sm:$0xff]  }
 0x500   : > { %2977 = vmatprep.subr.bf16.mxu1 %v3761_v45  ;;  %v3795_v26 = vld [vmem:[%s5469_s5 + $0xe4] ss:$8 sps:$4 sm:$0xff]   ;;  %v3799_v59 = vld [vmem:[%s5469_s5 + $0xe0] ss:$8 sps:$4 sm:$0xff]   ;;  %v3801_v2 = vld [vmem:[%s5469_s5 + $0xd4] ss:$8 sps:$4 sm:$0xff]  }
 0x501   : > { %v3797_v32 = vld [vmem:[%s5469_s5 + $0x1e4] ss:$8 sps:$4 sm:$0xff]   ;;  %v3800_v43 = vld [vmem:[%s5469_s5 + $0x1e0] ss:$8 sps:$4 sm:$0xff]   ;;  %v3803_v0 = vld [vmem:[%s5469_s5 + $0x1d4] ss:$8 sps:$4 sm:$0xff]  }
 0x502   : > { %2905 = vmatpush1.bf16.msra.mxu0 %v3763_v7  ;;  %v3805_v24 = vld [vmem:[%s5469_s5 + $0xd0] ss:$8 sps:$4 sm:$0xff]   ;;  %v3807_v41 = vld [vmem:[%s5469_s5 + $0xc4] ss:$8 sps:$4 sm:$0xff]   ;;  %v3811_v18 = vld [vmem:[%s5469_s5 + $0xc0] ss:$8 sps:$4 sm:$0xff]  }
 0x503   : > { %2978 = vmatpush1.bf16.msra.mxu1 %v3764_v47  ;;  %2906 = vmatprep.subr.bf16.mxu0 %v3765_v33  ;;  %v3806_v11 = vld [vmem:[%s5469_s5 + $0x1d0] ss:$8 sps:$4 sm:$0xff]   ;;  %v3809_v61 = vld [vmem:[%s5469_s5 + $0x1c4] ss:$8 sps:$4 sm:$0xff]   ;;  %v3812_v28 = vld [vmem:[%s5469_s5 + $0x1c0] ss:$8 sps:$4 sm:$0xff]  }
 0x504   : > { %2979 = vmatprep.subr.bf16.mxu1 %v3767_v62  ;;  %v2467_v10 = vld [vmem:[#allocation2 + $0x8] sm:$0xff]  ;;  %v2469_v50 = vld [vmem:[#allocation2 + $0x18] sm:$0xff]  ;;  %v2466_v19 = vld [vmem:[#allocation2] sm:$0xff] }
 0x505   : > { %v2471_v46 = vld [vmem:[#allocation2 + $0x28] sm:$0xff]  ;;  %v2473_v6 = vld [vmem:[#allocation2 + $0x38] sm:$0xff]  ;;  %v2470_v36 = vld [vmem:[#allocation2 + $0x20] sm:$0xff] }
 0x506   : > { %2907 = vmatpush1.bf16.msra.mxu0 %v3769_v34  ;;  %v2499_v30 = vpack.c.bf16 %v2471_v46, %v2467_v10  ;;  %v2501_v29 = vpack.c.bf16 %v2473_v6, %v2469_v50  ;;  %v3813_v52 = vld [vmem:[%s5469_s5 + $0xb4] ss:$8 sps:$4 sm:$0xff]   ;;  %v3817_v54 = vld [vmem:[%s5469_s5 + $0xb0] ss:$8 sps:$4 sm:$0xff]   ;;  %v3819_v5 = vld [vmem:[%s5469_s5 + $0xa4] ss:$8 sps:$4 sm:$0xff]   ;;  %v2498_v7 = vpack.c.bf16 %v2470_v36, %v2466_v19 }
 0x507   : > { %2980 = vmatpush1.bf16.msra.mxu1 %v3770_v48  ;;  %2908 = vmatprep.subr.bf16.mxu0 %v3771_v49  ;;  %v3815_v4 = vld [vmem:[%s5469_s5 + $0x1b4] ss:$8 sps:$4 sm:$0xff]   ;;  %v3818_v39 = vld [vmem:[%s5469_s5 + $0x1b0] ss:$8 sps:$4 sm:$0xff]   ;;  %v3821_v14 = vld [vmem:[%s5469_s5 + $0x1a4] ss:$8 sps:$4 sm:$0xff]  }
 0x508   : > { %2981 = vmatprep.subr.bf16.mxu1 %v3773_v15  ;;  %2930 = vmatprep.mubr.bf16.mxu0 %v2499_v30  ;;  %v3823_v3 = vld [vmem:[%s5469_s5 + $0xa0] ss:$8 sps:$4 sm:$0xff]   ;;  %v3825_v13 = vld [vmem:[%s5469_s5 + $0x94] ss:$8 sps:$4 sm:$0xff]   ;;  %v3829_v23 = vld [vmem:[%s5469_s5 + $0x90] ss:$8 sps:$4 sm:$0xff]  }
 0x509   : > { %3003 = vmatprep.mubr.bf16.mxu1 %v2501_v29  ;;  %v3824_v42 = vld [vmem:[%s5469_s5 + $0x1a0] ss:$8 sps:$4 sm:$0xff]   ;;  %v3827_v8 = vld [vmem:[%s5469_s5 + $0x194] ss:$8 sps:$4 sm:$0xff]   ;;  %v3830_v9 = vld [vmem:[%s5469_s5 + $0x190] ss:$8 sps:$4 sm:$0xff]  }
 0x50a   : > { %2909 = vmatpush1.bf16.msra.mxu0 %v3775_v31  ;;  %v3831_v63 = vld [vmem:[%s5469_s5 + $0x84] ss:$8 sps:$4 sm:$0xff]   ;;  %v3835_v22 = vld [vmem:[%s5469_s5 + $0x80] ss:$8 sps:$4 sm:$0xff]   ;;  %v2468_v35 = vld [vmem:[#allocation2 + $0x10] sm:$0xff] }
 0x50b   : > { %2982 = vmatpush1.bf16.msra.mxu1 %v3776_v44  ;;  %2910 = vmatprep.subr.bf16.mxu0 %v3777_v27  ;;  %v3833_v25 = vld [vmem:[%s5469_s5 + $0x184] ss:$8 sps:$4 sm:$0xff]   ;;  %v3836_v17 = vld [vmem:[%s5469_s5 + $0x180] ss:$8 sps:$4 sm:$0xff]   ;;  %v2472_v37 = vld [vmem:[#allocation2 + $0x30] sm:$0xff] }
 0x50c   : > { %2983 = vmatprep.subr.bf16.mxu1 %v3779_v16  ;;  %v2475_v1 = vld [vmem:[#allocation2 + $0x48] sm:$0xff]  ;;  %v2477_v60 = vld [vmem:[#allocation2 + $0x58] sm:$0xff]  ;;  %v2500_v47 = vpack.c.bf16 %v2472_v37, %v2468_v35  ;;  %v2474_v34 = vld [vmem:[#allocation2 + $0x40] sm:$0xff] }
 0x50d   : > { %v2479_v57 = vld [vmem:[#allocation2 + $0x68] sm:$0xff]  ;;  %v2481_v45 = vld [vmem:[#allocation2 + $0x78] sm:$0xff]  ;;  %v2478_v48 = vld [vmem:[#allocation2 + $0x60] sm:$0xff] }
 0x50e   : > { %2911 = vmatpush1.bf16.msra.mxu0 %v3781_v21  ;;  %v2503_v33 = vpack.c.bf16 %v2479_v57, %v2475_v1  ;;  %v2505_v62 = vpack.c.bf16 %v2481_v45, %v2477_v60  ;;  %v2476_v49 = vld [vmem:[#allocation2 + $0x50] sm:$0xff]  ;;  %v2483_v31 = vld [vmem:[#allocation2 + $0x88] sm:$0xff]  ;;  %v2485_v27 = vld [vmem:[#allocation2 + $0x98] sm:$0xff]  ;;  %v2502_v21 = vpack.c.bf16 %v2478_v48, %v2474_v34 }
 0x50f   : > { %2984 = vmatpush1.bf16.msra.mxu1 %v3782_v53  ;;  %2912 = vmatprep.subr.bf16.mxu0 %v3783_v56  ;;  %v2480_v15 = vld [vmem:[#allocation2 + $0x70] sm:$0xff]  ;;  %v2487_v44 = vld [vmem:[#allocation2 + $0xa8] sm:$0xff]  ;;  %v2489_v16 = vld [vmem:[#allocation2 + $0xb8] sm:$0xff] }
 0x510   : > { %2985 = vmatprep.subr.bf16.mxu1 %v3785_v38  ;;  %v2504_v53 = vpack.c.bf16 %v2480_v15, %v2476_v49  ;;  %v2507_v56 = vpack.c.bf16 %v2487_v44, %v2483_v31  ;;  %v2509_v38 = vpack.c.bf16 %v2489_v16, %v2485_v27  ;;  %v3412_v50 = vld [vmem:[%s5470_s6 + $0x8] ss:$2 sm:$0x3]  ;;  %v3413_v6 = vld [vmem:[%s5470_s6 + $0x9] ss:$2 sm:$0x3] }
 0x512   : > { %2913 = vmatpush1.bf16.msra.mxu0 %v3787_v40  ;;  %v2482_v40 = vld [vmem:[#allocation2 + $0x80] sm:$0xff] }
 0x513   : > { %2986 = vmatpush1.bf16.msra.mxu1 %v3788_v55  ;;  %2914 = vmatprep.subr.bf16.mxu0 %v3789_v20  ;;  %v2486_v55 = vld [vmem:[#allocation2 + $0xa0] sm:$0xff]  ;;  %v2484_v20 = vld [vmem:[#allocation2 + $0x90] sm:$0xff] }
 0x514   : > { %2987 = vmatprep.subr.bf16.mxu1 %v3791_v58  ;;  %v2488_v58 = vld [vmem:[#allocation2 + $0xb0] sm:$0xff] }
 0x516   : > { %2915 = vmatpush2.bf16.msra.mxu0 %v3793_v51  ;;  %v2491_v51 = vld [vmem:[#allocation2 + $0xc8] sm:$0xff] }
 0x517   : > { %2988 = vmatpush2.bf16.msra.mxu1 %v3794_v12  ;;  %2916 = vmatprep.subr.bf16.mxu0 %v3795_v26  ;;  %v2495_v12 = vld [vmem:[#allocation2 + $0xe8] sm:$0xff]  ;;  %v2493_v26 = vld [vmem:[#allocation2 + $0xd8] sm:$0xff] }
 0x518   : > { %2989 = vmatprep.subr.bf16.mxu1 %v3797_v32  ;;  %v2497_v32 = vld [vmem:[#allocation2 + $0xf8] sm:$0xff] }
 0x51a   : > { %2917 = vmatpush2.bf16.msra.mxu0 %v3799_v59  ;;  %v2506_v59 = vpack.c.bf16 %v2486_v55, %v2482_v40 }
 0x51b   : > { %2990 = vmatpush2.bf16.msra.mxu1 %v3800_v43  ;;  %2918 = vmatprep.subr.bf16.mxu0 %v3801_v2  ;;  %v2508_v43 = vpack.c.bf16 %v2488_v58, %v2484_v20  ;;  %v2511_v2 = vpack.c.bf16 %v2495_v12, %v2491_v51 }
 0x51c   : > { %2991 = vmatprep.subr.bf16.mxu1 %v3803_v0  ;;  %v2513_v0 = vpack.c.bf16 %v2497_v32, %v2493_v26 }
 0x51e   : > { %2919 = vmatpush2.bf16.msra.mxu0 %v3805_v24  ;;  %v2490_v24 = vld [vmem:[#allocation2 + $0xc0] sm:$0xff] }
 0x51f   : > { %2992 = vmatpush2.bf16.msra.mxu1 %v3806_v11  ;;  %2920 = vmatprep.subr.bf16.mxu0 %v3807_v41  ;;  %v2494_v11 = vld [vmem:[#allocation2 + $0xe0] sm:$0xff]  ;;  %v2492_v41 = vld [vmem:[#allocation2 + $0xd0] sm:$0xff] }
 0x520   : > { %2993 = vmatprep.subr.bf16.mxu1 %v3809_v61  ;;  %v2496_v61 = vld [vmem:[#allocation2 + $0xf0] sm:$0xff]  ;;  %v2510_v10 = vpack.c.bf16 %v2494_v11, %v2490_v24 }
 0x521   : > { %v2512_v46 = vpack.c.bf16 %v2496_v61, %v2492_v41 }
 0x522   : > { %2921 = vmatpush2.bf16.msra.mxu0 %v3811_v18  ;;  %v5527_v18 = vld [vmem:[#allocation22_spill] sm:$0xff] }
 0x523   : > { %2994 = vmatpush2.bf16.msra.mxu1 %v3812_v28  ;;  %2922 = vmatprep.subr.bf16.mxu0 %v3813_v52  ;;  %v5343_v28 = vrot.slane %v3412_v50, %v5527_v18 }
 0x524   : > { %2995 = vmatprep.subr.bf16.mxu1 %v3815_v4  ;;  %v5346_v4 = vrot.slane %v3413_v6, %v5527_v18 }
 0x526   : > { %2923 = vmatpush2.bf16.msra.mxu0 %v3817_v54  ;;  %v5528_v54 = vld [vmem:[#allocation23_spill] sm:$0xff] }
 0x527   : > { %2996 = vmatpush2.bf16.msra.mxu1 %v3818_v39  ;;  %2924 = vmatprep.subr.bf16.mxu0 %v3819_v5  ;;  %v5349_v39 = vrot.slane %v3412_v50, %v5528_v54 }
 0x528   : > { %2997 = vmatprep.subr.bf16.mxu1 %v3821_v14 }
 0x52a   : > { %2925 = vmatpush2.bf16.msra.mxu0 %v3823_v3 }
 0x52b   : > { %2998 = vmatpush2.bf16.msra.mxu1 %v3824_v42  ;;  %2926 = vmatprep.subr.bf16.mxu0 %v3825_v13  ;;  %v5353_v13 = vrot.slane %v3413_v6, %v5528_v54 }
 0x52c   : > { %2999 = vmatprep.subr.bf16.mxu1 %v3827_v8 }
 0x52e   : > { %2927 = vmatpush2.bf16.msra.mxu0 %v3829_v23 }
 0x52f   : > { %3000 = vmatpush2.bf16.msra.mxu1 %v3830_v9  ;;  %2928 = vmatprep.subr.bf16.mxu0 %v3831_v63 }
 0x530   : > { %3001 = vmatprep.subr.bf16.mxu1 %v3833_v25 }
 0x532   : > { %2929 = vmatpush2.bf16.msra.mxu0 %v3835_v22 }
 0x533   : > { %3002 = vmatpush2.bf16.msra.mxu1 %v3836_v17 }
 0x535   : > { %2931 = vmatmul.mubr.bf16.vlgmr.msra.gmra.mxu0 %v2498_v7 }
 0x536   : > { %3004 = vmatmul.mubr.bf16.vlgmr.msra.gmra.mxu1 %v2500_v47  ;;  %2940 = vmatprep.mubr.bf16.mxu0 %v2503_v33 }
 0x537   : > { %3013 = vmatprep.mubr.bf16.mxu1 %v2505_v62 }
 0x53d   : > { %2941 = vmatmul.mubr.bf16.gmra.mxu0 %v2502_v21 }
 0x53e   : > { %3014 = vmatmul.mubr.bf16.gmra.mxu1 %v2504_v53  ;;  %2950 = vmatprep.mubr.bf16.mxu0 %v2507_v56 }
 0x53f   : > { %3023 = vmatprep.mubr.bf16.mxu1 %v2509_v38 }
 0x545   : > { %2951 = vmatmul.mubr.bf16.gmra.mxu0 %v2506_v59 }
 0x546   : > { %3024 = vmatmul.mubr.bf16.gmra.mxu1 %v2508_v43  ;;  %2960 = vmatprep.mubr.bf16.mxu0 %v2511_v2 }
 0x547   : > { %3033 = vmatprep.mubr.bf16.mxu1 %v2513_v0 }
 0x54d   : > { %2961 = vmatmul.mubr.bf16.gmra.mxu0 %v2510_v10 }
 0x54e   : > { %3034 = vmatmul.mubr.bf16.gmra.mxu1 %v2512_v46 }
 0x5f5   : > { %v2932_v30 = vpop.f32.mrf.mxu0 }
 0x5f6   : > { %v3005_v29 = vpop.f32.mrf.mxu1 }
 0x5f7   : > { %v3006_v52 = vadd.f32 %v3005_v29, %v2932_v30  ;;  %v2934_v5 = vpop.f32.mrf.mxu0 }
 0x5f8   : > { %v3007_v14 = vpop.f32.mrf.mxu1 }
 0x5f9   : > { %v3057_v3 = vmul.f32 %v5343_v28, %v3006_v52  ;;  %v3008_v42 = vadd.f32 %v3007_v14, %v2934_v5  ;;  %v2936_v8 = vpop.f32.mrf.mxu0 }
 0x5fa   : > { %v3009_v23 = vpop.f32.mrf.mxu1 }
 0x5fb   : > { %v3086_v9 = vadd.f32 %v5346_v4, %v3057_v3  ;;  %v3058_v63 = vmul.f32 %v5349_v39, %v3008_v42  ;;  %v3010_v25 = vadd.f32 %v3009_v23, %v2936_v8  ;;  %v2938_v22 = vpop.f32.mrf.mxu0 }
 0x5fc   : > { %v3011_v17 = vpop.f32.mrf.mxu1 }
 0x5fd   : > { %v3102_v19 = vmax.f32 %v3086_v9, 0.0  ;;  %v3087_v36 = vadd.f32 %v5353_v13, %v3058_v63  ;;  %v3059_v35 = vmul.f32 %v5343_v28, %v3010_v25  ;;  %v3012_v37 = vadd.f32 %v3011_v17, %v2938_v22  ;;  %v2942_v1 = vpop.f32.mrf.mxu0 }
 0x5fe   : > { %v3015_v57 = vpop.f32.mrf.mxu1 }
 0x5ff   : > { %3118 = vst [vmem:[%s5019_s12] sm:$0xff] %v3102_v19  ;;  %v3103_v60 = vmax.f32 %v3087_v36, 0.0  ;;  %v3088_v45 = vadd.f32 %v5346_v4, %v3059_v35  ;;  %v3060_v7 = vmul.f32 %v5349_v39, %v3012_v37  ;;  %v3016_v47 = vadd.f32 %v3015_v57, %v2942_v1  ;;  %v2944_v33 = vpop.f32.mrf.mxu0 }
 0x600   : > { %v3017_v62 = vpop.f32.mrf.mxu1 }
 0x601   : > { %3119 = vst [vmem:[%s5019_s12 + $0x8] sm:$0xff] %v3103_v60  ;;  %v3104_v34 = vmax.f32 %v3088_v45, 0.0  ;;  %v3089_v48 = vadd.f32 %v5353_v13, %v3060_v7  ;;  %v3061_v49 = vmul.f32 %v5343_v28, %v3016_v47  ;;  %v3018_v15 = vadd.f32 %v3017_v62, %v2944_v33  ;;  %v2946_v31 = vpop.f32.mrf.mxu0 }
 0x602   : > { %v3019_v44 = vpop.f32.mrf.mxu1 }
 0x603   : > { %3120 = vst [vmem:[%s5019_s12 + $0x10] sm:$0xff] %v3104_v34  ;;  %v3105_v27 = vmax.f32 %v3089_v48, 0.0  ;;  %v3090_v16 = vadd.f32 %v5346_v4, %v3061_v49  ;;  %v3062_v21 = vmul.f32 %v5349_v39, %v3018_v15  ;;  %v3020_v53 = vadd.f32 %v3019_v44, %v2946_v31  ;;  %v2948_v56 = vpop.f32.mrf.mxu0 }
 0x604   : > { %v3021_v38 = vpop.f32.mrf.mxu1 }
 0x605   : > { %3121 = vst [vmem:[%s5019_s12 + $0x18] sm:$0xff] %v3105_v27  ;;  %v3106_v40 = vmax.f32 %v3090_v16, 0.0  ;;  %v3091_v55 = vadd.f32 %v5353_v13, %v3062_v21  ;;  %v3063_v20 = vmul.f32 %v5343_v28, %v3020_v53  ;;  %v3022_v58 = vadd.f32 %v3021_v38, %v2948_v56  ;;  %v2952_v51 = vpop.f32.mrf.mxu0 }
 0x606   : > { %v3025_v12 = vpop.f32.mrf.mxu1 }
 0x607   : > { %3122 = vst [vmem:[%s5019_s12 + $0x20] sm:$0xff] %v3106_v40  ;;  %v3107_v26 = vmax.f32 %v3091_v55, 0.0  ;;  %v3092_v32 = vadd.f32 %v5346_v4, %v3063_v20  ;;  %v3064_v59 = vmul.f32 %v5349_v39, %v3022_v58  ;;  %v3026_v43 = vadd.f32 %v3025_v12, %v2952_v51  ;;  %v2954_v2 = vpop.f32.mrf.mxu0 }
 0x608   : > { %v3027_v0 = vpop.f32.mrf.mxu1 }
 0x609   : > { %3123 = vst [vmem:[%s5019_s12 + $0x28] sm:$0xff] %v3107_v26  ;;  %v3108_v24 = vmax.f32 %v3092_v32, 0.0  ;;  %v3093_v11 = vadd.f32 %v5353_v13, %v3064_v59  ;;  %v3065_v41 = vmul.f32 %v5343_v28, %v3026_v43  ;;  %v3028_v61 = vadd.f32 %v3027_v0, %v2954_v2  ;;  %v2956_v10 = vpop.f32.mrf.mxu0 }
 0x60a   : > { %v3029_v46 = vpop.f32.mrf.mxu1 }
 0x60b   : > { %3124 = vst [vmem:[%s5019_s12 + $0x30] sm:$0xff] %v3108_v24  ;;  %v3109_v50 = vmax.f32 %v3093_v11, 0.0  ;;  %v3094_v6 = vadd.f32 %v5346_v4, %v3065_v41  ;;  %v3066_v18 = vmul.f32 %v5349_v39, %v3028_v61  ;;  %v3030_v30 = vadd.f32 %v3029_v46, %v2956_v10  ;;  %v2958_v29 = vpop.f32.mrf.mxu0 }
 0x60c   : > { %v3031_v52 = vpop.f32.mrf.mxu1 }
 0x60d   : > { %3125 = vst [vmem:[%s5019_s12 + $0x38] sm:$0xff] %v3109_v50  ;;  %v3110_v54 = vmax.f32 %v3094_v6, 0.0  ;;  %v3095_v5 = vadd.f32 %v5353_v13, %v3066_v18  ;;  %v3067_v14 = vmul.f32 %v5343_v28, %v3030_v30  ;;  %v3032_v3 = vadd.f32 %v3031_v52, %v2958_v29  ;;  %v2962_v42 = vpop.f32.mrf.mxu0 }
 0x60e   : > { %v3035_v8 = vpop.f32.mrf.mxu1 }
 0x60f   : > { %3126 = vst [vmem:[%s5019_s12 + $0x40] sm:$0xff] %v3110_v54  ;;  %v3111_v23 = vmax.f32 %v3095_v5, 0.0  ;;  %v3096_v9 = vadd.f32 %v5346_v4, %v3067_v14  ;;  %v3068_v63 = vmul.f32 %v5349_v39, %v3032_v3  ;;  %v3036_v25 = vadd.f32 %v3035_v8, %v2962_v42  ;;  %v2964_v22 = vpop.f32.mrf.mxu0 }
 0x610   : > { %v3037_v17 = vpop.f32.mrf.mxu1 }
 0x611   : > { %3127 = vst [vmem:[%s5019_s12 + $0x48] sm:$0xff] %v3111_v23  ;;  %v3112_v19 = vmax.f32 %v3096_v9, 0.0  ;;  %v3097_v36 = vadd.f32 %v5353_v13, %v3068_v63  ;;  %v3069_v35 = vmul.f32 %v5343_v28, %v3036_v25  ;;  %v3038_v37 = vadd.f32 %v3037_v17, %v2964_v22  ;;  %v2966_v1 = vpop.f32.mrf.mxu0 }
 0x612   : > { %v3039_v57 = vpop.f32.mrf.mxu1 }
 0x613   : > { %3128 = vst [vmem:[%s5019_s12 + $0x50] sm:$0xff] %v3112_v19  ;;  %v3113_v60 = vmax.f32 %v3097_v36, 0.0  ;;  %v3098_v45 = vadd.f32 %v5346_v4, %v3069_v35  ;;  %v3070_v7 = vmul.f32 %v5349_v39, %v3038_v37  ;;  %v3040_v47 = vadd.f32 %v3039_v57, %v2966_v1  ;;  %v2968_v33 = vpop.f32.mrf.mxu0 }
 0x614   : > { %v3041_v62 = vpop.f32.mrf.mxu1 }
 0x615   : > { %3129 = vst [vmem:[%s5019_s12 + $0x58] sm:$0xff] %v3113_v60  ;;  %v3114_v34 = vmax.f32 %v3098_v45, 0.0  ;;  %v3099_v48 = vadd.f32 %v5353_v13, %v3070_v7  ;;  %v3071_v49 = vmul.f32 %v5343_v28, %v3040_v47  ;;  %v3042_v15 = vadd.f32 %v3041_v62, %v2968_v33 }
 0x617   : > { %3130 = vst [vmem:[%s5019_s12 + $0x60] sm:$0xff] %v3114_v34  ;;  %v3115_v31 = vmax.f32 %v3099_v48, 0.0  ;;  %v3100_v44 = vadd.f32 %v5346_v4, %v3071_v49  ;;  %v3072_v27 = vmul.f32 %v5349_v39, %v3042_v15 }
 0x619   : > { %3131 = vst [vmem:[%s5019_s12 + $0x68] sm:$0xff] %v3115_v31  ;;  %v3116_v16 = vmax.f32 %v3100_v44, 0.0  ;;  %v3101_v21 = vadd.f32 %v5353_v13, %v3072_v27 }
 0x61b   : > { %3132 = vst [vmem:[%s5019_s12 + $0x70] sm:$0xff] %v3116_v16  ;;  %v3117_v53 = vmax.f32 %v3101_v21, 0.0 }
 0x61d   : > { %3133 = vst [vmem:[%s5019_s12 + $0x78] sm:$0xff] %v3117_v53 }
 0x61e PF: > { %s3419_s23 = sshll.u32 %s3917_s28, 11  ;;  %s3151_s18 = sshll.u32 %s5019_s12, 4  ;;  %s5409_s18 = int_to_ptr.vmem [resolvable:$true] %s3151_s18 }
 0x61f   : > { %s5406_s1 = scalar_lea.hbm %s5471_s7, %s3419_s23  ;;  %s5529_s11 = sand.u32 1, %s3905_s25  }
 0x620   : > { %s5413_s22 = scalar_lea.sflag [#allocation4], %s5529_s11  ;;  %s3837_s21 = scalar_lea.vmem %s5409_s18, 2048 }
 0x621   : > { %p3838_p4 = scmp.ne.s32.totalorder %s5409_s18, %s3837_s21  ;;  %s3935_s28 = smov [#allocation3]  }
 0x622   : > { %s3841_s10 = sshll.u32 %s3935_s28, 4  ;;  %s3842_s10 = int_to_ptr.vmem [resolvable:$false] %s3841_s10 }
 0x623   : > { %p3839_p5 = pnand %p3838_p4, %p4027_p3  ;;  %s3843_s15 = scalar_lea.vmem %s3842_s10, 4096 }
 0x624   : > { %p3844_p7 = scmp.lt.s32.totalorder %s5409_s18, %s3842_s10  ;;  %p3845_p8 = scmp.lt.s32.totalorder %s3843_s15, %s3837_s21 }
 0x625   : > { %p3840_p6 = pneg %p3839_p5 }
 0x626   : > { %p3846_p10 = por %p3845_p8, %p3844_p7 }
 0x628   : > { %p3847_p11 = pnand %p3846_p10, %p3840_p6 }
 0x62a   : > { %3850 = shalt.err (!%p3847_p11)
}
 0x62b   : > { %s3851_s12 = scalar_lea.hbm %s5406_s1, 2048  ;;  %s3855_s30 = scalar_lea.hbm %s5471_s7, 4096 }
 0x62c   : > { %p3852_p12 = scmp.ne.s32.totalorder %s5406_s1, %s3851_s12  ;;  %p3856_p1 = scmp.lt.s32.totalorder %s5406_s1, %s5471_s7 }
 0x62d   : > { %p3857_p2 = scmp.lt.s32.totalorder %s3855_s30, %s3851_s12 }
 0x62e   : > { %p3853_p13 = pnand %p3852_p12, %p4027_p3 }
 0x62f   : > { %p3858_p4 = por %p3857_p2, %p3856_p1 }
 0x630   : > { %p3854_p0 = pneg %p3853_p13 }
 0x632   : > { %p3859_p5 = pnand %p3858_p4, %p3854_p0 }
 0x634   : > { %3862 = shalt.err (!%p3859_p5)
}
 0x635   : > { %s3936_s9 = smov 256   ;;  %s3937_s27 = smov 16  }
 0x636   : > { %3632 = dma.vmem_to_hbm [thread:$0]  (%p4027_p3), %s5409_s18, 2048, %s5406_s1, %s5413_s22, %s3936_s9, %s3936_s9, %s3937_s27  }
 0x637 PF: > { %p3638_p6 = scmp.ge.s32.totalorder %s3929_s8, 2  ;;  %s3166_s11 = sand.u32 1, %s3901_s24  }
 0x638   : > { %s3167_s21 = scalar_lea.sflag [#allocation4], %s3166_s11 }
 0x639   : > { %p3635_p7 = pnand %p3638_p6, %p4037_p9 }
 0x63b   : > { %p3636_p8 = pneg %p3635_p7 }
 0x63d   : > { %3896 = dma.done.wait (%p3636_p8), %s3167_s21, 2048  }
 0x63e   : > { %3898 = vsyncadd (%p3636_p8), %s3167_s21, 4294965248  ;;  %s20_s8 = sadd.s32 1, %s3929_s8   ;;  %s5530_s28 = sld [smem:[#allocation6_spill]] }
 0x63f   : > { %p17_p10 = scmp.ge.s32.totalorder %s20_s8, 12   ;;  %s5531_s13 = sld [smem:[#allocation7_spill]] }
 0x640   : > { %s5532_s30 = sld [smem:[#allocation8_spill]]  ;;  %s5533_s24 = smov %s3905_s25 }
 0x641   : > { %s5534_s25 = smov %s3909_s26  ;;  %s5535_s26 = smov %s4045_s17 }
 0x642   : > { %s5536_s27 = smov %s3921_s29  ;;  %19 = sbr.rel (!%p17_p10) target bundleno = 7 (0x7), region = 99 }
 0x645   : > { %s5537_s29 = smov %s5531_s13 }
 0x647   :  { %3172 = vsyncpa [#allocation4], 1 }
 0x648   :  { %3174 = vsyncpa [#allocation4 + $0x1], 1 }

</bundles_post_ra>
